<compile_context>
chip_gen: v7x
topology: tpu7x:2x2x1
jax: 0.10.0
libtpu: 0.0.40
codegen_flags: <defaults>
</compile_context>

<pallas_src>
import numpy as np

import jax
import jax.numpy as jnp
from jax import lax
from jax.experimental import pallas as pl
from jax.experimental.pallas import tpu as pltpu


BLOCK_B = 8      # images per grid step (~256 effective sublanes through the MXU)
IMG = 28         # spatial size implied by fc1 = Linear(16*7*7, 10)
C1, C2 = 8, 16   # conv channel counts
S1 = 32          # per-image sublane stride of the H-padded conv1 input
S2 = 16          # per-image sublane stride of the pool1 output / conv2 input
NCLS = 10
NPAD = 128       # lane-padded FC output width


# ----------------------------------------------------------------------------
# Host-side (one-time) weight preparation: banded conv matrices, pool
# selectors (which also drop junk rows / re-stride images), blocked fc weights.
# ----------------------------------------------------------------------------
def _band_conv_matrix(w_hwio, w_in):
    """M[ky, u*cin+ci, w*cout+co] = W[ky, u-w+1, ci, co] inside the 3-band."""
    w = np.asarray(w_hwio, np.float32)
    kh, kw, cin, cout = w.shape
    M = np.zeros((kh, w_in * cin, w_in * cout), np.float32)
    for ky in range(kh):
        for kx in range(kw):
            for wo in range(w_in):
                u = wo + kx - 1          # input column (SAME padding)
                if 0 <= u < w_in:
                    M[ky, u * cin:(u + 1) * cin,
                      wo * cout:(wo + 1) * cout] = w[ky, kx]
    return M


def prepare_params(params, B=BLOCK_B):
    w1, b1, w2, b2, wfc, bfc = params
    m1 = _band_conv_matrix(w1, 28)                               # (3, 28, 224)
    b1r = np.tile(np.asarray(b1, np.float32), 28)[None, :]       # (1, 224)
    m2 = _band_conv_matrix(w2, 14)                               # (3, 112, 224)
    b2r = np.tile(np.asarray(b2, np.float32), 14)[None, :]       # (1, 224)

    # pool1 row selector: rowpair1[b*32 + 2r] -> output row b*16 + 1 + r.
    # Rows b*16+0 / b*16+15 stay all-zero => they ARE conv2's H zero-padding.
    sh1 = np.zeros((S2 * B, S1 * B - 3), np.float32)
    for b in range(B):
        for r in range(14):
            sh1[b * S2 + 1 + r, b * S1 + 2 * r] = 1.0
    # pool1 column selector: (lane pair-maxed) col 2w*8+c -> w*8+c.
    tw1 = np.zeros((216, 112), np.float32)
    for w in range(14):
        for c in range(C1):
            tw1[2 * w * C1 + c, w * C1 + c] = 1.0

    # pool2 row selector: rowpair2[b*16 + 2r] -> output row r*B + b (h-major,
    # so the FC diagonal blocks are 8-sublane aligned).
    sh2 = np.zeros((7 * B, S2 * B - 3), np.float32)
    for b in range(B):
        for r in range(7):
            sh2[r * B + b, b * S2 + 2 * r] = 1.0
    tw2 = np.zeros((208, 112), np.float32)
    for w in range(7):
        for c in range(C2):
            tw2[2 * w * C2 + c, w * C2 + c] = 1.0

    # fc1: PyTorch NCHW-flatten order -> (h, w*16+c, k), spread into a
    # lane-blocked (112, 7*128) matrix so the whole FC is ONE MXU push.
    wf = np.asarray(wfc, np.float32).reshape(C2, 7, 7, NCLS)     # (c, h, w, k)
    wfcp = np.transpose(wf, (1, 2, 0, 3)).reshape(7, 112, NCLS)  # (h, w*16+c, k)
    wwide = np.zeros((112, 7 * NPAD), np.float32)
    for h in range(7):
        wwide[:, h * NPAD:h * NPAD + NCLS] = wfcp[h]
    bpad = np.zeros((1, NPAD), np.float32)
    bpad[0, :NCLS] = np.asarray(bfc, np.float32)

    to = jnp.asarray
    return (to(m1), to(b1r), to(sh1), to(tw1), to(m2), to(b2r),
            to(sh2), to(tw2), to(wwide), to(bpad))


# ----------------------------------------------------------------------------
# Fused Pallas kernel: B images per grid step, everything resident in VMEM.
# ----------------------------------------------------------------------------
def _cnn_fused_kernel(x_ref, m1_ref, b1_ref, sh1_ref, tw1_ref,
                      m2_ref, b2_ref, sh2_ref, tw2_ref,
                      wfc_ref, bfc_ref, o_ref, xpad_ref):
    f32 = jnp.float32
    B = x_ref.shape[0]
    T1 = S1 * B                      # padded conv1 rows (e.g. 256)
    T2 = S2 * B                      # padded conv2 rows (e.g. 128)

    # ---- stage the B images into the strided, H-padded conv1 scratch -----
    z1 = jnp.zeros((1, IMG), f32)
    z3 = jnp.zeros((3, IMG), f32)
    for b in range(B):
        xpad_ref[b * S1:b * S1 + 1, :] = z1            # top pad row
        xpad_ref[b * S1 + 1:b * S1 + 29, :] = x_ref[b]  # 28 image rows
        xpad_ref[b * S1 + 29:(b + 1) * S1, :] = z3      # bottom pad + junk rows

    # ---- conv1 (3x3, 1->8) as 3 banded matmuls + ReLU ---------------------
    y1 = (jnp.dot(xpad_ref[0:T1 - 2, :], m1_ref[0], preferred_element_type=f32)
          + jnp.dot(xpad_ref[1:T1 - 1, :], m1_ref[1], preferred_element_type=f32)
          + jnp.dot(xpad_ref[2:T1, :], m1_ref[2], preferred_element_type=f32)
          + b1_ref[...])
    y1 = jnp.maximum(y1, 0.0)                                    # (T1-2, 224)

    # ---- pool1: sublane pair-max + 1 row-selector matmul,
    #             lane pair-max    + 1 column-selector matmul ---------------
    rp1 = jnp.maximum(y1[0:T1 - 3, :], y1[1:T1 - 2, :])          # (T1-3, 224)
    ph1 = jnp.dot(sh1_ref[...], rp1, preferred_element_type=f32)  # (T2, 224)
    cp1 = jnp.maximum(ph1[:, 0:216], ph1[:, C1:224])             # (T2, 216)
    p1 = jnp.dot(cp1, tw1_ref[...], preferred_element_type=f32)   # (T2, 112)
    # p1 IS the H-padded conv2 input: selector left pad rows exactly zero.

    # ---- conv2 (3x3, 8->16) + ReLU ----------------------------------------
    y2 = (jnp.dot(p1[0:T2 - 2, :], m2_ref[0], preferred_element_type=f32)
          + jnp.dot(p1[1:T2 - 1, :], m2_ref[1], preferred_element_type=f32)
          + jnp.dot(p1[2:T2, :], m2_ref[2], preferred_element_type=f32)
          + b2_ref[...])
    y2 = jnp.maximum(y2, 0.0)                                    # (T2-2, 224)

    # ---- pool2 (output rows h-major: row h*B + b) --------------------------
    rp2 = jnp.maximum(y2[0:T2 - 3, :], y2[1:T2 - 2, :])          # (T2-3, 224)
    ph2 = jnp.dot(sh2_ref[...], rp2, preferred_element_type=f32)  # (7B, 224)
    cp2 = jnp.maximum(ph2[:, 0:208], ph2[:, C2:224])             # (7B, 208)
    p2 = jnp.dot(cp2, tw2_ref[...], preferred_element_type=f32)   # (7B, 112)

    # ---- fc1 as ONE matmul; sum the 7 aligned diagonal (B,128) blocks ------
    z = jnp.dot(p2, wfc_ref[...], preferred_element_type=f32)     # (7B, 7*128)
    acc = z[0:B, 0:NPAD]
    for h in range(1, 7):
        acc = acc + z[h * B:(h + 1) * B, h * NPAD:(h + 1) * NPAD]
    o_ref[...] = acc + bfc_ref[...]                              # (B, 128)


def cnn_forward(x_nchw, prep):
    """x_nchw: (N, 1, 28, 28) -> logits (N, 10)."""
    (m1, b1r, sh1, tw1, m2, b2r, sh2, tw2, wwide, bfcp) = prep
    B = sh1.shape[0] // S2
    n = x_nchw.shape[0]
    n_pad = ((n + B - 1) // B) * B
    x3 = x_nchw.reshape(n, IMG, IMG).astype(jnp.float32)
    if n_pad != n:
        x3 = jnp.pad(x3, ((0, n_pad - n), (0, 0), (0, 0)))

    out = pl.pallas_call(
        _cnn_fused_kernel,
        out_shape=jax.ShapeDtypeStruct((n_pad, NPAD), jnp.float32),
        grid_spec=pltpu.PrefetchScalarGridSpec(
            num_scalar_prefetch=0,
            grid=(n_pad // B,),
            in_specs=[
                pl.BlockSpec((B, IMG, IMG), lambda i: (i, 0, 0)),   # images
                pl.BlockSpec(m1.shape, lambda i: (0, 0, 0)),        # conv1 band
                pl.BlockSpec(b1r.shape, lambda i: (0, 0)),          # conv1 bias row
                pl.BlockSpec(sh1.shape, lambda i: (0, 0)),          # pool1 row sel
                pl.BlockSpec(tw1.shape, lambda i: (0, 0)),          # pool1 col sel
                pl.BlockSpec(m2.shape, lambda i: (0, 0, 0)),        # conv2 band
                pl.BlockSpec(b2r.shape, lambda i: (0, 0)),          # conv2 bias row
                pl.BlockSpec(sh2.shape, lambda i: (0, 0)),          # pool2 row sel
                pl.BlockSpec(tw2.shape, lambda i: (0, 0)),          # pool2 col sel
                pl.BlockSpec(wwide.shape, lambda i: (0, 0)),        # fc blocked W
                pl.BlockSpec(bfcp.shape, lambda i: (0, 0)),         # fc bias (128)
            ],
            out_specs=pl.BlockSpec((B, NPAD), lambda i: (i, 0)),
            scratch_shapes=[pltpu.VMEM((S1 * B, IMG), jnp.float32)],
        ),
        compiler_params=pltpu.CompilerParams(
            dimension_semantics=("parallel",),     # batch steps across TCs (v7x)
            vmem_limit_bytes=32 * 1024 * 1024,
        ),
    )(x3, m1, b1r, sh1, tw1, m2, b2r, sh2, tw2, wwide, bfcp)
    return out[:n, :NCLS]


# ----------------------------------------------------------------------------
# Pure-JAX reference (correctness check only)
# ----------------------------------------------------------------------------
def cnn_forward_ref(x_nchw, params):
    w1, b1, w2, b2, wfc, bfc = params
    x = jnp.transpose(x_nchw, (0, 2, 3, 1)).astype(jnp.float32)

    def conv(x, w, b):
        y = lax.conv_general_dilated(
            x, w, window_strides=(1, 1), padding="SAME",
            dimension_numbers=("NHWC", "HWIO", "NHWC"))
        return jnp.maximum(y + b[None, None, None, :], 0.0)

    def pool(x):
        return lax.reduce_window(x, -jnp.inf, lax.max,
                                 (1, 2, 2, 1), (1, 2, 2, 1), "VALID")

    x = pool(conv(x, w1, b1))
    x = pool(conv(x, w2, b2))
    n = x.shape[0]
    x_flat = jnp.transpose(x, (0, 3, 1, 2)).reshape(n, -1)   # NCHW flatten
    return x_flat @ wfc + bfc[None, :]


# ----------------------------------------------------------------------------
# Deterministic parameter init (synthetic — no checkpoint load)
# ----------------------------------------------------------------------------
def init_params(key):
    ks = jax.random.split(key, 6)
    w1 = jax.random.normal(ks[0], (3, 3, 1, C1), jnp.float32) * 0.2    # HWIO
    b1 = jax.random.normal(ks[1], (C1,), jnp.float32) * 0.05
    w2 = jax.random.normal(ks[2], (3, 3, C1, C2), jnp.float32) * 0.1   # HWIO
    b2 = jax.random.normal(ks[3], (C2,), jnp.float32) * 0.05
    wfc = jax.random.normal(ks[4], (C2 * 7 * 7, NCLS), jnp.float32) * 0.05
    bfc = jax.random.normal(ks[5], (NCLS,), jnp.float32) * 0.05
    return (w1, b1, w2, b2, wfc, bfc)


if __name__ == "__main__":
    key = jax.random.PRNGKey(0)
    kx, kp = jax.random.split(key)
    # MNIST-like input implied by fc1 = Linear(16*7*7, 10): 28x28 spatial.
    # batch=16 -> 2 grid steps of 8 images each (exercises batching + megacore).
    x = jax.random.normal(kx, (16, 1, 28, 28), jnp.float32)   # NCHW
    params = init_params(kp)
    prep = prepare_params(params)        # one-time host-side weight prep

    fwd = jax.jit(cnn_forward)
    out = jax.block_until_ready(fwd(x, prep))
    ref = jax.block_until_ready(cnn_forward_ref(x, params))

    assert out.shape == (16, 10), out.shape
    assert jnp.allclose(out, ref, atol=1e-3, rtol=1e-3), (
        f"max abs err = {jnp.max(jnp.abs(out - ref))}")
    print("KERNEL_OK")
</pallas_src>

<mosaic_0001>
module attributes {stable_mosaic.version = 11 : i64} {
  func.func @_cnn_fused_kernel(%arg0: i32, %arg1: memref<8x28x28xf32, #tpu.memory_space<vmem>>, %arg2: memref<3x28x224xf32, #tpu.memory_space<vmem>>, %arg3: memref<1x224xf32, #tpu.memory_space<vmem>>, %arg4: memref<128x253xf32, #tpu.memory_space<vmem>>, %arg5: memref<216x112xf32, #tpu.memory_space<vmem>>, %arg6: memref<3x112x224xf32, #tpu.memory_space<vmem>>, %arg7: memref<1x224xf32, #tpu.memory_space<vmem>>, %arg8: memref<56x125xf32, #tpu.memory_space<vmem>>, %arg9: memref<208x112xf32, #tpu.memory_space<vmem>>, %arg10: memref<112x896xf32, #tpu.memory_space<vmem>>, %arg11: memref<1x128xf32, #tpu.memory_space<vmem>>, %arg12: memref<8x128xf32, #tpu.memory_space<vmem>>, %arg13: memref<256x28xf32, #tpu.memory_space<vmem>>) attributes {dimension_semantics = [#tpu.dimension_semantics<parallel>], iteration_bounds = array<i64: 2>, scalar_prefetch = 0 : i64, scratch_operands = 1 : i64, tpu.core_type = #tpu.core_type<tc>, window_params = [{transform_indices = @transform_0, window_bounds = array<i64: 8, 28, 28>}, {pipeline_mode = #tpu.pipeline_mode<synchronous>, transform_indices = @transform_1, window_bounds = array<i64: 3, 28, 224>}, {pipeline_mode = #tpu.pipeline_mode<synchronous>, transform_indices = @transform_2, window_bounds = array<i64: 1, 224>}, {pipeline_mode = #tpu.pipeline_mode<synchronous>, transform_indices = @transform_3, window_bounds = array<i64: 128, 253>}, {pipeline_mode = #tpu.pipeline_mode<synchronous>, transform_indices = @transform_4, window_bounds = array<i64: 216, 112>}, {pipeline_mode = #tpu.pipeline_mode<synchronous>, transform_indices = @transform_5, window_bounds = array<i64: 3, 112, 224>}, {pipeline_mode = #tpu.pipeline_mode<synchronous>, transform_indices = @transform_6, window_bounds = array<i64: 1, 224>}, {pipeline_mode = #tpu.pipeline_mode<synchronous>, transform_indices = @transform_7, window_bounds = array<i64: 56, 125>}, {pipeline_mode = #tpu.pipeline_mode<synchronous>, transform_indices = @transform_8, window_bounds = array<i64: 208, 112>}, {pipeline_mode = #tpu.pipeline_mode<synchronous>, transform_indices = @transform_9, window_bounds = array<i64: 112, 896>}, {pipeline_mode = #tpu.pipeline_mode<synchronous>, transform_indices = @transform_10, window_bounds = array<i64: 1, 128>}, {transform_indices = @transform_11, window_bounds = array<i64: 8, 128>}]} {
    %cst = arith.constant 0.000000e+00 : f32
    %0 = vector.broadcast %cst : f32 to vector<1x28xf32>
    %cst_0 = arith.constant 0.000000e+00 : f32
    %1 = vector.broadcast %cst_0 : f32 to vector<3x28xf32>
    %c0 = arith.constant 0 : index
    %c0_1 = arith.constant 0 : index
    %2 = vector.load %arg13[%c0, %c0_1] : memref<256x28xf32, #tpu.memory_space<vmem>>, vector<1x28xf32>
    tpu.vector_store %arg13[%c0, %c0_1], %0 {strides = array<i32>} : memref<256x28xf32, #tpu.memory_space<vmem>>, vector<1x28xf32>,
    %c0_2 = arith.constant 0 : index
    %c0_3 = arith.constant 0 : index
    %c0_4 = arith.constant 0 : index
    %3 = vector.load %arg1[%c0_2, %c0_3, %c0_4] : memref<8x28x28xf32, #tpu.memory_space<vmem>>, vector<1x28x28xf32>
    %4 = vector.shape_cast %3 : vector<1x28x28xf32> to vector<28x28xf32>
    %c1 = arith.constant 1 : index
    %c0_5 = arith.constant 0 : index
    %5 = vector.load %arg13[%c1, %c0_5] : memref<256x28xf32, #tpu.memory_space<vmem>>, vector<28x28xf32>
    tpu.vector_store %arg13[%c1, %c0_5], %4 {strides = array<i32>} : memref<256x28xf32, #tpu.memory_space<vmem>>, vector<28x28xf32>,
    %c29 = arith.constant 29 : index
    %c0_6 = arith.constant 0 : index
    %6 = vector.load %arg13[%c29, %c0_6] : memref<256x28xf32, #tpu.memory_space<vmem>>, vector<3x28xf32>
    tpu.vector_store %arg13[%c29, %c0_6], %1 {strides = array<i32>} : memref<256x28xf32, #tpu.memory_space<vmem>>, vector<3x28xf32>,
    %c32 = arith.constant 32 : index
    %c0_7 = arith.constant 0 : index
    %7 = vector.load %arg13[%c32, %c0_7] : memref<256x28xf32, #tpu.memory_space<vmem>>, vector<1x28xf32>
    tpu.vector_store %arg13[%c32, %c0_7], %0 {strides = array<i32>} : memref<256x28xf32, #tpu.memory_space<vmem>>, vector<1x28xf32>,
    %c1_8 = arith.constant 1 : index
    %c0_9 = arith.constant 0 : index
    %c0_10 = arith.constant 0 : index
    %8 = vector.load %arg1[%c1_8, %c0_9, %c0_10] : memref<8x28x28xf32, #tpu.memory_space<vmem>>, vector<1x28x28xf32>
    %9 = vector.shape_cast %8 : vector<1x28x28xf32> to vector<28x28xf32>
    %c33 = arith.constant 33 : index
    %c0_11 = arith.constant 0 : index
    %10 = vector.load %arg13[%c33, %c0_11] : memref<256x28xf32, #tpu.memory_space<vmem>>, vector<28x28xf32>
    tpu.vector_store %arg13[%c33, %c0_11], %9 {strides = array<i32>} : memref<256x28xf32, #tpu.memory_space<vmem>>, vector<28x28xf32>,
    %c61 = arith.constant 61 : index
    %c0_12 = arith.constant 0 : index
    %11 = vector.load %arg13[%c61, %c0_12] : memref<256x28xf32, #tpu.memory_space<vmem>>, vector<3x28xf32>
    tpu.vector_store %arg13[%c61, %c0_12], %1 {strides = array<i32>} : memref<256x28xf32, #tpu.memory_space<vmem>>, vector<3x28xf32>,
    %c64 = arith.constant 64 : index
    %c0_13 = arith.constant 0 : index
    %12 = vector.load %arg13[%c64, %c0_13] : memref<256x28xf32, #tpu.memory_space<vmem>>, vector<1x28xf32>
    tpu.vector_store %arg13[%c64, %c0_13], %0 {strides = array<i32>} : memref<256x28xf32, #tpu.memory_space<vmem>>, vector<1x28xf32>,
    %c2 = arith.constant 2 : index
    %c0_14 = arith.constant 0 : index
    %c0_15 = arith.constant 0 : index
    %13 = vector.load %arg1[%c2, %c0_14, %c0_15] : memref<8x28x28xf32, #tpu.memory_space<vmem>>, vector<1x28x28xf32>
    %14 = vector.shape_cast %13 : vector<1x28x28xf32> to vector<28x28xf32>
    %c65 = arith.constant 65 : index
    %c0_16 = arith.constant 0 : index
    %15 = vector.load %arg13[%c65, %c0_16] : memref<256x28xf32, #tpu.memory_space<vmem>>, vector<28x28xf32>
    tpu.vector_store %arg13[%c65, %c0_16], %14 {strides = array<i32>} : memref<256x28xf32, #tpu.memory_space<vmem>>, vector<28x28xf32>,
    %c93 = arith.constant 93 : index
    %c0_17 = arith.constant 0 : index
    %16 = vector.load %arg13[%c93, %c0_17] : memref<256x28xf32, #tpu.memory_space<vmem>>, vector<3x28xf32>
    tpu.vector_store %arg13[%c93, %c0_17], %1 {strides = array<i32>} : memref<256x28xf32, #tpu.memory_space<vmem>>, vector<3x28xf32>,
    %c96 = arith.constant 96 : index
    %c0_18 = arith.constant 0 : index
    %17 = vector.load %arg13[%c96, %c0_18] : memref<256x28xf32, #tpu.memory_space<vmem>>, vector<1x28xf32>
    tpu.vector_store %arg13[%c96, %c0_18], %0 {strides = array<i32>} : memref<256x28xf32, #tpu.memory_space<vmem>>, vector<1x28xf32>,
    %c3 = arith.constant 3 : index
    %c0_19 = arith.constant 0 : index
    %c0_20 = arith.constant 0 : index
    %18 = vector.load %arg1[%c3, %c0_19, %c0_20] : memref<8x28x28xf32, #tpu.memory_space<vmem>>, vector<1x28x28xf32>
    %19 = vector.shape_cast %18 : vector<1x28x28xf32> to vector<28x28xf32>
    %c97 = arith.constant 97 : index
    %c0_21 = arith.constant 0 : index
    %20 = vector.load %arg13[%c97, %c0_21] : memref<256x28xf32, #tpu.memory_space<vmem>>, vector<28x28xf32>
    tpu.vector_store %arg13[%c97, %c0_21], %19 {strides = array<i32>} : memref<256x28xf32, #tpu.memory_space<vmem>>, vector<28x28xf32>,
    %c125 = arith.constant 125 : index
    %c0_22 = arith.constant 0 : index
    %21 = vector.load %arg13[%c125, %c0_22] : memref<256x28xf32, #tpu.memory_space<vmem>>, vector<3x28xf32>
    tpu.vector_store %arg13[%c125, %c0_22], %1 {strides = array<i32>} : memref<256x28xf32, #tpu.memory_space<vmem>>, vector<3x28xf32>,
    %c128 = arith.constant 128 : index
    %c0_23 = arith.constant 0 : index
    %22 = vector.load %arg13[%c128, %c0_23] : memref<256x28xf32, #tpu.memory_space<vmem>>, vector<1x28xf32>
    tpu.vector_store %arg13[%c128, %c0_23], %0 {strides = array<i32>} : memref<256x28xf32, #tpu.memory_space<vmem>>, vector<1x28xf32>,
    %c4 = arith.constant 4 : index
    %c0_24 = arith.constant 0 : index
    %c0_25 = arith.constant 0 : index
    %23 = vector.load %arg1[%c4, %c0_24, %c0_25] : memref<8x28x28xf32, #tpu.memory_space<vmem>>, vector<1x28x28xf32>
    %24 = vector.shape_cast %23 : vector<1x28x28xf32> to vector<28x28xf32>
    %c129 = arith.constant 129 : index
    %c0_26 = arith.constant 0 : index
    %25 = vector.load %arg13[%c129, %c0_26] : memref<256x28xf32, #tpu.memory_space<vmem>>, vector<28x28xf32>
    tpu.vector_store %arg13[%c129, %c0_26], %24 {strides = array<i32>} : memref<256x28xf32, #tpu.memory_space<vmem>>, vector<28x28xf32>,
    %c157 = arith.constant 157 : index
    %c0_27 = arith.constant 0 : index
    %26 = vector.load %arg13[%c157, %c0_27] : memref<256x28xf32, #tpu.memory_space<vmem>>, vector<3x28xf32>
    tpu.vector_store %arg13[%c157, %c0_27], %1 {strides = array<i32>} : memref<256x28xf32, #tpu.memory_space<vmem>>, vector<3x28xf32>,
    %c160 = arith.constant 160 : index
    %c0_28 = arith.constant 0 : index
    %27 = vector.load %arg13[%c160, %c0_28] : memref<256x28xf32, #tpu.memory_space<vmem>>, vector<1x28xf32>
    tpu.vector_store %arg13[%c160, %c0_28], %0 {strides = array<i32>} : memref<256x28xf32, #tpu.memory_space<vmem>>, vector<1x28xf32>,
    %c5 = arith.constant 5 : index
    %c0_29 = arith.constant 0 : index
    %c0_30 = arith.constant 0 : index
    %28 = vector.load %arg1[%c5, %c0_29, %c0_30] : memref<8x28x28xf32, #tpu.memory_space<vmem>>, vector<1x28x28xf32>
    %29 = vector.shape_cast %28 : vector<1x28x28xf32> to vector<28x28xf32>
    %c161 = arith.constant 161 : index
    %c0_31 = arith.constant 0 : index
    %30 = vector.load %arg13[%c161, %c0_31] : memref<256x28xf32, #tpu.memory_space<vmem>>, vector<28x28xf32>
    tpu.vector_store %arg13[%c161, %c0_31], %29 {strides = array<i32>} : memref<256x28xf32, #tpu.memory_space<vmem>>, vector<28x28xf32>,
    %c189 = arith.constant 189 : index
    %c0_32 = arith.constant 0 : index
    %31 = vector.load %arg13[%c189, %c0_32] : memref<256x28xf32, #tpu.memory_space<vmem>>, vector<3x28xf32>
    tpu.vector_store %arg13[%c189, %c0_32], %1 {strides = array<i32>} : memref<256x28xf32, #tpu.memory_space<vmem>>, vector<3x28xf32>,
    %c192 = arith.constant 192 : index
    %c0_33 = arith.constant 0 : index
    %32 = vector.load %arg13[%c192, %c0_33] : memref<256x28xf32, #tpu.memory_space<vmem>>, vector<1x28xf32>
    tpu.vector_store %arg13[%c192, %c0_33], %0 {strides = array<i32>} : memref<256x28xf32, #tpu.memory_space<vmem>>, vector<1x28xf32>,
    %c6 = arith.constant 6 : index
    %c0_34 = arith.constant 0 : index
    %c0_35 = arith.constant 0 : index
    %33 = vector.load %arg1[%c6, %c0_34, %c0_35] : memref<8x28x28xf32, #tpu.memory_space<vmem>>, vector<1x28x28xf32>
    %34 = vector.shape_cast %33 : vector<1x28x28xf32> to vector<28x28xf32>
    %c193 = arith.constant 193 : index
    %c0_36 = arith.constant 0 : index
    %35 = vector.load %arg13[%c193, %c0_36] : memref<256x28xf32, #tpu.memory_space<vmem>>, vector<28x28xf32>
    tpu.vector_store %arg13[%c193, %c0_36], %34 {strides = array<i32>} : memref<256x28xf32, #tpu.memory_space<vmem>>, vector<28x28xf32>,
    %c221 = arith.constant 221 : index
    %c0_37 = arith.constant 0 : index
    %36 = vector.load %arg13[%c221, %c0_37] : memref<256x28xf32, #tpu.memory_space<vmem>>, vector<3x28xf32>
    tpu.vector_store %arg13[%c221, %c0_37], %1 {strides = array<i32>} : memref<256x28xf32, #tpu.memory_space<vmem>>, vector<3x28xf32>,
    %c224 = arith.constant 224 : index
    %c0_38 = arith.constant 0 : index
    %37 = vector.load %arg13[%c224, %c0_38] : memref<256x28xf32, #tpu.memory_space<vmem>>, vector<1x28xf32>
    tpu.vector_store %arg13[%c224, %c0_38], %0 {strides = array<i32>} : memref<256x28xf32, #tpu.memory_space<vmem>>, vector<1x28xf32>,
    %c7 = arith.constant 7 : index
    %c0_39 = arith.constant 0 : index
    %c0_40 = arith.constant 0 : index
    %38 = vector.load %arg1[%c7, %c0_39, %c0_40] : memref<8x28x28xf32, #tpu.memory_space<vmem>>, vector<1x28x28xf32>
    %39 = vector.shape_cast %38 : vector<1x28x28xf32> to vector<28x28xf32>
    %c225 = arith.constant 225 : index
    %c0_41 = arith.constant 0 : index
    %40 = vector.load %arg13[%c225, %c0_41] : memref<256x28xf32, #tpu.memory_space<vmem>>, vector<28x28xf32>
    tpu.vector_store %arg13[%c225, %c0_41], %39 {strides = array<i32>} : memref<256x28xf32, #tpu.memory_space<vmem>>, vector<28x28xf32>,
    %c253 = arith.constant 253 : index
    %c0_42 = arith.constant 0 : index
    %41 = vector.load %arg13[%c253, %c0_42] : memref<256x28xf32, #tpu.memory_space<vmem>>, vector<3x28xf32>
    tpu.vector_store %arg13[%c253, %c0_42], %1 {strides = array<i32>} : memref<256x28xf32, #tpu.memory_space<vmem>>, vector<3x28xf32>,
    %c0_43 = arith.constant 0 : index
    %c0_44 = arith.constant 0 : index
    %42 = vector.load %arg13[%c0_43, %c0_44] : memref<256x28xf32, #tpu.memory_space<vmem>>, vector<254x28xf32>
    %c0_45 = arith.constant 0 : index
    %c0_46 = arith.constant 0 : index
    %c0_47 = arith.constant 0 : index
    %43 = vector.load %arg2[%c0_45, %c0_46, %c0_47] : memref<3x28x224xf32, #tpu.memory_space<vmem>>, vector<1x28x224xf32>
    %44 = vector.shape_cast %43 : vector<1x28x224xf32> to vector<28x224xf32>
    %cst_48 = arith.constant dense<0.000000e+00> : vector<254x224xf32>
    %45 = tpu.matmul %42, %44, %cst_48 {dimension_numbers = #tpu.dot_dimension_numbers<[1], [0], [0], [1], [0, 0, 1, 1], [], []>} : vector<254x28xf32>, vector<28x224xf32>, vector<254x224xf32> -> vector<254x224xf32>
    %c1_49 = arith.constant 1 : index
    %c0_50 = arith.constant 0 : index
    %46 = vector.load %arg13[%c1_49, %c0_50] : memref<256x28xf32, #tpu.memory_space<vmem>>, vector<254x28xf32>
    %c1_51 = arith.constant 1 : index
    %c0_52 = arith.constant 0 : index
    %c0_53 = arith.constant 0 : index
    %47 = vector.load %arg2[%c1_51, %c0_52, %c0_53] : memref<3x28x224xf32, #tpu.memory_space<vmem>>, vector<1x28x224xf32>
    %48 = vector.shape_cast %47 : vector<1x28x224xf32> to vector<28x224xf32>
    %cst_54 = arith.constant dense<0.000000e+00> : vector<254x224xf32>
    %49 = tpu.matmul %46, %48, %cst_54 {dimension_numbers = #tpu.dot_dimension_numbers<[1], [0], [0], [1], [0, 0, 1, 1], [], []>} : vector<254x28xf32>, vector<28x224xf32>, vector<254x224xf32> -> vector<254x224xf32>
    %50 = arith.addf %45, %49 : vector<254x224xf32>
    %c2_55 = arith.constant 2 : index
    %c0_56 = arith.constant 0 : index
    %51 = vector.load %arg13[%c2_55, %c0_56] : memref<256x28xf32, #tpu.memory_space<vmem>>, vector<254x28xf32>
    %c2_57 = arith.constant 2 : index
    %c0_58 = arith.constant 0 : index
    %c0_59 = arith.constant 0 : index
    %52 = vector.load %arg2[%c2_57, %c0_58, %c0_59] : memref<3x28x224xf32, #tpu.memory_space<vmem>>, vector<1x28x224xf32>
    %53 = vector.shape_cast %52 : vector<1x28x224xf32> to vector<28x224xf32>
    %cst_60 = arith.constant dense<0.000000e+00> : vector<254x224xf32>
    %54 = tpu.matmul %51, %53, %cst_60 {dimension_numbers = #tpu.dot_dimension_numbers<[1], [0], [0], [1], [0, 0, 1, 1], [], []>} : vector<254x28xf32>, vector<28x224xf32>, vector<254x224xf32> -> vector<254x224xf32>
    %55 = arith.addf %50, %54 : vector<254x224xf32>
    %c0_61 = arith.constant 0 : index
    %c0_62 = arith.constant 0 : index
    %56 = vector.load %arg3[%c0_61, %c0_62] : memref<1x224xf32, #tpu.memory_space<vmem>>, vector<1x224xf32>
    %57 = vector.broadcast %56 : vector<1x224xf32> to vector<254x224xf32>
    %58 = arith.addf %55, %57 : vector<254x224xf32>
    %cst_63 = arith.constant 0.000000e+00 : f32
    %59 = vector.broadcast %cst_63 : f32 to vector<254x224xf32>
    %60 = arith.maximumf %58, %59 : vector<254x224xf32>
    %61 = vector.extract_strided_slice %60 {offsets = [0, 0], sizes = [253, 224], strides = [1, 1]} : vector<254x224xf32> to vector<253x224xf32>
    %62 = vector.extract_strided_slice %60 {offsets = [1, 0], sizes = [253, 224], strides = [1, 1]} : vector<254x224xf32> to vector<253x224xf32>
    %63 = arith.maximumf %61, %62 : vector<253x224xf32>
    %c0_64 = arith.constant 0 : index
    %c0_65 = arith.constant 0 : index
    %64 = vector.load %arg4[%c0_64, %c0_65] : memref<128x253xf32, #tpu.memory_space<vmem>>, vector<128x253xf32>
    %cst_66 = arith.constant dense<0.000000e+00> : vector<128x224xf32>
    %65 = tpu.matmul %64, %63, %cst_66 {dimension_numbers = #tpu.dot_dimension_numbers<[1], [0], [0], [1], [0, 0, 1, 1], [], []>} : vector<128x253xf32>, vector<253x224xf32>, vector<128x224xf32> -> vector<128x224xf32>
    %66 = vector.extract_strided_slice %65 {offsets = [0, 0], sizes = [128, 216], strides = [1, 1]} : vector<128x224xf32> to vector<128x216xf32>
    %67 = vector.extract_strided_slice %65 {offsets = [0, 8], sizes = [128, 216], strides = [1, 1]} : vector<128x224xf32> to vector<128x216xf32>
    %68 = arith.maximumf %66, %67 : vector<128x216xf32>
    %c0_67 = arith.constant 0 : index
    %c0_68 = arith.constant 0 : index
    %69 = vector.load %arg5[%c0_67, %c0_68] : memref<216x112xf32, #tpu.memory_space<vmem>>, vector<216x112xf32>
    %cst_69 = arith.constant dense<0.000000e+00> : vector<128x112xf32>
    %70 = tpu.matmul %68, %69, %cst_69 {dimension_numbers = #tpu.dot_dimension_numbers<[1], [0], [0], [1], [0, 0, 1, 1], [], []>} : vector<128x216xf32>, vector<216x112xf32>, vector<128x112xf32> -> vector<128x112xf32>
    %71 = vector.extract_strided_slice %70 {offsets = [0, 0], sizes = [126, 112], strides = [1, 1]} : vector<128x112xf32> to vector<126x112xf32>
    %c0_70 = arith.constant 0 : index
    %c0_71 = arith.constant 0 : index
    %c0_72 = arith.constant 0 : index
    %72 = vector.load %arg6[%c0_70, %c0_71, %c0_72] : memref<3x112x224xf32, #tpu.memory_space<vmem>>, vector<1x112x224xf32>
    %73 = vector.shape_cast %72 : vector<1x112x224xf32> to vector<112x224xf32>
    %cst_73 = arith.constant dense<0.000000e+00> : vector<126x224xf32>
    %74 = tpu.matmul %71, %73, %cst_73 {dimension_numbers = #tpu.dot_dimension_numbers<[1], [0], [0], [1], [0, 0, 1, 1], [], []>} : vector<126x112xf32>, vector<112x224xf32>, vector<126x224xf32> -> vector<126x224xf32>
    %75 = vector.extract_strided_slice %70 {offsets = [1, 0], sizes = [126, 112], strides = [1, 1]} : vector<128x112xf32> to vector<126x112xf32>
    %c1_74 = arith.constant 1 : index
    %c0_75 = arith.constant 0 : index
    %c0_76 = arith.constant 0 : index
    %76 = vector.load %arg6[%c1_74, %c0_75, %c0_76] : memref<3x112x224xf32, #tpu.memory_space<vmem>>, vector<1x112x224xf32>
    %77 = vector.shape_cast %76 : vector<1x112x224xf32> to vector<112x224xf32>
    %cst_77 = arith.constant dense<0.000000e+00> : vector<126x224xf32>
    %78 = tpu.matmul %75, %77, %cst_77 {dimension_numbers = #tpu.dot_dimension_numbers<[1], [0], [0], [1], [0, 0, 1, 1], [], []>} : vector<126x112xf32>, vector<112x224xf32>, vector<126x224xf32> -> vector<126x224xf32>
    %79 = arith.addf %74, %78 : vector<126x224xf32>
    %80 = vector.extract_strided_slice %70 {offsets = [2, 0], sizes = [126, 112], strides = [1, 1]} : vector<128x112xf32> to vector<126x112xf32>
    %c2_78 = arith.constant 2 : index
    %c0_79 = arith.constant 0 : index
    %c0_80 = arith.constant 0 : index
    %81 = vector.load %arg6[%c2_78, %c0_79, %c0_80] : memref<3x112x224xf32, #tpu.memory_space<vmem>>, vector<1x112x224xf32>
    %82 = vector.shape_cast %81 : vector<1x112x224xf32> to vector<112x224xf32>
    %cst_81 = arith.constant dense<0.000000e+00> : vector<126x224xf32>
    %83 = tpu.matmul %80, %82, %cst_81 {dimension_numbers = #tpu.dot_dimension_numbers<[1], [0], [0], [1], [0, 0, 1, 1], [], []>} : vector<126x112xf32>, vector<112x224xf32>, vector<126x224xf32> -> vector<126x224xf32>
    %84 = arith.addf %79, %83 : vector<126x224xf32>
    %c0_82 = arith.constant 0 : index
    %c0_83 = arith.constant 0 : index
    %85 = vector.load %arg7[%c0_82, %c0_83] : memref<1x224xf32, #tpu.memory_space<vmem>>, vector<1x224xf32>
    %86 = vector.broadcast %85 : vector<1x224xf32> to vector<126x224xf32>
    %87 = arith.addf %84, %86 : vector<126x224xf32>
    %cst_84 = arith.constant 0.000000e+00 : f32
    %88 = vector.broadcast %cst_84 : f32 to vector<126x224xf32>
    %89 = arith.maximumf %87, %88 : vector<126x224xf32>
    %90 = vector.extract_strided_slice %89 {offsets = [0, 0], sizes = [125, 224], strides = [1, 1]} : vector<126x224xf32> to vector<125x224xf32>
    %91 = vector.extract_strided_slice %89 {offsets = [1, 0], sizes = [125, 224], strides = [1, 1]} : vector<126x224xf32> to vector<125x224xf32>
    %92 = arith.maximumf %90, %91 : vector<125x224xf32>
    %c0_85 = arith.constant 0 : index
    %c0_86 = arith.constant 0 : index
    %93 = vector.load %arg8[%c0_85, %c0_86] : memref<56x125xf32, #tpu.memory_space<vmem>>, vector<56x125xf32>
    %cst_87 = arith.constant dense<0.000000e+00> : vector<56x224xf32>
    %94 = tpu.matmul %93, %92, %cst_87 {dimension_numbers = #tpu.dot_dimension_numbers<[1], [0], [0], [1], [0, 0, 1, 1], [], []>} : vector<56x125xf32>, vector<125x224xf32>, vector<56x224xf32> -> vector<56x224xf32>
    %95 = vector.extract_strided_slice %94 {offsets = [0, 0], sizes = [56, 208], strides = [1, 1]} : vector<56x224xf32> to vector<56x208xf32>
    %96 = vector.extract_strided_slice %94 {offsets = [0, 16], sizes = [56, 208], strides = [1, 1]} : vector<56x224xf32> to vector<56x208xf32>
    %97 = arith.maximumf %95, %96 : vector<56x208xf32>
    %c0_88 = arith.constant 0 : index
    %c0_89 = arith.constant 0 : index
    %98 = vector.load %arg9[%c0_88, %c0_89] : memref<208x112xf32, #tpu.memory_space<vmem>>, vector<208x112xf32>
    %cst_90 = arith.constant dense<0.000000e+00> : vector<56x112xf32>
    %99 = tpu.matmul %97, %98, %cst_90 {dimension_numbers = #tpu.dot_dimension_numbers<[1], [0], [0], [1], [0, 0, 1, 1], [], []>} : vector<56x208xf32>, vector<208x112xf32>, vector<56x112xf32> -> vector<56x112xf32>
    %c0_91 = arith.constant 0 : index
    %c0_92 = arith.constant 0 : index
    %100 = vector.load %arg10[%c0_91, %c0_92] : memref<112x896xf32, #tpu.memory_space<vmem>>, vector<112x896xf32>
    %cst_93 = arith.constant dense<0.000000e+00> : vector<56x896xf32>
    %101 = tpu.matmul %99, %100, %cst_93 {dimension_numbers = #tpu.dot_dimension_numbers<[1], [0], [0], [1], [0, 0, 1, 1], [], []>} : vector<56x112xf32>, vector<112x896xf32>, vector<56x896xf32> -> vector<56x896xf32>
    %102 = vector.extract_strided_slice %101 {offsets = [0, 0], sizes = [8, 128], strides = [1, 1]} : vector<56x896xf32> to vector<8x128xf32>
    %103 = vector.extract_strided_slice %101 {offsets = [8, 128], sizes = [8, 128], strides = [1, 1]} : vector<56x896xf32> to vector<8x128xf32>
    %104 = arith.addf %102, %103 : vector<8x128xf32>
    %105 = vector.extract_strided_slice %101 {offsets = [16, 256], sizes = [8, 128], strides = [1, 1]} : vector<56x896xf32> to vector<8x128xf32>
    %106 = arith.addf %104, %105 : vector<8x128xf32>
    %107 = vector.extract_strided_slice %101 {offsets = [24, 384], sizes = [8, 128], strides = [1, 1]} : vector<56x896xf32> to vector<8x128xf32>
    %108 = arith.addf %106, %107 : vector<8x128xf32>
    %109 = vector.extract_strided_slice %101 {offsets = [32, 512], sizes = [8, 128], strides = [1, 1]} : vector<56x896xf32> to vector<8x128xf32>
    %110 = arith.addf %108, %109 : vector<8x128xf32>
    %111 = vector.extract_strided_slice %101 {offsets = [40, 640], sizes = [8, 128], strides = [1, 1]} : vector<56x896xf32> to vector<8x128xf32>
    %112 = arith.addf %110, %111 : vector<8x128xf32>
    %113 = vector.extract_strided_slice %101 {offsets = [48, 768], sizes = [8, 128], strides = [1, 1]} : vector<56x896xf32> to vector<8x128xf32>
    %114 = arith.addf %112, %113 : vector<8x128xf32>
    %c0_94 = arith.constant 0 : index
    %c0_95 = arith.constant 0 : index
    %115 = vector.load %arg11[%c0_94, %c0_95] : memref<1x128xf32, #tpu.memory_space<vmem>>, vector<1x128xf32>
    %116 = vector.broadcast %115 : vector<1x128xf32> to vector<8x128xf32>
    %117 = arith.addf %114, %116 : vector<8x128xf32>
    %c0_96 = arith.constant 0 : index
    %c0_97 = arith.constant 0 : index
    %118 = vector.load %arg12[%c0_96, %c0_97] : memref<8x128xf32, #tpu.memory_space<vmem>>, vector<8x128xf32>
    tpu.vector_store %arg12[%c0_96, %c0_97], %117 {strides = array<i32>} : memref<8x128xf32, #tpu.memory_space<vmem>>, vector<8x128xf32>,
    return
  }
  func.func @transform_0(%arg0: i32) -> (i32, i32, i32) {
    %c0_i32 = arith.constant 0 : i32
    %c0_i32_0 = arith.constant 0 : i32
    %c0_i32_1 = arith.constant 0 : i32
    return %arg0, %c0_i32, %c0_i32_0 : i32, i32, i32
  }
  func.func @transform_1(%arg0: i32) -> (i32, i32, i32) {
    %c0_i32 = arith.constant 0 : i32
    %c0_i32_0 = arith.constant 0 : i32
    %c0_i32_1 = arith.constant 0 : i32
    %c0_i32_2 = arith.constant 0 : i32
    return %c0_i32, %c0_i32_0, %c0_i32_1 : i32, i32, i32
  }
  func.func @transform_2(%arg0: i32) -> (i32, i32) {
    %c0_i32 = arith.constant 0 : i32
    %c0_i32_0 = arith.constant 0 : i32
    %c0_i32_1 = arith.constant 0 : i32
    return %c0_i32, %c0_i32_0 : i32, i32
  }
  func.func @transform_3(%arg0: i32) -> (i32, i32) {
    %c0_i32 = arith.constant 0 : i32
    %c0_i32_0 = arith.constant 0 : i32
    %c0_i32_1 = arith.constant 0 : i32
    return %c0_i32, %c0_i32_0 : i32, i32
  }
  func.func @transform_4(%arg0: i32) -> (i32, i32) {
    %c0_i32 = arith.constant 0 : i32
    %c0_i32_0 = arith.constant 0 : i32
    %c0_i32_1 = arith.constant 0 : i32
    return %c0_i32, %c0_i32_0 : i32, i32
  }
  func.func @transform_5(%arg0: i32) -> (i32, i32, i32) {
    %c0_i32 = arith.constant 0 : i32
    %c0_i32_0 = arith.constant 0 : i32
    %c0_i32_1 = arith.constant 0 : i32
    %c0_i32_2 = arith.constant 0 : i32
    return %c0_i32, %c0_i32_0, %c0_i32_1 : i32, i32, i32
  }
  func.func @transform_6(%arg0: i32) -> (i32, i32) {
    %c0_i32 = arith.constant 0 : i32
    %c0_i32_0 = arith.constant 0 : i32
    %c0_i32_1 = arith.constant 0 : i32
    return %c0_i32, %c0_i32_0 : i32, i32
  }
  func.func @transform_7(%arg0: i32) -> (i32, i32) {
    %c0_i32 = arith.constant 0 : i32
    %c0_i32_0 = arith.constant 0 : i32
    %c0_i32_1 = arith.constant 0 : i32
    return %c0_i32, %c0_i32_0 : i32, i32
  }
  func.func @transform_8(%arg0: i32) -> (i32, i32) {
    %c0_i32 = arith.constant 0 : i32
    %c0_i32_0 = arith.constant 0 : i32
    %c0_i32_1 = arith.constant 0 : i32
    return %c0_i32, %c0_i32_0 : i32, i32
  }
  func.func @transform_9(%arg0: i32) -> (i32, i32) {
    %c0_i32 = arith.constant 0 : i32
    %c0_i32_0 = arith.constant 0 : i32
    %c0_i32_1 = arith.constant 0 : i32
    return %c0_i32, %c0_i32_0 : i32, i32
  }
  func.func @transform_10(%arg0: i32) -> (i32, i32) {
    %c0_i32 = arith.constant 0 : i32
    %c0_i32_0 = arith.constant 0 : i32
    %c0_i32_1 = arith.constant 0 : i32
    return %c0_i32, %c0_i32_0 : i32, i32
  }
  func.func @transform_11(%arg0: i32) -> (i32, i32) {
    %c0_i32 = arith.constant 0 : i32
    %c0_i32_0 = arith.constant 0 : i32
    return %arg0, %c0_i32 : i32, i32
  }
}

</mosaic_0001>

<bundles_post_ra>
// kernel: cnn_forward.1
= control target key start
LH: loop header
LB: loop body
LE: loop exit
PB: predicated region body
PF: predicated region fallthrough
CT: control target
= control target key end

     0   :  { %s8338_s0 = inlined_call_operand.vmem [shape: f32[16,28,28], index: 0, kind: input, shape index: {}]   ;;  %s8339_s1 = inlined_call_operand.hbm [shape: f32[3,28,224], index: 1, kind: input, shape index: {}]   ;;  %s8340_s2 = inlined_call_operand.vmem [shape: f32[1,224], index: 2, kind: input, shape index: {}]   ;;  %s8341_s3 = inlined_call_operand.hbm [shape: f32[128,253], index: 3, kind: input, shape index: {}]   ;;  %s8342_s4 = inlined_call_operand.hbm [shape: f32[216,112], index: 4, kind: input, shape index: {}]   ;;  %s8343_s5 = inlined_call_operand.hbm [shape: f32[3,112,224], index: 5, kind: input, shape index: {}]   ;;  %s8344_s6 = inlined_call_operand.hbm [shape: f32[1,224], index: 6, kind: input, shape index: {}]   ;;  %s8345_s7 = inlined_call_operand.hbm [shape: f32[56,125], index: 7, kind: input, shape index: {}]   ;;  %s8346_s8 = inlined_call_operand.vmem [shape: f32[208,112], index: 8, kind: input, shape index: {}]   ;;  %s8347_s9 = inlined_call_operand.vmem [shape: f32[112,896], index: 9, kind: input, shape index: {}]   ;;  %s8348_s10 = inlined_call_operand.hbm [shape: f32[1,128], index: 10, kind: input, shape index: {}]   ;;  %s8349_s11 = inlined_call_operand.hbm [shape: f32[16,128], index: 11, kind: output, shape index: {}]  }
   0x1   :  { %8362 = sst [smem:[#allocation27_spill]] %s8341_s3 }
   0x2   :  { %16 = vsyncpa [#allocation4], 0 }
   0x3   :  { %17 = vsyncpa [#allocation7], 0 }
   0x4   :  { %18 = vsyncpa [#allocation10], 0 }
   0x5   :  { %19 = vsyncpa [#allocation13], 0 }
   0x6   :  { %20 = vsyncpa [#allocation5], 0 }
   0x7   :  { %22 = vsyncpa [#allocation5 + $0x1], 0  ;;  %s6412_s17 = smov 0   ;;  %s6414_s18 = smov 0  }
   0x8   :  { %s6416_s19 = smov 0   ;;  %s6418_s20 = smov 0  }
   0x9 LB: > { %8363 = sst [smem:[#allocation21_spill]] %s6320_s17  ;;  %s6433_s21 = sadd.s32 4294967295, %s6332_s20   ;;  %s6332_s20 = sphi %s6418_s20, %s8397_s20   ;;  %s6328_s19 = sphi %s6416_s19, %s8399_s19   ;;  %s6324_s18 = sphi %s6414_s18, %s8401_s18   ;;  %s6320_s17 = sphi %s6412_s17, %s8400_s17  }
   0xa   : > { %8364 = sst [smem:[#allocation22_spill]] %s6328_s19  ;;  %s4981_s22 = sadd.s32 4294967294, %s6332_s20  }
   0xb   : > { %8365 = sst [smem:[#allocation23_spill]] %s6332_s20  ;;  %s6437_s23 = sadd.s32 1, %s6332_s20  }
   0xc   : > { %8366 = sst [smem:[#allocation24_spill]] %s6437_s23  ;;  %s271_s24 = sadd.s32 1, %s6328_s19 }
   0xd   : > { %s268_s25 = ssub.s32 %s6332_s20, %s6437_s23  ;;  %p281_p0 = scmp.ne.s32.totalorder %s6328_s19, %s6324_s18 }
   0xe   : > { %p269_p1 = scmp.eq.s32.totalorder %s268_s25, 0  ;;  %p282_p2 = scmp.eq.s32.totalorder %s6433_s21, 1 }
   0xf   : > { %p287_p3 = scmp.ne.s32.totalorder %s6324_s18, %s6320_s17  ;;  %p288_p4 = scmp.eq.s32.totalorder %s4981_s22, 1 }
  0x10   : > { %s6448_s26 = scalar_select %p269_p1, %s6328_s19, %s271_s24  }
  0x11   : > { %p6450_p5 = por %p282_p2, %p281_p0  ;;  %p6454_p6 = por %p288_p4, %p287_p3 }
  0x12   : > { %8367 = sst [smem:[#allocation25_spill]] %s6448_s26  ;;  %p4982_p7 = scmp.ge.s32.totalorder %s6332_s20, 1 }
  0x13   : > { %s8368_s27 = scalar_select %p6450_p5, 1, 0 }
  0x14   : > { %s8369_s28 = scalar_select %p6454_p6, 1, 0 }
  0x15   : > { %p295_p8 = scmp.lt.s32.totalorder %s6332_s20, 3  ;;  %p8351_p9 = scmp.eq.s32.totalorder %s6433_s21, 0 }
  0x16   : > { %8370 = sst [smem:[#allocation26_spill]] %s8369_s28  ;;  %s6334_s30 = smov [#allocation6]  }
  0x17   : > { %p6461_p10 = pnand %p4982_p7, %p295_p8  ;;  %s323_s12 = sshll.u32 %s6334_s30, 4  ;;  %s324_s12 = int_to_ptr.vmem [resolvable:$true] %s323_s12 }
  0x18   : > { %s6335_s14 = smov [#allocation9]   ;;  %s8373_s3 = sld [smem:[#allocation27_spill]] }
  0x19   : > { %s8371_s29 = scalar_select %p6461_p10, 1, 0 }
  0x1a   : > { %p5968_p11 = pneg %p6461_p10  ;;  %s349_s15 = sshll.u32 %s6335_s14, 4  ;;  %s6473_s15 = int_to_ptr.vmem [resolvable:$true] %s349_s15 }
  0x1c   : > { %p6469_p12 = pnand %p8351_p9, %p5968_p11 }
  0x1e   : > { %s6058_s24 = scalar_lea.hbm %s8373_s3, 4096  ;;  %p6483_p0 = pneg %p6469_p12 }
  0x1f   : > { %p6059_p13 = scmp.ne.s32.totalorder %s8373_s3, %s6058_s24  ;;  %p6065_p3 = scmp.lt.u32.totalorder %s6058_s24, %s8373_s3 }
  0x21   : > { %p6061_p1 = pnand %p6483_p0, %p6059_p13 }
  0x23   : > { %p6062_p2 = pneg %p6061_p1 }
  0x25   : > { %p6067_p4 = pnand %p6065_p3, %p6062_p2 }
  0x27   : > { %6070 = shalt.err (!%p6067_p4)
}
  0x28   : > { %s6071_s16 = scalar_lea.vmem %s324_s12, 4096  ;;  %p6079_p9 = scmp.lt.s32.totalorder %s324_s12, %s324_s12 }
  0x29   : > { %p6072_p7 = scmp.ne.s32.totalorder %s324_s12, %s6071_s16  ;;  %p6080_p6 = scmp.lt.s32.totalorder %s6071_s16, %s6071_s16 }
  0x2b   : > { %p6074_p8 = pnand %p6072_p7, %p6483_p0  ;;  %p6081_p5 = por %p6080_p6, %p6079_p9 }
  0x2d   : > { %p6075_p11 = pneg %p6074_p8 }
  0x2f   : > { %p6082_p10 = pnand %p6081_p5, %p6075_p11 }
  0x31   : > { %6085 = shalt.err (!%p6082_p10)
}
  0x32   : > { %s8359_s26 = smov 256   ;;  %s6337_s22 = smov 16  }
  0x33   : > { %5974 = dma.hbm_to_vmem [thread:$0]  (!%p6469_p12), %s8373_s3, 4096, %s324_s12, [#allocation7], %s8359_s26, %s8359_s26, %s6337_s22  }
  0x34   : > { %s6086_s23 = scalar_lea.hbm %s8343_s5, 10752 }
  0x35   : > { %p6087_p5 = scmp.ne.s32.totalorder %s8343_s5, %s6086_s23  ;;  %p6093_p10 = scmp.lt.u32.totalorder %s6086_s23, %s8343_s5 }
  0x37   : > { %p6089_p6 = pnand %p6087_p5, %p6483_p0 }
  0x39   : > { %p6090_p9 = pneg %p6089_p6 }
  0x3b   : > { %p6095_p13 = pnand %p6093_p10, %p6090_p9 }
  0x3d   : > { %6098 = shalt.err (!%p6095_p13)
}
  0x3e   : > { %s6099_s12 = scalar_lea.vmem %s6473_s15, 10752  ;;  %p6107_p4 = scmp.lt.s32.totalorder %s6473_s15, %s6473_s15 }
  0x3f   : > { %p6100_p1 = scmp.ne.s32.totalorder %s6473_s15, %s6099_s12  ;;  %p6108_p7 = scmp.lt.s32.totalorder %s6099_s12, %s6099_s12 }
  0x41   : > { %p6102_p2 = pnand %p6100_p1, %p6483_p0  ;;  %p6109_p8 = por %p6108_p7, %p6107_p4 }
  0x43   : > { %p6103_p3 = pneg %p6102_p2 }
  0x45   : > { %p6110_p11 = pnand %p6109_p8, %p6103_p3 }
  0x47   : > { %6113 = shalt.err (!%p6110_p11)
}
  0x48   : > { %5980 = dma.hbm_to_vmem [thread:$0]  (!%p6469_p12), %s8343_s5, 10752, %s6473_s15, [#allocation10], %s8359_s26, %s8359_s26, %s6337_s22  }
  0x49   : > { %s6338_s23 = smov [#allocation12]   ;;  %s6339_s19 = smov [#allocation3]  }
  0x4a   : > { %s373_s28 = sshll.u32 %s6338_s23, 4  ;;  %s307_s24 = sshll.u32 %s6339_s19, 4  ;;  %s374_s28 = int_to_ptr.vmem [resolvable:$true] %s373_s28  ;;  %s6528_s24 = int_to_ptr.vmem [resolvable:$true] %s307_s24 }
  0x4b   : > { %s6114_s16 = scalar_lea.hbm %s8345_s7, 896 }
  0x4c   : > { %p6115_p5 = scmp.ne.s32.totalorder %s8345_s7, %s6114_s16  ;;  %p6121_p10 = scmp.lt.u32.totalorder %s6114_s16, %s8345_s7 }
  0x4e   : > { %p6117_p6 = pnand %p6115_p5, %p6483_p0 }
  0x50   : > { %p6118_p9 = pneg %p6117_p6 }
  0x52   : > { %p6123_p13 = pnand %p6121_p10, %p6118_p9 }
  0x54   : > { %6126 = shalt.err (!%p6123_p13)
}
  0x55   : > { %s6127_s20 = scalar_lea.vmem %s374_s28, 896  ;;  %p6135_p4 = scmp.lt.s32.totalorder %s374_s28, %s374_s28 }
  0x56   : > { %p6128_p1 = scmp.ne.s32.totalorder %s374_s28, %s6127_s20  ;;  %p6136_p7 = scmp.lt.s32.totalorder %s6127_s20, %s6127_s20 }
  0x58   : > { %p6130_p2 = pnand %p6128_p1, %p6483_p0  ;;  %p6137_p8 = por %p6136_p7, %p6135_p4 }
  0x5a   : > { %p6131_p3 = pneg %p6130_p2 }
  0x5c   : > { %p6138_p11 = pnand %p6137_p8, %p6131_p3 }
  0x5e   : > { %6141 = shalt.err (!%p6138_p11)
}
  0x5f   : > { %s8360_s3 = smov 128   ;;  %s8361_s23 = smov 8  }
  0x60   : > { %5986 = dma.hbm_to_vmem [thread:$0]  (!%p6469_p12), %s8345_s7, 896, %s374_s28, [#allocation13], %s8360_s3, %s8360_s3, %s8361_s23  }
  0x61   : > { %s6142_s12 = scalar_lea.hbm %s8339_s1, 3072 }
  0x62   : > { %p6143_p5 = scmp.ne.s32.totalorder %s8339_s1, %s6142_s12  ;;  %p6149_p10 = scmp.lt.u32.totalorder %s6142_s12, %s8339_s1 }
  0x64   : > { %p6145_p6 = pnand %p6143_p5, %p6483_p0 }
  0x66   : > { %p6146_p9 = pneg %p6145_p6 }
  0x68   : > { %p6151_p13 = pnand %p6149_p10, %p6146_p9 }
  0x6a   : > { %6154 = shalt.err (!%p6151_p13)
}
  0x6b   : > { %s6155_s28 = scalar_lea.vmem %s6528_s24, 3072  ;;  %p6163_p4 = scmp.lt.s32.totalorder %s6528_s24, %s6528_s24 }
  0x6c   : > { %p6156_p1 = scmp.ne.s32.totalorder %s6528_s24, %s6155_s28  ;;  %p6164_p7 = scmp.lt.s32.totalorder %s6155_s28, %s6155_s28 }
  0x6e   : > { %p6158_p2 = pnand %p6156_p1, %p6483_p0  ;;  %p6165_p8 = por %p6164_p7, %p6163_p4 }
  0x70   : > { %p6159_p3 = pneg %p6158_p2 }
  0x72   : > { %p6166_p11 = pnand %p6165_p8, %p6159_p3 }
  0x74   : > { %6169 = shalt.err (!%p6166_p11)
}
  0x75   : > { %s8375_s26 = smov 256   ;;  %s6342_s14 = smov [#allocation8]  }
  0x76   : > { %5971 = dma.hbm_to_vmem [thread:$0]  (!%p6469_p12), %s8339_s1, 3072, %s6528_s24, [#allocation4], %s8375_s26, %s8375_s26, %s6337_s22  }
  0x77   : > { %s336_s16 = sshll.u32 %s6342_s14, 4  ;;  %s6343_s12 = smov [#allocation11]   ;;  %s337_s16 = int_to_ptr.vmem [resolvable:$true] %s336_s16 }
  0x78   : > { %s363_s17 = sshll.u32 %s6343_s12, 4  ;;  %s6170_s28 = scalar_lea.hbm %s8342_s4, 3456  ;;  %s6577_s17 = int_to_ptr.vmem [resolvable:$true] %s363_s17 }
  0x79   : > { %p6171_p5 = scmp.ne.s32.totalorder %s8342_s4, %s6170_s28  ;;  %p6177_p10 = scmp.lt.u32.totalorder %s6170_s28, %s8342_s4 }
  0x7b   : > { %p6173_p6 = pnand %p6171_p5, %p6483_p0 }
  0x7d   : > { %p6174_p9 = pneg %p6173_p6 }
  0x7f   : > { %p6179_p13 = pnand %p6177_p10, %p6174_p9 }
  0x81   : > { %6182 = shalt.err (!%p6179_p13)
}
  0x82   : > { %s6183_s24 = scalar_lea.vmem %s337_s16, 3456  ;;  %p6191_p4 = scmp.lt.s32.totalorder %s337_s16, %s337_s16 }
  0x83   : > { %p6184_p1 = scmp.ne.s32.totalorder %s337_s16, %s6183_s24  ;;  %p6192_p7 = scmp.lt.s32.totalorder %s6183_s24, %s6183_s24 }
  0x85   : > { %p6186_p2 = pnand %p6184_p1, %p6483_p0  ;;  %p6193_p8 = por %p6192_p7, %p6191_p4 }
  0x87   : > { %p6187_p3 = pneg %p6186_p2 }
  0x89   : > { %p6194_p11 = pnand %p6193_p8, %p6187_p3 }
  0x8b   : > { %6197 = shalt.err (!%p6194_p11)
}
  0x8c   : > { %s8376_s3 = smov 8   ;;  %s8377_s23 = smov 128  }
  0x8d   : > { %5977 = dma.hbm_to_vmem [thread:$0]  (!%p6469_p12), %s8342_s4, 3456, %s337_s16, [#allocation7], %s8377_s23, %s8377_s23, %s8376_s3  }
  0x8e   : > { %s6198_s15 = scalar_lea.hbm %s8344_s6, 32 }
  0x8f   : > { %p6199_p5 = scmp.ne.s32.totalorder %s8344_s6, %s6198_s15  ;;  %p6205_p10 = scmp.lt.u32.totalorder %s6198_s15, %s8344_s6 }
  0x91   : > { %p6201_p6 = pnand %p6199_p5, %p6483_p0 }
  0x93   : > { %p6202_p9 = pneg %p6201_p6 }
  0x95   : > { %p6207_p13 = pnand %p6205_p10, %p6202_p9 }
  0x97   : > { %6210 = shalt.err (!%p6207_p13)
}
  0x98   : > { %s6211_s16 = scalar_lea.vmem %s6577_s17, 32  ;;  %p6219_p4 = scmp.lt.s32.totalorder %s6577_s17, %s6577_s17 }
  0x99   : > { %p6212_p1 = scmp.ne.s32.totalorder %s6577_s17, %s6211_s16  ;;  %p6220_p7 = scmp.lt.s32.totalorder %s6211_s16, %s6211_s16 }
  0x9b   : > { %p6214_p2 = pnand %p6212_p1, %p6483_p0  ;;  %p6221_p8 = por %p6220_p7, %p6219_p4 }
  0x9d   : > { %p6215_p3 = pneg %p6214_p2 }
  0x9f   : > { %p6222_p11 = pnand %p6221_p8, %p6215_p3 }
  0xa1   : > { %6225 = shalt.err (!%p6222_p11)
}
  0xa2   : > { %5983 = dma.hbm_to_vmem [thread:$0]  (!%p6469_p12), %s8344_s6, 32, %s6577_s17, [#allocation10]  }
  0xa3   : > { %s6344_s23 = smov [#allocation14]   ;;  %s6226_s12 = scalar_lea.hbm %s8348_s10, 16 }
  0xa4   : > { %s393_s26 = sshll.u32 %s6344_s23, 4  ;;  %p6227_p5 = scmp.ne.s32.totalorder %s8348_s10, %s6226_s12  ;;  %s394_s26 = int_to_ptr.vmem [resolvable:$true] %s393_s26 }
  0xa5   : > { %p6233_p10 = scmp.lt.u32.totalorder %s6226_s12, %s8348_s10 }
  0xa6   : > { %p6229_p6 = pnand %p6227_p5, %p6483_p0 }
  0xa8   : > { %p6230_p9 = pneg %p6229_p6 }
  0xaa   : > { %p6235_p13 = pnand %p6233_p10, %p6230_p9 }
  0xac   : > { %6238 = shalt.err (!%p6235_p13)
}
  0xad   : > { %s6239_s17 = scalar_lea.vmem %s394_s26, 16  ;;  %s6246_s22 = scalar_lea.vmem %s394_s26, 32 }
  0xae   : > { %p6240_p1 = scmp.ne.s32.totalorder %s394_s26, %s6239_s17  ;;  %p6247_p4 = scmp.lt.s32.totalorder %s394_s26, %s394_s26 }
  0xaf   : > { %p6248_p7 = scmp.lt.s32.totalorder %s6246_s22, %s6239_s17 }
  0xb0   : > { %p6242_p2 = pnand %p6240_p1, %p6483_p0 }
  0xb1   : > { %p6249_p8 = por %p6248_p7, %p6247_p4 }
  0xb2   : > { %p6243_p3 = pneg %p6242_p2 }
  0xb4   : > { %p6250_p11 = pnand %p6249_p8, %p6243_p3 }
  0xb6   : > { %6253 = shalt.err (!%p6250_p11)
}
  0xb7   : > { %5989 = dma.hbm_to_vmem [thread:$0]  (!%p6469_p12), %s8348_s10, 16, %s394_s26, [#allocation13]  }
  0xb8   : > { %p8378_p5 = scmp.ne.s32.totalorder %s8371_s29, 0 }
  0xb9   : > { %p8379_p6 = scmp.eq.s32.totalorder (!%p8378_p5), %s6433_s21, 0 }
  0xba   : > { %416 = sbr.rel (%p8378_p5) target bundleno = 2629 (0xa45), region = 64 }
  0xc1   : > { %6299 = dma.done.wait (%p8379_p6), [#allocation4], 3072   ;;  %p8380_p0 = pmov %p8379_p6 }
  0xc3   : > { %6301 = vsyncadd (%p8380_p0), [#allocation4], 4294964224  ;;  %p8381_p9 = pmov %p8380_p0 }
  0xc4   : > { %p8382_p10 = pmov %p8380_p0 }
  0xc5   : > { %6303 = dma.done.wait (%p8381_p9), [#allocation7], 7552  }
  0xc6   : > { %6305 = vsyncadd (%p8382_p10), [#allocation7], 4294959744  ;;  %p8383_p13 = pmov %p8380_p0 }
  0xc7   : > { %p8384_p12 = pmov %p8380_p0 }
  0xc8   : > { %6307 = dma.done.wait (%p8383_p13), [#allocation10], 10784  }
  0xc9   : > { %6309 = vsyncadd (%p8384_p12), [#allocation10], 4294956512  ;;  %p8385_p1 = pmov %p8380_p0 }
  0xca   : > { %p8386_p2 = pmov %p8380_p0 }
  0xcb   : > { %6311 = dma.done.wait (%p8385_p1), [#allocation13], 912  }
  0xcc   : > { %6313 = vsyncadd (%p8386_p2), [#allocation13], 4294966384  ;;  %s5000_s29 = sshll.u32 %s6433_s21, 3  ;;  %v6345_v0 = vmov 0.0   ;;  %vm488_vm0 = vcmask 221184   ;;  %vm500_vm1 = vcmask 223232  }
  0xcd   : > { %827 = vmatprep.mubr.f32.mxu0 %v6345_v0  ;;  %p6661_p3 = scmp.lt.s32.totalorder %s5000_s29, 15  ;;  %501 = vst.msk [vmem:[#allocation2 + $0x1d] sm:$0x7] %vm500_vm1, %v6345_v0  ;;  %512 = vst.msk [vmem:[#allocation2 + $0x3d] sm:$0x7] %vm500_vm1, %v6345_v0  ;;  %vm756_vm2 = vcmask 1043456  }
  0xce   : > { %502 = vst.msk [vmem:[#allocation2 + $0x20] sm:$0x1] %vm488_vm0, %v6345_v0  ;;  %489 = vst.msk [vmem:[#allocation2] sm:$0x1] %vm488_vm0, %v6345_v0  ;;  %vm6346_vm3 = vmmov 1   ;;  %v653_v2 = vld [vmem:[#allocation3 + $0x48] sm:$0xff] }
  0xcf   : > { %513 = vst.msk [vmem:[#allocation2 + $0x40] sm:$0x1] %vm488_vm0, %v6345_v0  ;;  %524 = vst.msk [vmem:[#allocation2 + $0x60] sm:$0x1] %vm488_vm0, %v6345_v0  ;;  %s8403_s29 = smov (!%p6661_p3, %s5000_s29), 15  ;;  %v655_v3 = vld [vmem:[#allocation3 + $0x58] sm:$0xff] }
  0xd0   : > { %523 = vst.msk [vmem:[#allocation2 + $0x5d] sm:$0x7] %vm500_vm1, %v6345_v0  ;;  %534 = vst.msk [vmem:[#allocation2 + $0x7d] sm:$0x7] %vm500_vm1, %v6345_v0  ;;  %s5264_s30 = sshll.u32 %s8403_s29, 5  ;;  %v652_v4 = vld [vmem:[#allocation3 + $0x40] sm:$0xff]  ;;  %v5335_v5 = vpack.c.bf16 %v655_v3, %v653_v2 }
  0xd1   : > { %535 = vst.msk [vmem:[#allocation2 + $0x80] sm:$0x1] %vm488_vm0, %v6345_v0  ;;  %546 = vst.msk [vmem:[#allocation2 + $0xa0] sm:$0x1] %vm488_vm0, %v6345_v0  ;;  %s6707_s26 = scalar_lea.vmem %s8338_s0, %s5264_s30  ;;  %vm494_vm5 = vcmask 228352   ;;  %v654_v6 = vld [vmem:[#allocation3 + $0x50] sm:$0xff] }
  0xd2   : > { %545 = vst.msk [vmem:[#allocation2 + $0x9d] sm:$0x7] %vm500_vm1, %v6345_v0  ;;  %556 = vst.msk [vmem:[#allocation2 + $0xbd] sm:$0x7] %vm500_vm1, %v6345_v0  ;;  %v657_v7 = vld [vmem:[#allocation3 + $0x68] sm:$0xff]  ;;  %v5337_v9 = vpack.c.bf16 %v654_v6, %v652_v4  ;;  %v656_v11 = vld [vmem:[#allocation3 + $0x60] sm:$0xff]  ;;  %5336 = vmatprep.subr.bf16.mxu0 %v5335_v5 }
  0xd3   : > { %557 = vst.msk [vmem:[#allocation2 + $0xc0] sm:$0x1] %vm488_vm0, %v6345_v0  ;;  %568 = vst.msk [vmem:[#allocation2 + $0xe0] sm:$0x1] %vm488_vm0, %v6345_v0  ;;  %v659_v8 = vld [vmem:[#allocation3 + $0x78] sm:$0xf] }
  0xd4   : > { %567 = vst.msk [vmem:[#allocation2 + $0xdd] sm:$0x7] %vm500_vm1, %v6345_v0  ;;  %578 = vst.msk [vmem:[#allocation2 + $0xfd] sm:$0x7] %vm500_vm1, %v6345_v0  ;;  %v5339_v10 = vpack.c.bf16 %v659_v8, %v657_v7  ;;  %v658_v12 = vld [vmem:[#allocation3 + $0x70] sm:$0xf]  ;;  %5338 = vmatpush1.bf16.msra.mxu0 %v5337_v9 }
  0xd5   : > { %vm6700_vm4 = vmpackc.low %vm756_vm2, %vm6346_vm3  ;;  %v490_v13 = vld [vmem:[%s6707_s26] sm:$0xff]  ;;  %v491_v14 = vld [vmem:[%s6707_s26 + $0x8] sm:$0xff]  ;;  %vm498_vm6 = vcmask 224256   ;;  %v5342_v17 = vpack.c.bf16 %v658_v12, %v656_v11  ;;  %vm2047_vm7 = vcmask 1046528   ;;  %vm2334_vm8 = vcmask 1022976   ;;  %s6348_s12 = smov 120  }
  0xd6   : > { %495 = vst.msk [vmem:[#allocation2 + $0x1] sm:$0xff] %vm494_vm5, %v490_v13  ;;  %v492_v15 = vld [vmem:[%s6707_s26 + $0x10] sm:$0xff]  ;;  %v612_v16 = vld [vmem:[#allocation3 + $0x8] sm:$0xff]  ;;  %496 = vst.msk [vmem:[#allocation2 + $0x9] sm:$0xff] %vm494_vm5, %v491_v14  ;;  %5341 = vmatprep.subr.msk.bf16.mxu0 %vm6700_vm4, %v5339_v10  ;;  %vm2383_vm9 = vcmask 1044480   ;;  %vm2647_vm11 = vcmask 982016  }
  0xd7   : > { %497 = vst.msk [vmem:[#allocation2 + $0x11] sm:$0xff] %vm494_vm5, %v492_v15  ;;  %v614_v18 = vld [vmem:[#allocation3 + $0x18] sm:$0xff]  ;;  %v611_v19 = vld [vmem:[#allocation3] sm:$0xff]  ;;  %v613_v20 = vld [vmem:[#allocation3 + $0x10] sm:$0xff]  ;;  %vm2755_vm12 = vcmask 719872   ;;  %vm3469_vm13 = vcmask 1045504  }
  0xd8   : > { %v5345_v21 = vpack.c.bf16 %v614_v18, %v612_v16  ;;  %v493_v22 = vld [vmem:[%s6707_s26 + $0x18] sm:$0xf]  ;;  %v5003_v23 = vld [vmem:[%s6707_s26 + $0x20] sm:$0xff]  ;;  %v5004_v24 = vld [vmem:[%s6707_s26 + $0x28] sm:$0xff]  ;;  %5344 = vmatpush1.bf16.msk.msra.mxu0 %vm6700_vm4, %v5342_v17  ;;  %v5347_v31 = vpack.c.bf16 %v613_v20, %v611_v19  ;;  %vm3053_vm14 = vcmask 916480   ;;  %s6349_s20 = smov 112  }
  0xd9   : > { %499 = vst.msk [vmem:[#allocation2 + $0x19] sm:$0xf] %vm498_vm6, %v493_v22  ;;  %v5005_v25 = vld [vmem:[%s6707_s26 + $0x30] sm:$0xff]  ;;  %v5006_v26 = vld [vmem:[%s6707_s26 + $0x38] sm:$0xf]  ;;  %v5007_v27 = vld [vmem:[%s6707_s26 + $0x40] sm:$0xff] }
  0xda   : > { %508 = vst.msk [vmem:[#allocation2 + $0x21] sm:$0xff] %vm494_vm5, %v5003_v23  ;;  %509 = vst.msk [vmem:[#allocation2 + $0x29] sm:$0xff] %vm494_vm5, %v5004_v24  ;;  %v5008_v28 = vld [vmem:[%s6707_s26 + $0x48] sm:$0xff]  ;;  %v5009_v29 = vld [vmem:[%s6707_s26 + $0x50] sm:$0xff]  ;;  %5346 = vmatprep.subr.bf16.mxu0 %v5345_v21  ;;  %vm4204_vm15 = vcmask 654336   ;;  %vm6350_vm0 = vmmov 0  }
  0xdb   : > { %510 = vst.msk [vmem:[#allocation2 + $0x31] sm:$0xff] %vm494_vm5, %v5005_v25  ;;  %519 = vst.msk [vmem:[#allocation2 + $0x41] sm:$0xff] %vm494_vm5, %v5007_v27  ;;  %v5010_v30 = vld [vmem:[%s6707_s26 + $0x58] sm:$0xf]  ;;  %v5011_v32 = vld [vmem:[%s6707_s26 + $0x60] sm:$0xff]  ;;  %s5261_s25 = sshll.u32 %s6433_s21, 7 }
  0xdc   : > { %511 = vst.msk [vmem:[#allocation2 + $0x39] sm:$0xf] %vm498_vm6, %v5006_v26  ;;  %522 = vst.msk [vmem:[#allocation2 + $0x59] sm:$0xf] %vm498_vm6, %v5010_v30  ;;  %v5012_v33 = vld [vmem:[%s6707_s26 + $0x68] sm:$0xff]  ;;  %v5013_v34 = vld [vmem:[%s6707_s26 + $0x70] sm:$0xff]  ;;  %s8296_s19 = scalar_lea.hbm %s8349_s11, %s5261_s25 }
  0xdd   : > { %520 = vst.msk [vmem:[#allocation2 + $0x49] sm:$0xff] %vm494_vm5, %v5008_v28  ;;  %521 = vst.msk [vmem:[#allocation2 + $0x51] sm:$0xff] %vm494_vm5, %v5009_v29  ;;  %v5014_v35 = vld [vmem:[%s6707_s26 + $0x78] sm:$0xf]  ;;  %v5015_v36 = vld [vmem:[%s6707_s26 + $0x80] sm:$0xff]  ;;  %p8392_p7 = scmp.ne.s32.totalorder %s8368_s27, 0 }
  0xde   : > { %530 = vst.msk [vmem:[#allocation2 + $0x61] sm:$0xff] %vm494_vm5, %v5011_v32  ;;  %531 = vst.msk [vmem:[#allocation2 + $0x69] sm:$0xff] %vm494_vm5, %v5012_v33  ;;  %v5016_v37 = vld [vmem:[%s6707_s26 + $0x88] sm:$0xff]  ;;  %v619_v38 = vld [vmem:[#allocation2 + $0x1] sm:$0xff]  ;;  %s6351_s21 = smov [#allocation15]  }
  0xdf   : > { %532 = vst.msk [vmem:[#allocation2 + $0x71] sm:$0xff] %vm494_vm5, %v5013_v34  ;;  %541 = vst.msk [vmem:[#allocation2 + $0x81] sm:$0xff] %vm494_vm5, %v5015_v36  ;;  %v5017_v39 = vld [vmem:[%s6707_s26 + $0x90] sm:$0xff]  ;;  %v616_v40 = vld [vmem:[#allocation3 + $0x28] sm:$0xff]  ;;  %5033 = vmatmul.mubr.msk.f32.vlgmr.msra.gmra.mrb[0].mxu0 %vm494_vm5, %v619_v38  ;;  %s6258_s16 = sshll.u32 %s6351_s21, 4  ;;  %s6259_s16 = int_to_ptr.vmem [resolvable:$false] %s6258_s16 }
  0xe0   : > { %533 = vst.msk [vmem:[#allocation2 + $0x79] sm:$0xf] %vm498_vm6, %v5014_v35  ;;  %v620_v41 = vld [vmem:[#allocation2 + $0x9] sm:$0xff]  ;;  %v618_v42 = vld [vmem:[#allocation3 + $0x38] sm:$0xf]  ;;  %833 = vmatprep.mubr.f32.mxu0 %v6345_v0  ;;  %5348 = vmatpush1.bf16.msra.mxu0 %v5347_v31  ;;  %v615_v44 = vld [vmem:[#allocation3 + $0x20] sm:$0xff] }
  0xe1   : > { %542 = vst.msk [vmem:[#allocation2 + $0x89] sm:$0xff] %vm494_vm5, %v5016_v37  ;;  %543 = vst.msk [vmem:[#allocation2 + $0x91] sm:$0xff] %vm494_vm5, %v5017_v39  ;;  %v5349_v43 = vpack.c.bf16 %v618_v42, %v616_v40  ;;  %v617_v45 = vld [vmem:[#allocation3 + $0x30] sm:$0xf]  ;;  %v5018_v46 = vld [vmem:[%s6707_s26 + $0x98] sm:$0xf] }
  0xe2   : > { %v5352_v47 = vpack.c.bf16 %v617_v45, %v615_v44  ;;  %544 = vst.msk [vmem:[#allocation2 + $0x99] sm:$0xf] %vm498_vm6, %v5018_v46  ;;  %v621_v48 = vld [vmem:[#allocation2 + $0x11] sm:$0xff]  ;;  %v5021_v51 = vld [vmem:[%s6707_s26 + $0xb0] sm:$0xff]  ;;  %v5022_v52 = vld [vmem:[%s6707_s26 + $0xb8] sm:$0xf] }
  0xe3   : > { %5351 = vmatprep.subr.msk.bf16.mxu0 %vm6700_vm4, %v5349_v43  ;;  %5034 = vmatmul.mubr.msk.f32.gmra.mrb[2].mxu0 %vm494_vm5, %v620_v41  ;;  %v5019_v49 = vld [vmem:[%s6707_s26 + $0xa0] sm:$0xff]  ;;  %v5020_v50 = vld [vmem:[%s6707_s26 + $0xa8] sm:$0xff]  ;;  %554 = vst.msk [vmem:[#allocation2 + $0xb1] sm:$0xff] %vm494_vm5, %v5021_v51  ;;  %v5025_v56 = vld [vmem:[%s6707_s26 + $0xd0] sm:$0xff]  ;;  %s6260_s24 = scalar_lea.vmem %s6259_s16, 256 }
  0xe4   : > { %839 = vmatprep.mubr.f32.mxu0 %v6345_v0  ;;  %5354 = vmatpush1.bf16.msk.msra.mxu0 %vm6700_vm4, %v5352_v47  ;;  %552 = vst.msk [vmem:[#allocation2 + $0xa1] sm:$0xff] %vm494_vm5, %v5019_v49  ;;  %553 = vst.msk [vmem:[#allocation2 + $0xa9] sm:$0xff] %vm494_vm5, %v5020_v50  ;;  %v5023_v53 = vld [vmem:[%s6707_s26 + $0xc0] sm:$0xff]  ;;  %v622_v54 = vld [vmem:[#allocation2 + $0x19] sm:$0xff] }
  0xe5   : > { %555 = vst.msk [vmem:[#allocation2 + $0xb9] sm:$0xf] %vm498_vm6, %v5022_v52  ;;  %v5024_v55 = vld [vmem:[%s6707_s26 + $0xc8] sm:$0xff]  ;;  %v5026_v57 = vld [vmem:[%s6707_s26 + $0xd8] sm:$0xf]  ;;  %v5027_v58 = vld [vmem:[%s6707_s26 + $0xe0] sm:$0xff] }
  0xe6   : > { %563 = vst.msk [vmem:[#allocation2 + $0xc1] sm:$0xff] %vm494_vm5, %v5023_v53  ;;  %564 = vst.msk [vmem:[#allocation2 + $0xc9] sm:$0xff] %vm494_vm5, %v5024_v55  ;;  %v5028_v59 = vld [vmem:[%s6707_s26 + $0xe8] sm:$0xff]  ;;  %v5029_v60 = vld [vmem:[%s6707_s26 + $0xf0] sm:$0xff] }
  0xe7   : > { %5035 = vmatmul.mubr.msk.f32.gmra.mrb[4].mxu0 %vm494_vm5, %v621_v48  ;;  %565 = vst.msk [vmem:[#allocation2 + $0xd1] sm:$0xff] %vm494_vm5, %v5025_v56  ;;  %574 = vst.msk [vmem:[#allocation2 + $0xe1] sm:$0xff] %vm494_vm5, %v5027_v58  ;;  %v5030_v61 = vld [vmem:[%s6707_s26 + $0xf8] sm:$0xf]  ;;  %v1415_v2 = vld [vmem:[#allocation3 + $0x98] sm:$0xff]  ;;  %s478_s26 = sand.u32 1, %s6324_s18  }
  0xe8   : > { %845 = vmatprep.mubr.f32.mxu0 %v6345_v0  ;;  %566 = vst.msk [vmem:[#allocation2 + $0xd9] sm:$0xf] %vm498_vm6, %v5026_v57  ;;  %577 = vst.msk [vmem:[#allocation2 + $0xf9] sm:$0xf] %vm498_vm6, %v5030_v61  ;;  %v1413_v62 = vld [vmem:[#allocation3 + $0x88] sm:$0xff]  ;;  %v625_v5 = vld [vmem:[#allocation2 + $0x31] sm:$0xff] }
  0xe9   : > { %575 = vst.msk [vmem:[#allocation2 + $0xe9] sm:$0xff] %vm494_vm5, %v5028_v59  ;;  %576 = vst.msk [vmem:[#allocation2 + $0xf1] sm:$0xff] %vm494_vm5, %v5029_v60  ;;  %v623_v63 = vld [vmem:[#allocation2 + $0x21] sm:$0xff]  ;;  %v5355_v3 = vpack.c.bf16 %v1415_v2, %v1413_v62  ;;  %v624_v4 = vld [vmem:[#allocation2 + $0x29] sm:$0xff]  ;;  %s4840_s17 = scalar_lea.sflag [#allocation5], %s478_s26 }
  0xea   : > { %v626_v6 = vld [vmem:[#allocation2 + $0x39] sm:$0xff]  ;;  %v627_v7 = vld [vmem:[#allocation2 + $0x41] sm:$0xff]  ;;  %v628_v8 = vld [vmem:[#allocation2 + $0x49] sm:$0xff] }
  0xeb   : > { %5036 = vmatmul.mubr.msk.f32.gmra.mrb[6].mxu0 %vm494_vm5, %v622_v54  ;;  %5356 = vmatprep.subr.bf16.mxu0 %v5355_v3  ;;  %v629_v9 = vld [vmem:[#allocation2 + $0x51] sm:$0xff]  ;;  %v630_v10 = vld [vmem:[#allocation2 + $0x59] sm:$0xff]  ;;  %v631_v11 = vld [vmem:[#allocation2 + $0x61] sm:$0xff] }
  0xec   : > { %851 = vmatprep.mubr.f32.mxu0 %v6345_v0  ;;  %v632_v12 = vld [vmem:[#allocation2 + $0x69] sm:$0xff]  ;;  %v633_v13 = vld [vmem:[#allocation2 + $0x71] sm:$0xff]  ;;  %v634_v14 = vld [vmem:[#allocation2 + $0x79] sm:$0xff] }
  0xed   : > { %v635_v15 = vld [vmem:[#allocation2 + $0x81] sm:$0xff]  ;;  %v636_v16 = vld [vmem:[#allocation2 + $0x89] sm:$0xff]  ;;  %v637_v17 = vld [vmem:[#allocation2 + $0x91] sm:$0xff] }
  0xee   : > { %v638_v18 = vld [vmem:[#allocation2 + $0x99] sm:$0xff]  ;;  %v639_v19 = vld [vmem:[#allocation2 + $0xa1] sm:$0xff]  ;;  %v640_v20 = vld [vmem:[#allocation2 + $0xa9] sm:$0xff] }
  0xef   : > { %5037 = vmatmul.mubr.msk.f32.gmra.mrb[8].mxu0 %vm494_vm5, %v623_v63  ;;  %v641_v21 = vld [vmem:[#allocation2 + $0xb1] sm:$0xff]  ;;  %v642_v22 = vld [vmem:[#allocation2 + $0xb9] sm:$0xff]  ;;  %v643_v23 = vld [vmem:[#allocation2 + $0xc1] sm:$0xff] }
  0xf0   : > { %857 = vmatprep.mubr.f32.mxu0 %v6345_v0  ;;  %v644_v24 = vld [vmem:[#allocation2 + $0xc9] sm:$0xff]  ;;  %v645_v25 = vld [vmem:[#allocation2 + $0xd1] sm:$0xff]  ;;  %v646_v26 = vld [vmem:[#allocation2 + $0xd9] sm:$0xff] }
  0xf1   : > { %v647_v27 = vld [vmem:[#allocation2 + $0xe1] sm:$0xff]  ;;  %v648_v28 = vld [vmem:[#allocation2 + $0xe9] sm:$0xff]  ;;  %v649_v29 = vld [vmem:[#allocation2 + $0xf1] sm:$0xff] }
  0xf2   : > { %v650_v30 = vld [vmem:[#allocation2 + $0xf9] sm:$0x3f]  ;;  %v1412_v31 = vld [vmem:[#allocation3 + $0x80] sm:$0xff]  ;;  %v1414_v32 = vld [vmem:[#allocation3 + $0x90] sm:$0xff] }
  0xf3   : > { %5038 = vmatmul.mubr.msk.f32.gmra.mrb[10].mxu0 %vm494_vm5, %v624_v4  ;;  %v1417_v33 = vld [vmem:[#allocation3 + $0xa8] sm:$0xff]  ;;  %v1419_v34 = vld [vmem:[#allocation3 + $0xb8] sm:$0xf]  ;;  %v579_v35 = vld [vmem:[#allocation2] sm:$0xff]  ;;  %v5357_v36 = vpack.c.bf16 %v1414_v32, %v1412_v31 }
  0xf4   : > { %863 = vmatprep.mubr.f32.mxu0 %v6345_v0  ;;  %v5359_v37 = vpack.c.bf16 %v1419_v34, %v1417_v33  ;;  %v1416_v38 = vld [vmem:[#allocation3 + $0xa0] sm:$0xff]  ;;  %v1418_v39 = vld [vmem:[#allocation3 + $0xb0] sm:$0xf]  ;;  %v580_v40 = vld [vmem:[#allocation2 + $0x8] sm:$0xff] }
  0xf5   : > { %v5362_v41 = vpack.c.bf16 %v1418_v39, %v1416_v38  ;;  %v581_v42 = vld [vmem:[#allocation2 + $0x10] sm:$0xff]  ;;  %v582_v43 = vld [vmem:[#allocation2 + $0x18] sm:$0xff]  ;;  %v583_v44 = vld [vmem:[#allocation2 + $0x20] sm:$0xff] }
  0xf6   : > { %v584_v45 = vld [vmem:[#allocation2 + $0x28] sm:$0xff]  ;;  %v585_v1 = vld [vmem:[#allocation2 + $0x30] sm:$0xff]  ;;  %v586_v46 = vld [vmem:[#allocation2 + $0x38] sm:$0xff] }
  0xf7   : > { %5039 = vmatmul.mubr.msk.f32.gmra.mrb[12].mxu0 %vm494_vm5, %v625_v5  ;;  %v587_v47 = vld [vmem:[#allocation2 + $0x40] sm:$0xff]  ;;  %v588_v48 = vld [vmem:[#allocation2 + $0x48] sm:$0xff]  ;;  %v589_v49 = vld [vmem:[#allocation2 + $0x50] sm:$0xff] }
  0xf8   : > { %869 = vmatprep.mubr.f32.mxu0 %v6345_v0  ;;  %v590_v50 = vld [vmem:[#allocation2 + $0x58] sm:$0xff]  ;;  %v591_v51 = vld [vmem:[#allocation2 + $0x60] sm:$0xff]  ;;  %v592_v52 = vld [vmem:[#allocation2 + $0x68] sm:$0xff] }
  0xf9   : > { %v593_v53 = vld [vmem:[#allocation2 + $0x70] sm:$0xff]  ;;  %v594_v54 = vld [vmem:[#allocation2 + $0x78] sm:$0xff]  ;;  %v595_v55 = vld [vmem:[#allocation2 + $0x80] sm:$0xff] }
  0xfa   : > { %v596_v56 = vld [vmem:[#allocation2 + $0x88] sm:$0xff]  ;;  %v597_v57 = vld [vmem:[#allocation2 + $0x90] sm:$0xff]  ;;  %v598_v58 = vld [vmem:[#allocation2 + $0x98] sm:$0xff] }
  0xfb   : > { %5040 = vmatmul.mubr.msk.f32.gmra.mrb[14].mxu0 %vm494_vm5, %v626_v6  ;;  %v599_v59 = vld [vmem:[#allocation2 + $0xa0] sm:$0xff]  ;;  %v600_v60 = vld [vmem:[#allocation2 + $0xa8] sm:$0xff]  ;;  %v601_v61 = vld [vmem:[#allocation2 + $0xb0] sm:$0xff] }
  0xfc   : > { %875 = vmatprep.mubr.f32.mxu0 %v6345_v0  ;;  %v602_v62 = vld [vmem:[#allocation2 + $0xb8] sm:$0xff]  ;;  %v603_v63 = vld [vmem:[#allocation2 + $0xc0] sm:$0xff]  ;;  %v604_v2 = vld [vmem:[#allocation2 + $0xc8] sm:$0xff] }
  0xfd   : > { %v605_v3 = vld [vmem:[#allocation2 + $0xd0] sm:$0xff]  ;;  %v606_v4 = vld [vmem:[#allocation2 + $0xd8] sm:$0xff]  ;;  %v607_v5 = vld [vmem:[#allocation2 + $0xe0] sm:$0xff] }
  0xfe   : > { %v608_v6 = vld [vmem:[#allocation2 + $0xe8] sm:$0xff]  ;;  %v1401_v31 = vld [vmem:[#allocation2 + $0xb2] sm:$0xff]  ;;  %v1402_v32 = vld [vmem:[#allocation2 + $0xba] sm:$0xff] }
  0xff   : > { %5041 = vmatmul.mubr.msk.f32.gmra.mrb[16].mxu0 %vm494_vm5, %v627_v7  ;;  %v609_v7 = vld [vmem:[#allocation2 + $0xf0] sm:$0xff]  ;;  %v1403_v33 = vld [vmem:[#allocation2 + $0xc2] sm:$0xff]  ;;  %vm7119_vm10 = vmpackc.low %vm2383_vm9, %vm6346_vm3 }
 0x100   : > { %881 = vmatprep.mubr.f32.mxu0 %v6345_v0  ;;  %v1404_v34 = vld [vmem:[#allocation2 + $0xca] sm:$0xff]  ;;  %v1409_v39 = vld [vmem:[#allocation2 + $0xf2] sm:$0xff] }
 0x101   : > { %v1408_v38 = vld [vmem:[#allocation2 + $0xea] sm:$0xff] }
 0x103   : > { %5042 = vmatmul.mubr.msk.f32.gmra.mrb[18].mxu0 %vm494_vm5, %v628_v8  ;;  %v610_v8 = vld [vmem:[#allocation2 + $0xf8] sm:$0x3f] }
 0x104   : > { %887 = vmatprep.mubr.f32.mxu0 %v6345_v0 }
 0x107   : > { %5043 = vmatmul.mubr.msk.f32.gmra.mrb[20].mxu0 %vm494_vm5, %v629_v9  ;;  %v1379_v9 = vld [vmem:[#allocation2 + $0x2] sm:$0xff] }
 0x108   : > { %893 = vmatprep.mubr.f32.mxu0 %v6345_v0 }
 0x10b   : > { %5044 = vmatmul.mubr.msk.f32.gmra.mrb[22].mxu0 %vm494_vm5, %v630_v10  ;;  %v1380_v10 = vld [vmem:[#allocation2 + $0xa] sm:$0xff] }
 0x10c   : > { %899 = vmatprep.mubr.f32.mxu0 %v6345_v0 }
 0x10f   : > { %5045 = vmatmul.mubr.msk.f32.gmra.mrb[24].mxu0 %vm494_vm5, %v631_v11  ;;  %v1381_v11 = vld [vmem:[#allocation2 + $0x12] sm:$0xff] }
 0x110   : > { %905 = vmatprep.mubr.f32.mxu0 %v6345_v0 }
 0x113   : > { %5046 = vmatmul.mubr.msk.f32.gmra.mrb[26].mxu0 %vm494_vm5, %v632_v12  ;;  %v1382_v12 = vld [vmem:[#allocation2 + $0x1a] sm:$0xff] }
 0x114   : > { %911 = vmatprep.mubr.f32.mxu0 %v6345_v0 }
 0x117   : > { %5047 = vmatmul.mubr.msk.f32.gmra.mrb[28].mxu0 %vm494_vm5, %v633_v13  ;;  %v1383_v13 = vld [vmem:[#allocation2 + $0x22] sm:$0xff] }
 0x118   : > { %917 = vmatprep.mubr.f32.mxu0 %v6345_v0 }
 0x11b   : > { %5048 = vmatmul.mubr.msk.f32.gmra.mrb[30].mxu0 %vm494_vm5, %v634_v14  ;;  %v1384_v14 = vld [vmem:[#allocation2 + $0x2a] sm:$0xff] }
 0x11c   : > { %923 = vmatprep.mubr.f32.mxu0 %v6345_v0 }
 0x11f   : > { %5049 = vmatmul.mubr.msk.f32.gmra.mrb[32].mxu0 %vm494_vm5, %v635_v15  ;;  %v1385_v15 = vld [vmem:[#allocation2 + $0x32] sm:$0xff] }
 0x120   : > { %929 = vmatprep.mubr.f32.mxu0 %v6345_v0 }
 0x123   : > { %5050 = vmatmul.mubr.msk.f32.gmra.mrb[34].mxu0 %vm494_vm5, %v636_v16  ;;  %v1386_v16 = vld [vmem:[#allocation2 + $0x3a] sm:$0xff] }
 0x124   : > { %935 = vmatprep.mubr.f32.mxu0 %v6345_v0 }
 0x127   : > { %5051 = vmatmul.mubr.msk.f32.gmra.mrb[36].mxu0 %vm494_vm5, %v637_v17  ;;  %v1387_v17 = vld [vmem:[#allocation2 + $0x42] sm:$0xff] }
 0x128   : > { %941 = vmatprep.mubr.f32.mxu0 %v6345_v0 }
 0x12b   : > { %5052 = vmatmul.mubr.msk.f32.gmra.mrb[38].mxu0 %vm494_vm5, %v638_v18  ;;  %v1388_v18 = vld [vmem:[#allocation2 + $0x4a] sm:$0xff] }
 0x12c   : > { %947 = vmatprep.mubr.f32.mxu0 %v6345_v0 }
 0x12f   : > { %5053 = vmatmul.mubr.msk.f32.gmra.mrb[40].mxu0 %vm494_vm5, %v639_v19  ;;  %v1389_v19 = vld [vmem:[#allocation2 + $0x52] sm:$0xff] }
 0x130   : > { %953 = vmatprep.mubr.f32.mxu0 %v6345_v0 }
 0x133   : > { %5054 = vmatmul.mubr.msk.f32.gmra.mrb[42].mxu0 %vm494_vm5, %v640_v20  ;;  %v1390_v20 = vld [vmem:[#allocation2 + $0x5a] sm:$0xff] }
 0x134   : > { %959 = vmatprep.mubr.f32.mxu0 %v6345_v0 }
 0x137   : > { %5055 = vmatmul.mubr.msk.f32.gmra.mrb[44].mxu0 %vm494_vm5, %v641_v21  ;;  %v1391_v21 = vld [vmem:[#allocation2 + $0x62] sm:$0xff] }
 0x138   : > { %965 = vmatprep.mubr.f32.mxu0 %v6345_v0 }
 0x13b   : > { %5056 = vmatmul.mubr.msk.f32.gmra.mrb[46].mxu0 %vm494_vm5, %v642_v22  ;;  %v1392_v22 = vld [vmem:[#allocation2 + $0x6a] sm:$0xff] }
 0x13c   : > { %971 = vmatprep.mubr.f32.mxu0 %v6345_v0 }
 0x13f   : > { %5057 = vmatmul.mubr.msk.f32.gmra.mrb[48].mxu0 %vm494_vm5, %v643_v23  ;;  %v1393_v23 = vld [vmem:[#allocation2 + $0x72] sm:$0xff] }
 0x140   : > { %977 = vmatprep.mubr.f32.mxu0 %v6345_v0 }
 0x143   : > { %5058 = vmatmul.mubr.msk.f32.gmra.mrb[50].mxu0 %vm494_vm5, %v644_v24  ;;  %v1394_v24 = vld [vmem:[#allocation2 + $0x7a] sm:$0xff] }
 0x144   : > { %983 = vmatprep.mubr.f32.mxu0 %v6345_v0 }
 0x147   : > { %5059 = vmatmul.mubr.msk.f32.gmra.mrb[52].mxu0 %vm494_vm5, %v645_v25  ;;  %v1395_v25 = vld [vmem:[#allocation2 + $0x82] sm:$0xff] }
 0x148   : > { %989 = vmatprep.mubr.f32.mxu0 %v6345_v0 }
 0x14b   : > { %5060 = vmatmul.mubr.msk.f32.gmra.mrb[54].mxu0 %vm494_vm5, %v646_v26  ;;  %v1396_v26 = vld [vmem:[#allocation2 + $0x8a] sm:$0xff] }
 0x14c   : > { %995 = vmatprep.mubr.f32.mxu0 %v6345_v0 }
 0x14f   : > { %5061 = vmatmul.mubr.msk.f32.gmra.mrb[56].mxu0 %vm494_vm5, %v647_v27  ;;  %v1397_v27 = vld [vmem:[#allocation2 + $0x92] sm:$0xff] }
 0x150   : > { %1001 = vmatprep.mubr.f32.mxu0 %v6345_v0 }
 0x153   : > { %5062 = vmatmul.mubr.msk.f32.gmra.mrb[58].mxu0 %vm494_vm5, %v648_v28  ;;  %v1398_v28 = vld [vmem:[#allocation2 + $0x9a] sm:$0xff] }
 0x154   : > { %1007 = vmatprep.mubr.f32.mxu0 %v6345_v0 }
 0x157   : > { %5063 = vmatmul.mubr.msk.f32.gmra.mrb[60].mxu0 %vm494_vm5, %v649_v29  ;;  %v1399_v29 = vld [vmem:[#allocation2 + $0xa2] sm:$0xff] }
 0x158   : > { %1013 = vmatprep.mubr.f32.mxu0 %v6345_v0 }
 0x15b   : > { %5064 = vmatmul.mubr.msk.f32.gmra.mrb[62].mxu0 %vm494_vm5, %v650_v30  ;;  %v1400_v30 = vld [vmem:[#allocation2 + $0xaa] sm:$0xff] }
 0x15c   : > { %1186 = vmatprep.mubr.f32.mxu0 %v6345_v0 }
 0x15f   : > { %5067 = vmatmul.mubr.msk.f32.vlgmr.msra.gmra.mrb[0].mxu0 %vm494_vm5, %v579_v35  ;;  %v1405_v35 = vld [vmem:[#allocation2 + $0xd2] sm:$0xff] }
 0x160   : > { %1192 = vmatprep.mubr.f32.mxu0 %v6345_v0  ;;  %5358 = vmatpush1.bf16.msra.mxu0 %v5357_v36  ;;  %v1406_v36 = vld [vmem:[#allocation2 + $0xda] sm:$0xff] }
 0x161   : > { %5361 = vmatprep.subr.msk.bf16.mxu0 %vm6700_vm4, %v5359_v37  ;;  %v1407_v37 = vld [vmem:[#allocation2 + $0xe2] sm:$0xff] }
 0x163   : > { %5068 = vmatmul.mubr.msk.f32.gmra.mrb[2].mxu0 %vm494_vm5, %v580_v40  ;;  %v1410_v40 = vld [vmem:[#allocation2 + $0xfa] sm:$0x3f] }
 0x164   : > { %1198 = vmatprep.mubr.f32.mxu0 %v6345_v0  ;;  %5364 = vmatpush1.bf16.msk.msra.mxu0 %vm6700_vm4, %v5362_v41  ;;  %v1845_v41 = vlaneseq }
 0x167   : > { %5069 = vmatmul.mubr.msk.f32.gmra.mrb[4].mxu0 %vm494_vm5, %v581_v42  ;;  %v6976_v42 = vshrl.u32 %v1845_v41, 7 }
 0x168   : > { %1204 = vmatprep.mubr.f32.mxu0 %v6345_v0 }
 0x16b   : > { %5070 = vmatmul.mubr.msk.f32.gmra.mrb[6].mxu0 %vm494_vm5, %v582_v43  ;;  %v1847_v43 = vsub.s32 0, %v6976_v42 }
 0x16c   : > { %1210 = vmatprep.mubr.f32.mxu0 %v6345_v0 }
 0x16f   : > { %5071 = vmatmul.mubr.msk.f32.gmra.mrb[8].mxu0 %vm494_vm5, %v583_v44  ;;  %v1843_v44 = vld [vmem:[%s8340_s2] sm:$0x3] }
 0x170   : > { %1216 = vmatprep.mubr.f32.mxu0 %v6345_v0 }
 0x173   : > { %5072 = vmatmul.mubr.msk.f32.gmra.mrb[10].mxu0 %vm494_vm5, %v584_v45  ;;  %v1851_v45 = vsub.s32 1, %v6976_v42 }
 0x174   : > { %1222 = vmatprep.mubr.f32.mxu0 %v6345_v0 }
 0x177   : > { %5073 = vmatmul.mubr.msk.f32.gmra.mrb[12].mxu0 %vm494_vm5, %v585_v1  ;;  %v6985_v1 = vrot.slane %v1843_v44, %v1847_v43 }
 0x178   : > { %1228 = vmatprep.mubr.f32.mxu0 %v6345_v0 }
 0x17b   : > { %5074 = vmatmul.mubr.msk.f32.gmra.mrb[14].mxu0 %vm494_vm5, %v586_v46  ;;  %v6989_v46 = vrot.slane %v1843_v44, %v1851_v45 }
 0x17c   : > { %1234 = vmatprep.mubr.f32.mxu0 %v6345_v0 }
 0x17f   : > { %5075 = vmatmul.mubr.msk.f32.gmra.mrb[16].mxu0 %vm494_vm5, %v587_v47 }
 0x180   : > { %1240 = vmatprep.mubr.f32.mxu0 %v6345_v0 }
 0x183   : > { %5076 = vmatmul.mubr.msk.f32.gmra.mrb[18].mxu0 %vm494_vm5, %v588_v48 }
 0x184   : > { %1246 = vmatprep.mubr.f32.mxu0 %v6345_v0 }
 0x187   : > { %5077 = vmatmul.mubr.msk.f32.gmra.mrb[20].mxu0 %vm494_vm5, %v589_v49 }
 0x188   : > { %1252 = vmatprep.mubr.f32.mxu0 %v6345_v0 }
 0x18b   : > { %5078 = vmatmul.mubr.msk.f32.gmra.mrb[22].mxu0 %vm494_vm5, %v590_v50 }
 0x18c   : > { %1258 = vmatprep.mubr.f32.mxu0 %v6345_v0 }
 0x18f   : > { %5079 = vmatmul.mubr.msk.f32.gmra.mrb[24].mxu0 %vm494_vm5, %v591_v51 }
 0x190   : > { %1264 = vmatprep.mubr.f32.mxu0 %v6345_v0 }
 0x193   : > { %5080 = vmatmul.mubr.msk.f32.gmra.mrb[26].mxu0 %vm494_vm5, %v592_v52 }
 0x194   : > { %1270 = vmatprep.mubr.f32.mxu0 %v6345_v0 }
 0x197   : > { %5081 = vmatmul.mubr.msk.f32.gmra.mrb[28].mxu0 %vm494_vm5, %v593_v53 }
 0x198   : > { %1276 = vmatprep.mubr.f32.mxu0 %v6345_v0 }
 0x19b   : > { %5082 = vmatmul.mubr.msk.f32.gmra.mrb[30].mxu0 %vm494_vm5, %v594_v54 }
 0x19c   : > { %1282 = vmatprep.mubr.f32.mxu0 %v6345_v0 }
 0x19f   : > { %5083 = vmatmul.mubr.msk.f32.gmra.mrb[32].mxu0 %vm494_vm5, %v595_v55 }
 0x1a0   : > { %1288 = vmatprep.mubr.f32.mxu0 %v6345_v0 }
 0x1a3   : > { %5084 = vmatmul.mubr.msk.f32.gmra.mrb[34].mxu0 %vm494_vm5, %v596_v56 }
 0x1a4   : > { %1294 = vmatprep.mubr.f32.mxu0 %v6345_v0 }
 0x1a7   : > { %5085 = vmatmul.mubr.msk.f32.gmra.mrb[36].mxu0 %vm494_vm5, %v597_v57 }
 0x1a8   : > { %1300 = vmatprep.mubr.f32.mxu0 %v6345_v0 }
 0x1ab   : > { %5086 = vmatmul.mubr.msk.f32.gmra.mrb[38].mxu0 %vm494_vm5, %v598_v58 }
 0x1ac   : > { %1306 = vmatprep.mubr.f32.mxu0 %v6345_v0 }
 0x1af   : > { %5087 = vmatmul.mubr.msk.f32.gmra.mrb[40].mxu0 %vm494_vm5, %v599_v59 }
 0x1b0   : > { %1312 = vmatprep.mubr.f32.mxu0 %v6345_v0 }
 0x1b3   : > { %5088 = vmatmul.mubr.msk.f32.gmra.mrb[42].mxu0 %vm494_vm5, %v600_v60 }
 0x1b4   : > { %1318 = vmatprep.mubr.f32.mxu0 %v6345_v0 }
 0x1b7   : > { %5089 = vmatmul.mubr.msk.f32.gmra.mrb[44].mxu0 %vm494_vm5, %v601_v61 }
 0x1b8   : > { %1324 = vmatprep.mubr.f32.mxu0 %v6345_v0 }
 0x1bb   : > { %5090 = vmatmul.mubr.msk.f32.gmra.mrb[46].mxu0 %vm494_vm5, %v602_v62 }
 0x1bc   : > { %1330 = vmatprep.mubr.f32.mxu0 %v6345_v0 }
 0x1bf   : > { %5091 = vmatmul.mubr.msk.f32.gmra.mrb[48].mxu0 %vm494_vm5, %v603_v63 }
 0x1c0   : > { %1336 = vmatprep.mubr.f32.mxu0 %v6345_v0 }
 0x1c3   : > { %5092 = vmatmul.mubr.msk.f32.gmra.mrb[50].mxu0 %vm494_vm5, %v604_v2 }
 0x1c4   : > { %1342 = vmatprep.mubr.f32.mxu0 %v6345_v0 }
 0x1c7   : > { %5093 = vmatmul.mubr.msk.f32.gmra.mrb[52].mxu0 %vm494_vm5, %v605_v3 }
 0x1c8   : > { %1348 = vmatprep.mubr.f32.mxu0 %v6345_v0 }
 0x1cb   : > { %5094 = vmatmul.mubr.msk.f32.gmra.mrb[54].mxu0 %vm494_vm5, %v606_v4 }
 0x1cc   : > { %1354 = vmatprep.mubr.f32.mxu0 %v6345_v0 }
 0x1cf   : > { %5095 = vmatmul.mubr.msk.f32.gmra.mrb[56].mxu0 %vm494_vm5, %v607_v5  ;;  %v2303_v5 = vld [vmem:[#allocation6 + $0x8] sm:$0xff] }
 0x1d0   : > { %1360 = vmatprep.mubr.f32.mxu0 %v6345_v0  ;;  %5135 = vmatprep.mubr.msk.f32.mxu1 %vm2334_vm8, %v2303_v5 }
 0x1d3   : > { %5096 = vmatmul.mubr.msk.f32.gmra.mrb[58].mxu0 %vm494_vm5, %v608_v6 }
 0x1d4   : > { %1366 = vmatprep.mubr.f32.mxu0 %v6345_v0 }
 0x1d7   : > { %5097 = vmatmul.mubr.msk.f32.gmra.mrb[60].mxu0 %vm494_vm5, %v609_v7 }
 0x1d8   : > { %1372 = vmatprep.mubr.f32.mxu0 %v6345_v0 }
 0x1db   : > { %5098 = vmatmul.mubr.msk.f32.gmra.mrb[62].mxu0 %vm494_vm5, %v610_v8 }
 0x1dc   : > { %1586 = vmatprep.mubr.f32.mxu0 %v6345_v0 }
 0x1df   : > { %5101 = vmatmul.mubr.msk.f32.vlgmr.msra.gmra.mrb[0].mxu0 %vm494_vm5, %v1379_v9 }
 0x1e0   : > { %1592 = vmatprep.mubr.f32.mxu0 %v6345_v0 }
 0x1e3   : > { %5102 = vmatmul.mubr.msk.f32.gmra.mrb[2].mxu0 %vm494_vm5, %v1380_v10 }
 0x1e4   : > { %1598 = vmatprep.mubr.f32.mxu0 %v6345_v0 }
 0x1e7   : > { %5103 = vmatmul.mubr.msk.f32.gmra.mrb[4].mxu0 %vm494_vm5, %v1381_v11 }
 0x1e8   : > { %1604 = vmatprep.mubr.f32.mxu0 %v6345_v0 }
 0x1eb   : > { %5104 = vmatmul.mubr.msk.f32.gmra.mrb[6].mxu0 %vm494_vm5, %v1382_v12 }
 0x1ec   : > { %1610 = vmatprep.mubr.f32.mxu0 %v6345_v0 }
 0x1ef   : > { %5105 = vmatmul.mubr.msk.f32.gmra.mrb[8].mxu0 %vm494_vm5, %v1383_v13 }
 0x1f0   : > { %1616 = vmatprep.mubr.f32.mxu0 %v6345_v0 }
 0x1f3   : > { %5106 = vmatmul.mubr.msk.f32.gmra.mrb[10].mxu0 %vm494_vm5, %v1384_v14 }
 0x1f4   : > { %1622 = vmatprep.mubr.f32.mxu0 %v6345_v0 }
 0x1f7   : > { %5107 = vmatmul.mubr.msk.f32.gmra.mrb[12].mxu0 %vm494_vm5, %v1385_v15 }
 0x1f8   : > { %1628 = vmatprep.mubr.f32.mxu0 %v6345_v0 }
 0x1fb   : > { %5108 = vmatmul.mubr.msk.f32.gmra.mrb[14].mxu0 %vm494_vm5, %v1386_v16 }
 0x1fc   : > { %1634 = vmatprep.mubr.f32.mxu0 %v6345_v0 }
 0x1ff   : > { %5109 = vmatmul.mubr.msk.f32.gmra.mrb[16].mxu0 %vm494_vm5, %v1387_v17 }
 0x200   : > { %1640 = vmatprep.mubr.f32.mxu0 %v6345_v0 }
 0x203   : > { %5110 = vmatmul.mubr.msk.f32.gmra.mrb[18].mxu0 %vm494_vm5, %v1388_v18 }
 0x204   : > { %1646 = vmatprep.mubr.f32.mxu0 %v6345_v0 }
 0x207   : > { %5111 = vmatmul.mubr.msk.f32.gmra.mrb[20].mxu0 %vm494_vm5, %v1389_v19 }
 0x208   : > { %1652 = vmatprep.mubr.f32.mxu0 %v6345_v0 }
 0x20b   : > { %5112 = vmatmul.mubr.msk.f32.gmra.mrb[22].mxu0 %vm494_vm5, %v1390_v20 }
 0x20c   : > { %1658 = vmatprep.mubr.f32.mxu0 %v6345_v0 }
 0x20f   : > { %5113 = vmatmul.mubr.msk.f32.gmra.mrb[24].mxu0 %vm494_vm5, %v1391_v21 }
 0x210   : > { %1664 = vmatprep.mubr.f32.mxu0 %v6345_v0 }
 0x213   : > { %5114 = vmatmul.mubr.msk.f32.gmra.mrb[26].mxu0 %vm494_vm5, %v1392_v22 }
 0x214   : > { %1670 = vmatprep.mubr.f32.mxu0 %v6345_v0 }
 0x217   : > { %5115 = vmatmul.mubr.msk.f32.gmra.mrb[28].mxu0 %vm494_vm5, %v1393_v23 }
 0x218   : > { %1676 = vmatprep.mubr.f32.mxu0 %v6345_v0 }
 0x21b   : > { %5116 = vmatmul.mubr.msk.f32.gmra.mrb[30].mxu0 %vm494_vm5, %v1394_v24 }
 0x21c   : > { %1682 = vmatprep.mubr.f32.mxu0 %v6345_v0 }
 0x21f   : > { %5117 = vmatmul.mubr.msk.f32.gmra.mrb[32].mxu0 %vm494_vm5, %v1395_v25 }
 0x220   : > { %1688 = vmatprep.mubr.f32.mxu0 %v6345_v0 }
 0x223   : > { %5118 = vmatmul.mubr.msk.f32.gmra.mrb[34].mxu0 %vm494_vm5, %v1396_v26 }
 0x224   : > { %1694 = vmatprep.mubr.f32.mxu0 %v6345_v0 }
 0x227   : > { %5119 = vmatmul.mubr.msk.f32.gmra.mrb[36].mxu0 %vm494_vm5, %v1397_v27 }
 0x228   : > { %1700 = vmatprep.mubr.f32.mxu0 %v6345_v0 }
 0x22b   : > { %5120 = vmatmul.mubr.msk.f32.gmra.mrb[38].mxu0 %vm494_vm5, %v1398_v28 }
 0x22c   : > { %1706 = vmatprep.mubr.f32.mxu0 %v6345_v0 }
 0x22f   : > { %5121 = vmatmul.mubr.msk.f32.gmra.mrb[40].mxu0 %vm494_vm5, %v1399_v29 }
 0x230   : > { %1712 = vmatprep.mubr.f32.mxu0 %v6345_v0 }
 0x233   : > { %5122 = vmatmul.mubr.msk.f32.gmra.mrb[42].mxu0 %vm494_vm5, %v1400_v30 }
 0x234   : > { %1718 = vmatprep.mubr.f32.mxu0 %v6345_v0 }
 0x237   : > { %5123 = vmatmul.mubr.msk.f32.gmra.mrb[44].mxu0 %vm494_vm5, %v1401_v31 }
 0x238   : > { %1724 = vmatprep.mubr.f32.mxu0 %v6345_v0 }
 0x23b   : > { %5124 = vmatmul.mubr.msk.f32.gmra.mrb[46].mxu0 %vm494_vm5, %v1402_v32 }
 0x23c   : > { %1730 = vmatprep.mubr.f32.mxu0 %v6345_v0 }
 0x23f   : > { %5125 = vmatmul.mubr.msk.f32.gmra.mrb[48].mxu0 %vm494_vm5, %v1403_v33 }
 0x240   : > { %1736 = vmatprep.mubr.f32.mxu0 %v6345_v0 }
 0x243   : > { %5126 = vmatmul.mubr.msk.f32.gmra.mrb[50].mxu0 %vm494_vm5, %v1404_v34 }
 0x244   : > { %1742 = vmatprep.mubr.f32.mxu0 %v6345_v0 }
 0x247   : > { %5127 = vmatmul.mubr.msk.f32.gmra.mrb[52].mxu0 %vm494_vm5, %v1405_v35 }
 0x248   : > { %1748 = vmatprep.mubr.f32.mxu0 %v6345_v0 }
 0x24b   : > { %5128 = vmatmul.mubr.msk.f32.gmra.mrb[54].mxu0 %vm494_vm5, %v1406_v36 }
 0x24c   : > { %1754 = vmatprep.mubr.f32.mxu0 %v6345_v0 }
 0x24f   : > { %5129 = vmatmul.mubr.msk.f32.gmra.mrb[56].mxu0 %vm494_vm5, %v1407_v37 }
 0x250   : > { %1760 = vmatprep.mubr.f32.mxu0 %v6345_v0 }
 0x253   : > { %5130 = vmatmul.mubr.msk.f32.gmra.mrb[58].mxu0 %vm494_vm5, %v1408_v38 }
 0x254   : > { %1766 = vmatprep.mubr.f32.mxu0 %v6345_v0 }
 0x257   : > { %5131 = vmatmul.mubr.msk.f32.gmra.mrb[60].mxu0 %vm494_vm5, %v1409_v39 }
 0x258   : > { %1772 = vmatprep.mubr.f32.mxu0 %v6345_v0 }
 0x25b   : > { %5132 = vmatmul.mubr.msk.f32.gmra.mrb[62].mxu0 %vm494_vm5, %v1410_v40 }
 0x2b2   : > { %v1588_v47 = vpop.f32.mrb[0].mxu0 }
 0x2b3   : > { %v1855_v48 = vadd.f32 %v6985_v1, %v1588_v47  ;;  %v1590_v49 = vpop.f32.mrb[1].mxu0 }
 0x2b4   : > { %v1856_v50 = vadd.f32 %v6989_v46, %v1590_v49 }
 0x2b5   : > { %v1919_v52 = vmax.f32 %v1855_v48, 0.0 }
 0x2b6   : > { %v1594_v51 = vpop.f32.mrb[2].mxu0  ;;  %v1920_v55 = vmax.f32 %v1856_v50, 0.0 }
 0x2b7   : > { %v1857_v53 = vadd.f32 %v6985_v1, %v1594_v51  ;;  %v1596_v54 = vpop.f32.mrb[3].mxu0  ;;  %v2048_v60 = vrot.slane %v1919_v52, 1 }
 0x2b8   : > { %v1858_v56 = vadd.f32 %v6989_v46, %v1596_v54  ;;  %v2051_v2 = vrot.slane %v1920_v55, 1 }
 0x2b9   : > { %v1921_v57 = vmax.f32 %v1857_v53, 0.0 }
 0x2ba   : > { %v1922_v58 = vmax.f32 %v1858_v56, 0.0  ;;  %v1600_v59 = vpop.f32.mrb[4].mxu0 }
 0x2bb   : > { %v2049_v61 = vrot.slane %v1921_v57, 1  ;;  %v1859_v62 = vadd.f32 %v6985_v1, %v1600_v59  ;;  %v1602_v63 = vpop.f32.mrb[5].mxu0 }
 0x2bc   : > { %v2052_v3 = vrot.slane %v1922_v58, 1  ;;  %v1860_v4 = vadd.f32 %v6989_v46, %v1602_v63 }
 0x2bd   : > { %v1923_v6 = vmax.f32 %v1859_v62, 0.0  ;;  %v2050_v7 = vsel %vm2047_vm7, %v2048_v60, %v2049_v61 }
 0x2be   : > { %v1924_v8 = vmax.f32 %v1860_v4, 0.0  ;;  %v1606_v9 = vpop.f32.mrb[6].mxu0  ;;  %v2053_v10 = vsel %vm2047_vm7, %v2051_v2, %v2052_v3  ;;  %v2238_v11 = vmax.f32 %v1919_v52, %v2050_v7 }
 0x2bf   : > { %v2054_v12 = vrot.slane %v1923_v6, 1  ;;  %v1861_v13 = vadd.f32 %v6985_v1, %v1606_v9  ;;  %v1608_v14 = vpop.f32.mrb[7].mxu0  ;;  %v2239_v15 = vmax.f32 %v1920_v55, %v2053_v10 }
 0x2c0   : > { %v2056_v16 = vrot.slane %v1924_v8, 1  ;;  %v1862_v17 = vadd.f32 %v6989_v46, %v1608_v14 }
 0x2c1   : > { %v1925_v18 = vmax.f32 %v1861_v13, 0.0  ;;  %v2055_v19 = vsel %vm2047_vm7, %v2049_v61, %v2054_v12 }
 0x2c2   : > { %v1926_v20 = vmax.f32 %v1862_v17, 0.0  ;;  %v1612_v21 = vpop.f32.mrb[8].mxu0  ;;  %v2057_v22 = vsel %vm2047_vm7, %v2052_v3, %v2056_v16  ;;  %v2240_v23 = vmax.f32 %v1921_v57, %v2055_v19 }
 0x2c3   : > { %v2058_v24 = vrot.slane %v1925_v18, 1  ;;  %v1863_v25 = vadd.f32 %v6985_v1, %v1612_v21  ;;  %v1614_v26 = vpop.f32.mrb[9].mxu0  ;;  %v2241_v27 = vmax.f32 %v1922_v58, %v2057_v22 }
 0x2c4   : > { %v2060_v28 = vrot.slane %v1926_v20, 1  ;;  %v1864_v29 = vadd.f32 %v6989_v46, %v1614_v26  ;;  %v5367_v30 = vpack.c.bf16 %v2240_v23, %v2238_v11 }
 0x2c5   : > { %v1927_v31 = vmax.f32 %v1863_v25, 0.0  ;;  %v5365_v32 = vpack.c.bf16 %v2241_v27, %v2239_v15  ;;  %v2059_v33 = vsel %vm2047_vm7, %v2054_v12, %v2058_v24 }
 0x2c6   : > { %v1928_v34 = vmax.f32 %v1864_v29, 0.0  ;;  %v1618_v35 = vpop.f32.mrb[10].mxu0  ;;  %v2061_v36 = vsel %vm2047_vm7, %v2056_v16, %v2060_v28  ;;  %v2242_v37 = vmax.f32 %v1923_v6, %v2059_v33 }
 0x2c7   : > { %v2062_v38 = vrot.slane %v1927_v31, 1  ;;  %v1865_v39 = vadd.f32 %v6985_v1, %v1618_v35  ;;  %v1620_v40 = vpop.f32.mrb[11].mxu0  ;;  %5366 = vmatprep.subr.bf16.mxu1 %v5365_v32  ;;  %v2243_v41 = vmax.f32 %v1924_v8, %v2061_v36 }
 0x2c8   : > { %v2064_v44 = vrot.slane %v1928_v34, 1  ;;  %v1866_v47 = vadd.f32 %v6989_v46, %v1620_v40  ;;  %5368 = vmatpush1.bf16.msra.mxu1 %v5367_v30 }
 0x2c9   : > { %v1929_v48 = vmax.f32 %v1865_v39, 0.0  ;;  %v2063_v49 = vsel %vm2047_vm7, %v2058_v24, %v2062_v38 }
 0x2ca   : > { %v1930_v50 = vmax.f32 %v1866_v47, 0.0  ;;  %v1624_v51 = vpop.f32.mrb[12].mxu0  ;;  %v2065_v52 = vsel %vm2047_vm7, %v2060_v28, %v2064_v44  ;;  %v2244_v53 = vmax.f32 %v1925_v18, %v2063_v49 }
 0x2cb   : > { %v2066_v54 = vrot.slane %v1929_v48, 1  ;;  %v1867_v55 = vadd.f32 %v6985_v1, %v1624_v51  ;;  %v1626_v56 = vpop.f32.mrb[13].mxu0  ;;  %v2245_v57 = vmax.f32 %v1926_v20, %v2065_v52 }
 0x2cc   : > { %v2068_v58 = vrot.slane %v1930_v50, 1  ;;  %v1868_v59 = vadd.f32 %v6989_v46, %v1626_v56  ;;  %v5371_v60 = vpack.c.bf16 %v2244_v53, %v2242_v37 }
 0x2cd   : > { %v1931_v61 = vmax.f32 %v1867_v55, 0.0  ;;  %v5369_v62 = vpack.c.bf16 %v2245_v57, %v2243_v41  ;;  %v2067_v63 = vsel %vm2047_vm7, %v2062_v38, %v2066_v54 }
 0x2ce   : > { %v1932_v2 = vmax.f32 %v1868_v59, 0.0  ;;  %v1630_v3 = vpop.f32.mrb[14].mxu0  ;;  %v2069_v4 = vsel %vm2047_vm7, %v2064_v44, %v2068_v58  ;;  %v2246_v5 = vmax.f32 %v1927_v31, %v2067_v63 }
 0x2cf   : > { %v2070_v6 = vrot.slane %v1931_v61, 1  ;;  %v1869_v7 = vadd.f32 %v6985_v1, %v1630_v3  ;;  %v1632_v8 = vpop.f32.mrb[15].mxu0  ;;  %5370 = vmatprep.subr.bf16.mxu1 %v5369_v62  ;;  %v2247_v9 = vmax.f32 %v1928_v34, %v2069_v4 }
 0x2d0   : > { %v2072_v10 = vrot.slane %v1932_v2, 1  ;;  %v1870_v11 = vadd.f32 %v6989_v46, %v1632_v8  ;;  %5372 = vmatpush1.bf16.msra.mxu1 %v5371_v60 }
 0x2d1   : > { %v1933_v12 = vmax.f32 %v1869_v7, 0.0  ;;  %v2071_v13 = vsel %vm2047_vm7, %v2066_v54, %v2070_v6 }
 0x2d2   : > { %v1934_v14 = vmax.f32 %v1870_v11, 0.0  ;;  %v1636_v15 = vpop.f32.mrb[16].mxu0  ;;  %v2073_v16 = vsel %vm2047_vm7, %v2068_v58, %v2072_v10  ;;  %v2248_v17 = vmax.f32 %v1929_v48, %v2071_v13 }
 0x2d3   : > { %v2074_v18 = vrot.slane %v1933_v12, 1  ;;  %v1871_v19 = vadd.f32 %v6985_v1, %v1636_v15  ;;  %v1638_v20 = vpop.f32.mrb[17].mxu0  ;;  %v2249_v21 = vmax.f32 %v1930_v50, %v2073_v16 }
 0x2d4   : > { %v2076_v22 = vrot.slane %v1934_v14, 1  ;;  %v1872_v23 = vadd.f32 %v6989_v46, %v1638_v20  ;;  %v5375_v24 = vpack.c.bf16 %v2248_v17, %v2246_v5 }
 0x2d5   : > { %v1935_v25 = vmax.f32 %v1871_v19, 0.0  ;;  %v5373_v26 = vpack.c.bf16 %v2249_v21, %v2247_v9  ;;  %v2075_v27 = vsel %vm2047_vm7, %v2070_v6, %v2074_v18 }
 0x2d6   : > { %v1936_v28 = vmax.f32 %v1872_v23, 0.0  ;;  %v1642_v29 = vpop.f32.mrb[18].mxu0  ;;  %v2077_v30 = vsel %vm2047_vm7, %v2072_v10, %v2076_v22  ;;  %v2250_v31 = vmax.f32 %v1931_v61, %v2075_v27 }
 0x2d7   : > { %v2078_v32 = vrot.slane %v1935_v25, 1  ;;  %v1873_v33 = vadd.f32 %v6985_v1, %v1642_v29  ;;  %v1644_v34 = vpop.f32.mrb[19].mxu0  ;;  %5374 = vmatprep.subr.bf16.mxu1 %v5373_v26  ;;  %v2251_v35 = vmax.f32 %v1932_v2, %v2077_v30 }
 0x2d8   : > { %v2080_v36 = vrot.slane %v1936_v28, 1  ;;  %v1874_v37 = vadd.f32 %v6989_v46, %v1644_v34  ;;  %5376 = vmatpush1.bf16.msra.mxu1 %v5375_v24 }
 0x2d9   : > { %v1937_v38 = vmax.f32 %v1873_v33, 0.0  ;;  %v2079_v39 = vsel %vm2047_vm7, %v2074_v18, %v2078_v32 }
 0x2da   : > { %v1938_v40 = vmax.f32 %v1874_v37, 0.0  ;;  %v1648_v41 = vpop.f32.mrb[20].mxu0  ;;  %v2081_v44 = vsel %vm2047_vm7, %v2076_v22, %v2080_v36  ;;  %v2252_v47 = vmax.f32 %v1933_v12, %v2079_v39 }
 0x2db   : > { %v2082_v48 = vrot.slane %v1937_v38, 1  ;;  %v1875_v49 = vadd.f32 %v6985_v1, %v1648_v41  ;;  %v1650_v50 = vpop.f32.mrb[21].mxu0  ;;  %v2253_v51 = vmax.f32 %v1934_v14, %v2081_v44 }
 0x2dc   : > { %v2084_v52 = vrot.slane %v1938_v40, 1  ;;  %v1876_v53 = vadd.f32 %v6989_v46, %v1650_v50  ;;  %v5379_v54 = vpack.c.bf16 %v2252_v47, %v2250_v31 }
 0x2dd   : > { %v1939_v55 = vmax.f32 %v1875_v49, 0.0  ;;  %v5377_v56 = vpack.c.bf16 %v2253_v51, %v2251_v35  ;;  %v2083_v57 = vsel %vm2047_vm7, %v2078_v32, %v2082_v48 }
 0x2de   : > { %v1940_v58 = vmax.f32 %v1876_v53, 0.0  ;;  %v1654_v59 = vpop.f32.mrb[22].mxu0  ;;  %v2085_v60 = vsel %vm2047_vm7, %v2080_v36, %v2084_v52  ;;  %v2254_v61 = vmax.f32 %v1935_v25, %v2083_v57 }
 0x2df   : > { %v2086_v62 = vrot.slane %v1939_v55, 1  ;;  %v1877_v63 = vadd.f32 %v6985_v1, %v1654_v59  ;;  %v1656_v2 = vpop.f32.mrb[23].mxu0  ;;  %5378 = vmatprep.subr.bf16.mxu1 %v5377_v56  ;;  %v2255_v3 = vmax.f32 %v1936_v28, %v2085_v60 }
 0x2e0   : > { %v2088_v4 = vrot.slane %v1940_v58, 1  ;;  %v1878_v5 = vadd.f32 %v6989_v46, %v1656_v2  ;;  %5380 = vmatpush1.bf16.msra.mxu1 %v5379_v54 }
 0x2e1   : > { %v1941_v6 = vmax.f32 %v1877_v63, 0.0  ;;  %v2087_v7 = vsel %vm2047_vm7, %v2082_v48, %v2086_v62 }
 0x2e2   : > { %v1942_v8 = vmax.f32 %v1878_v5, 0.0  ;;  %v1660_v9 = vpop.f32.mrb[24].mxu0  ;;  %v2089_v10 = vsel %vm2047_vm7, %v2084_v52, %v2088_v4  ;;  %v2256_v11 = vmax.f32 %v1937_v38, %v2087_v7 }
 0x2e3   : > { %v2090_v12 = vrot.slane %v1941_v6, 1  ;;  %v1879_v13 = vadd.f32 %v6985_v1, %v1660_v9  ;;  %v1662_v14 = vpop.f32.mrb[25].mxu0  ;;  %v2257_v15 = vmax.f32 %v1938_v40, %v2089_v10 }
 0x2e4   : > { %v2092_v16 = vrot.slane %v1942_v8, 1  ;;  %v1880_v17 = vadd.f32 %v6989_v46, %v1662_v14  ;;  %v5383_v18 = vpack.c.bf16 %v2256_v11, %v2254_v61 }
 0x2e5   : > { %v1943_v19 = vmax.f32 %v1879_v13, 0.0  ;;  %v5381_v20 = vpack.c.bf16 %v2257_v15, %v2255_v3  ;;  %v2091_v21 = vsel %vm2047_vm7, %v2086_v62, %v2090_v12 }
 0x2e6   : > { %v1944_v22 = vmax.f32 %v1880_v17, 0.0  ;;  %v1666_v23 = vpop.f32.mrb[26].mxu0  ;;  %v2093_v24 = vsel %vm2047_vm7, %v2088_v4, %v2092_v16  ;;  %v2258_v25 = vmax.f32 %v1939_v55, %v2091_v21 }
 0x2e7   : > { %v2094_v26 = vrot.slane %v1943_v19, 1  ;;  %v1881_v27 = vadd.f32 %v6985_v1, %v1666_v23  ;;  %v1668_v28 = vpop.f32.mrb[27].mxu0  ;;  %5382 = vmatprep.subr.bf16.mxu1 %v5381_v20  ;;  %v2259_v29 = vmax.f32 %v1940_v58, %v2093_v24 }
 0x2e8   : > { %v2096_v30 = vrot.slane %v1944_v22, 1  ;;  %v1882_v31 = vadd.f32 %v6989_v46, %v1668_v28  ;;  %5384 = vmatpush1.bf16.msra.mxu1 %v5383_v18 }
 0x2e9   : > { %v1945_v32 = vmax.f32 %v1881_v27, 0.0  ;;  %v2095_v33 = vsel %vm2047_vm7, %v2090_v12, %v2094_v26 }
 0x2ea   : > { %v1946_v34 = vmax.f32 %v1882_v31, 0.0  ;;  %v1672_v35 = vpop.f32.mrb[28].mxu0  ;;  %v2097_v36 = vsel %vm2047_vm7, %v2092_v16, %v2096_v30  ;;  %v2260_v37 = vmax.f32 %v1941_v6, %v2095_v33 }
 0x2eb   : > { %v2098_v38 = vrot.slane %v1945_v32, 1  ;;  %v1883_v39 = vadd.f32 %v6985_v1, %v1672_v35  ;;  %v1674_v40 = vpop.f32.mrb[29].mxu0  ;;  %v2261_v41 = vmax.f32 %v1942_v8, %v2097_v36 }
 0x2ec   : > { %v2100_v44 = vrot.slane %v1946_v34, 1  ;;  %v1884_v47 = vadd.f32 %v6989_v46, %v1674_v40  ;;  %v5387_v48 = vpack.c.bf16 %v2260_v37, %v2258_v25 }
 0x2ed   : > { %v1947_v49 = vmax.f32 %v1883_v39, 0.0  ;;  %v5385_v50 = vpack.c.bf16 %v2261_v41, %v2259_v29  ;;  %v2099_v51 = vsel %vm2047_vm7, %v2094_v26, %v2098_v38 }
 0x2ee   : > { %v1948_v52 = vmax.f32 %v1884_v47, 0.0  ;;  %v1678_v53 = vpop.f32.mrb[30].mxu0  ;;  %v2101_v54 = vsel %vm2047_vm7, %v2096_v30, %v2100_v44  ;;  %v2262_v55 = vmax.f32 %v1943_v19, %v2099_v51 }
 0x2ef   : > { %v2102_v56 = vrot.slane %v1947_v49, 1  ;;  %v1885_v57 = vadd.f32 %v6985_v1, %v1678_v53  ;;  %v1680_v58 = vpop.f32.mrb[31].mxu0  ;;  %5386 = vmatprep.subr.bf16.mxu1 %v5385_v50  ;;  %v2263_v59 = vmax.f32 %v1944_v22, %v2101_v54 }
 0x2f0   : > { %v2104_v60 = vrot.slane %v1948_v52, 1  ;;  %v1886_v61 = vadd.f32 %v6989_v46, %v1680_v58  ;;  %5388 = vmatpush1.bf16.msra.mxu1 %v5387_v48 }
 0x2f1   : > { %v1949_v62 = vmax.f32 %v1885_v57, 0.0  ;;  %v2103_v63 = vsel %vm2047_vm7, %v2098_v38, %v2102_v56 }
 0x2f2   : > { %v1950_v2 = vmax.f32 %v1886_v61, 0.0  ;;  %v1684_v3 = vpop.f32.mrb[32].mxu0  ;;  %v2105_v4 = vsel %vm2047_vm7, %v2100_v44, %v2104_v60  ;;  %v2264_v5 = vmax.f32 %v1945_v32, %v2103_v63 }
 0x2f3   : > { %v2106_v6 = vrot.slane %v1949_v62, 1  ;;  %v1887_v7 = vadd.f32 %v6985_v1, %v1684_v3  ;;  %v1686_v8 = vpop.f32.mrb[33].mxu0  ;;  %v2265_v9 = vmax.f32 %v1946_v34, %v2105_v4 }
 0x2f4   : > { %v2108_v10 = vrot.slane %v1950_v2, 1  ;;  %v1888_v11 = vadd.f32 %v6989_v46, %v1686_v8  ;;  %v5391_v12 = vpack.c.bf16 %v2264_v5, %v2262_v55 }
 0x2f5   : > { %v1951_v13 = vmax.f32 %v1887_v7, 0.0  ;;  %v5389_v14 = vpack.c.bf16 %v2265_v9, %v2263_v59  ;;  %v2107_v15 = vsel %vm2047_vm7, %v2102_v56, %v2106_v6 }
 0x2f6   : > { %v1952_v16 = vmax.f32 %v1888_v11, 0.0  ;;  %v1690_v17 = vpop.f32.mrb[34].mxu0  ;;  %v2109_v18 = vsel %vm2047_vm7, %v2104_v60, %v2108_v10  ;;  %v2266_v19 = vmax.f32 %v1947_v49, %v2107_v15 }
 0x2f7   : > { %v2110_v20 = vrot.slane %v1951_v13, 1  ;;  %v1889_v21 = vadd.f32 %v6985_v1, %v1690_v17  ;;  %v1692_v22 = vpop.f32.mrb[35].mxu0  ;;  %5390 = vmatprep.subr.bf16.mxu1 %v5389_v14  ;;  %v2267_v23 = vmax.f32 %v1948_v52, %v2109_v18 }
 0x2f8   : > { %v2112_v24 = vrot.slane %v1952_v16, 1  ;;  %v1890_v25 = vadd.f32 %v6989_v46, %v1692_v22  ;;  %5392 = vmatpush1.bf16.msra.mxu1 %v5391_v12 }
 0x2f9   : > { %v1953_v26 = vmax.f32 %v1889_v21, 0.0  ;;  %v2111_v27 = vsel %vm2047_vm7, %v2106_v6, %v2110_v20 }
 0x2fa   : > { %v1954_v28 = vmax.f32 %v1890_v25, 0.0  ;;  %v1696_v29 = vpop.f32.mrb[36].mxu0  ;;  %v2113_v30 = vsel %vm2047_vm7, %v2108_v10, %v2112_v24  ;;  %v2268_v31 = vmax.f32 %v1949_v62, %v2111_v27 }
 0x2fb   : > { %v2114_v32 = vrot.slane %v1953_v26, 1  ;;  %v1891_v33 = vadd.f32 %v6985_v1, %v1696_v29  ;;  %v1698_v34 = vpop.f32.mrb[37].mxu0  ;;  %v2269_v35 = vmax.f32 %v1950_v2, %v2113_v30 }
 0x2fc   : > { %v2116_v36 = vrot.slane %v1954_v28, 1  ;;  %v1892_v37 = vadd.f32 %v6989_v46, %v1698_v34  ;;  %v5395_v38 = vpack.c.bf16 %v2268_v31, %v2266_v19 }
 0x2fd   : > { %v1955_v39 = vmax.f32 %v1891_v33, 0.0  ;;  %v5393_v40 = vpack.c.bf16 %v2269_v35, %v2267_v23  ;;  %v2115_v41 = vsel %vm2047_vm7, %v2110_v20, %v2114_v32 }
 0x2fe   : > { %v1956_v44 = vmax.f32 %v1892_v37, 0.0  ;;  %v1702_v47 = vpop.f32.mrb[38].mxu0  ;;  %v2117_v48 = vsel %vm2047_vm7, %v2112_v24, %v2116_v36  ;;  %v2270_v49 = vmax.f32 %v1951_v13, %v2115_v41 }
 0x2ff   : > { %v2118_v50 = vrot.slane %v1955_v39, 1  ;;  %v1893_v51 = vadd.f32 %v6985_v1, %v1702_v47  ;;  %v1704_v52 = vpop.f32.mrb[39].mxu0  ;;  %5394 = vmatprep.subr.bf16.mxu1 %v5393_v40  ;;  %v2271_v53 = vmax.f32 %v1952_v16, %v2117_v48 }
 0x300   : > { %v2120_v54 = vrot.slane %v1956_v44, 1  ;;  %v1894_v55 = vadd.f32 %v6989_v46, %v1704_v52  ;;  %5396 = vmatpush1.bf16.msra.mxu1 %v5395_v38 }
 0x301   : > { %v1957_v56 = vmax.f32 %v1893_v51, 0.0  ;;  %v2119_v57 = vsel %vm2047_vm7, %v2114_v32, %v2118_v50 }
 0x302   : > { %v1958_v58 = vmax.f32 %v1894_v55, 0.0  ;;  %v1708_v59 = vpop.f32.mrb[40].mxu0  ;;  %v2121_v60 = vsel %vm2047_vm7, %v2116_v36, %v2120_v54  ;;  %v2272_v61 = vmax.f32 %v1953_v26, %v2119_v57 }
 0x303   : > { %v2122_v62 = vrot.slane %v1957_v56, 1  ;;  %v1895_v63 = vadd.f32 %v6985_v1, %v1708_v59  ;;  %v1710_v2 = vpop.f32.mrb[41].mxu0  ;;  %v2273_v3 = vmax.f32 %v1954_v28, %v2121_v60 }
 0x304   : > { %v2124_v4 = vrot.slane %v1958_v58, 1  ;;  %v1896_v5 = vadd.f32 %v6989_v46, %v1710_v2  ;;  %v5399_v6 = vpack.c.bf16 %v2272_v61, %v2270_v49 }
 0x305   : > { %v1959_v7 = vmax.f32 %v1895_v63, 0.0  ;;  %v5397_v8 = vpack.c.bf16 %v2273_v3, %v2271_v53  ;;  %v2123_v9 = vsel %vm2047_vm7, %v2118_v50, %v2122_v62 }
 0x306   : > { %v1960_v10 = vmax.f32 %v1896_v5, 0.0  ;;  %v1714_v11 = vpop.f32.mrb[42].mxu0  ;;  %v2125_v12 = vsel %vm2047_vm7, %v2120_v54, %v2124_v4  ;;  %v2274_v13 = vmax.f32 %v1955_v39, %v2123_v9 }
 0x307   : > { %v2126_v14 = vrot.slane %v1959_v7, 1  ;;  %v1897_v15 = vadd.f32 %v6985_v1, %v1714_v11  ;;  %v1716_v16 = vpop.f32.mrb[43].mxu0  ;;  %5398 = vmatprep.subr.bf16.mxu1 %v5397_v8  ;;  %v2275_v17 = vmax.f32 %v1956_v44, %v2125_v12 }
 0x308   : > { %v2128_v18 = vrot.slane %v1960_v10, 1  ;;  %v1898_v19 = vadd.f32 %v6989_v46, %v1716_v16  ;;  %5400 = vmatpush1.bf16.msra.mxu1 %v5399_v6 }
 0x309   : > { %v1961_v20 = vmax.f32 %v1897_v15, 0.0  ;;  %v2127_v21 = vsel %vm2047_vm7, %v2122_v62, %v2126_v14 }
 0x30a   : > { %v1962_v22 = vmax.f32 %v1898_v19, 0.0  ;;  %v1720_v23 = vpop.f32.mrb[44].mxu0  ;;  %v2129_v24 = vsel %vm2047_vm7, %v2124_v4, %v2128_v18  ;;  %v2276_v25 = vmax.f32 %v1957_v56, %v2127_v21 }
 0x30b   : > { %v2130_v26 = vrot.slane %v1961_v20, 1  ;;  %v1899_v27 = vadd.f32 %v6985_v1, %v1720_v23  ;;  %v1722_v28 = vpop.f32.mrb[45].mxu0  ;;  %v2277_v29 = vmax.f32 %v1958_v58, %v2129_v24 }
 0x30c   : > { %v2132_v30 = vrot.slane %v1962_v22, 1  ;;  %v1900_v31 = vadd.f32 %v6989_v46, %v1722_v28  ;;  %v5403_v32 = vpack.c.bf16 %v2276_v25, %v2274_v13 }
 0x30d   : > { %v1963_v33 = vmax.f32 %v1899_v27, 0.0  ;;  %v5401_v34 = vpack.c.bf16 %v2277_v29, %v2275_v17  ;;  %v2131_v35 = vsel %vm2047_vm7, %v2126_v14, %v2130_v26 }
 0x30e   : > { %v1964_v36 = vmax.f32 %v1900_v31, 0.0  ;;  %v1726_v37 = vpop.f32.mrb[46].mxu0  ;;  %v2133_v38 = vsel %vm2047_vm7, %v2128_v18, %v2132_v30  ;;  %v2278_v39 = vmax.f32 %v1959_v7, %v2131_v35 }
 0x30f   : > { %v2134_v40 = vrot.slane %v1963_v33, 1  ;;  %v1901_v41 = vadd.f32 %v6985_v1, %v1726_v37  ;;  %v1728_v44 = vpop.f32.mrb[47].mxu0  ;;  %5402 = vmatprep.subr.bf16.mxu1 %v5401_v34  ;;  %v2279_v47 = vmax.f32 %v1960_v10, %v2133_v38 }
 0x310   : > { %v2136_v48 = vrot.slane %v1964_v36, 1  ;;  %v1902_v49 = vadd.f32 %v6989_v46, %v1728_v44  ;;  %5404 = vmatpush1.bf16.msra.mxu1 %v5403_v32 }
 0x311   : > { %v1965_v50 = vmax.f32 %v1901_v41, 0.0  ;;  %v2135_v51 = vsel %vm2047_vm7, %v2130_v26, %v2134_v40 }
 0x312   : > { %v1966_v52 = vmax.f32 %v1902_v49, 0.0  ;;  %v1732_v53 = vpop.f32.mrb[48].mxu0  ;;  %v2137_v54 = vsel %vm2047_vm7, %v2132_v30, %v2136_v48  ;;  %v2280_v55 = vmax.f32 %v1961_v20, %v2135_v51 }
 0x313   : > { %v2138_v56 = vrot.slane %v1965_v50, 1  ;;  %v1903_v57 = vadd.f32 %v6985_v1, %v1732_v53  ;;  %v1734_v58 = vpop.f32.mrb[49].mxu0  ;;  %v2281_v59 = vmax.f32 %v1962_v22, %v2137_v54 }
 0x314   : > { %v2140_v60 = vrot.slane %v1966_v52, 1  ;;  %v1904_v61 = vadd.f32 %v6989_v46, %v1734_v58  ;;  %v5407_v62 = vpack.c.bf16 %v2280_v55, %v2278_v39 }
 0x315   : > { %v1967_v63 = vmax.f32 %v1903_v57, 0.0  ;;  %v5405_v2 = vpack.c.bf16 %v2281_v59, %v2279_v47  ;;  %v2139_v3 = vsel %vm2047_vm7, %v2134_v40, %v2138_v56 }
 0x316   : > { %v1968_v4 = vmax.f32 %v1904_v61, 0.0  ;;  %v1738_v5 = vpop.f32.mrb[50].mxu0  ;;  %v2141_v6 = vsel %vm2047_vm7, %v2136_v48, %v2140_v60  ;;  %v2282_v7 = vmax.f32 %v1963_v33, %v2139_v3 }
 0x317   : > { %v2142_v8 = vrot.slane %v1967_v63, 1  ;;  %v1905_v9 = vadd.f32 %v6985_v1, %v1738_v5  ;;  %v1740_v10 = vpop.f32.mrb[51].mxu0  ;;  %5406 = vmatprep.subr.bf16.mxu1 %v5405_v2  ;;  %v2283_v11 = vmax.f32 %v1964_v36, %v2141_v6 }
 0x318   : > { %v2144_v12 = vrot.slane %v1968_v4, 1  ;;  %v1906_v13 = vadd.f32 %v6989_v46, %v1740_v10  ;;  %5408 = vmatpush1.bf16.msra.mxu1 %v5407_v62 }
 0x319   : > { %v1969_v14 = vmax.f32 %v1905_v9, 0.0  ;;  %v2143_v15 = vsel %vm2047_vm7, %v2138_v56, %v2142_v8 }
 0x31a   : > { %v1970_v16 = vmax.f32 %v1906_v13, 0.0  ;;  %v1744_v17 = vpop.f32.mrb[52].mxu0  ;;  %v2145_v18 = vsel %vm2047_vm7, %v2140_v60, %v2144_v12  ;;  %v2284_v19 = vmax.f32 %v1965_v50, %v2143_v15 }
 0x31b   : > { %v2146_v20 = vrot.slane %v1969_v14, 1  ;;  %v1907_v21 = vadd.f32 %v6985_v1, %v1744_v17  ;;  %v1746_v22 = vpop.f32.mrb[53].mxu0  ;;  %v2285_v23 = vmax.f32 %v1966_v52, %v2145_v18 }
 0x31c   : > { %v2148_v24 = vrot.slane %v1970_v16, 1  ;;  %v1908_v25 = vadd.f32 %v6989_v46, %v1746_v22  ;;  %v5411_v26 = vpack.c.bf16 %v2284_v19, %v2282_v7 }
 0x31d   : > { %v1971_v27 = vmax.f32 %v1907_v21, 0.0  ;;  %v5409_v28 = vpack.c.bf16 %v2285_v23, %v2283_v11  ;;  %v2147_v29 = vsel %vm2047_vm7, %v2142_v8, %v2146_v20 }
 0x31e   : > { %v1972_v30 = vmax.f32 %v1908_v25, 0.0  ;;  %v1750_v31 = vpop.f32.mrb[54].mxu0  ;;  %v2149_v32 = vsel %vm2047_vm7, %v2144_v12, %v2148_v24  ;;  %v2286_v33 = vmax.f32 %v1967_v63, %v2147_v29 }
 0x31f   : > { %v2150_v34 = vrot.slane %v1971_v27, 1  ;;  %v1909_v35 = vadd.f32 %v6985_v1, %v1750_v31  ;;  %v1752_v36 = vpop.f32.mrb[55].mxu0  ;;  %5410 = vmatprep.subr.bf16.mxu1 %v5409_v28  ;;  %v2287_v37 = vmax.f32 %v1968_v4, %v2149_v32 }
 0x320   : > { %v2152_v38 = vrot.slane %v1972_v30, 1  ;;  %v1910_v39 = vadd.f32 %v6989_v46, %v1752_v36  ;;  %5412 = vmatpush1.bf16.msra.mxu1 %v5411_v26 }
 0x321   : > { %v1973_v40 = vmax.f32 %v1909_v35, 0.0  ;;  %v2151_v41 = vsel %vm2047_vm7, %v2146_v20, %v2150_v34 }
 0x322   : > { %v1974_v44 = vmax.f32 %v1910_v39, 0.0  ;;  %v1756_v47 = vpop.f32.mrb[56].mxu0  ;;  %v2153_v48 = vsel %vm2047_vm7, %v2148_v24, %v2152_v38  ;;  %v2288_v49 = vmax.f32 %v1969_v14, %v2151_v41 }
 0x323   : > { %v2154_v50 = vrot.slane %v1973_v40, 1  ;;  %v1911_v51 = vadd.f32 %v6985_v1, %v1756_v47  ;;  %v1758_v52 = vpop.f32.mrb[57].mxu0  ;;  %v2289_v53 = vmax.f32 %v1970_v16, %v2153_v48 }
 0x324   : > { %v2156_v54 = vrot.slane %v1974_v44, 1  ;;  %v1912_v55 = vadd.f32 %v6989_v46, %v1758_v52  ;;  %v5415_v56 = vpack.c.bf16 %v2288_v49, %v2286_v33 }
 0x325   : > { %v1975_v57 = vmax.f32 %v1911_v51, 0.0  ;;  %v5413_v58 = vpack.c.bf16 %v2289_v53, %v2287_v37  ;;  %v2155_v59 = vsel %vm2047_vm7, %v2150_v34, %v2154_v50  ;;  %v3964_v53 = vld [vmem:[#allocation12 + $0x20] sm:$0xff] }
 0x326   : > { %v1976_v60 = vmax.f32 %v1912_v55, 0.0  ;;  %v1762_v61 = vpop.f32.mrb[58].mxu0  ;;  %v2157_v62 = vsel %vm2047_vm7, %v2152_v38, %v2156_v54  ;;  %v2290_v63 = vmax.f32 %v1971_v27, %v2155_v59  ;;  %v2302_v55 = vld [vmem:[#allocation6] sm:$0xff] }
 0x327   : > { %v2158_v2 = vrot.slane %v1975_v57, 1  ;;  %v1913_v3 = vadd.f32 %v6985_v1, %v1762_v61  ;;  %v1764_v4 = vpop.f32.mrb[59].mxu0  ;;  %5414 = vmatprep.subr.bf16.mxu1 %v5413_v58  ;;  %v2291_v5 = vmax.f32 %v1972_v30, %v2157_v62  ;;  %v2307_v58 = vld [vmem:[#allocation6 + $0x28] sm:$0xff]  ;;  %v2306_v59 = vld [vmem:[#allocation6 + $0x20] sm:$0xff]  ;;  %v2308_v61 = vld [vmem:[#allocation6 + $0x30] sm:$0xff] }
 0x328   : > { %v2160_v6 = vrot.slane %v1976_v60, 1  ;;  %v1914_v7 = vadd.f32 %v6989_v46, %v1764_v4  ;;  %5416 = vmatpush1.bf16.msra.mxu1 %v5415_v56  ;;  %v2305_v56 = vld [vmem:[#allocation6 + $0x18] sm:$0xff]  ;;  %v2311_v62 = vld [vmem:[#allocation6 + $0x48] sm:$0xff] }
 0x329   : > { %v1977_v8 = vmax.f32 %v1913_v3, 0.0  ;;  %v2159_v9 = vsel %vm2047_vm7, %v2154_v50, %v2158_v2  ;;  %v2312_v3 = vld [vmem:[#allocation6 + $0x50] sm:$0xff]  ;;  %v2315_v4 = vld [vmem:[#allocation6 + $0x68] sm:$0xff] }
 0x32a   : > { %v1978_v10 = vmax.f32 %v1914_v7, 0.0  ;;  %v1768_v11 = vpop.f32.mrb[60].mxu0  ;;  %v2161_v12 = vsel %vm2047_vm7, %v2156_v54, %v2160_v6  ;;  %v2292_v13 = vmax.f32 %v1973_v40, %v2159_v9  ;;  %v2316_v7 = vld [vmem:[#allocation6 + $0x70] sm:$0xff]  ;;  %v2318_v9 = vld [vmem:[#allocation6 + $0x80] sm:$0xff] }
 0x32b   : > { %v2162_v14 = vrot.slane %v1977_v8, 1  ;;  %v1915_v15 = vadd.f32 %v6985_v1, %v1768_v11  ;;  %v1770_v16 = vpop.f32.mrb[61].mxu0  ;;  %v2293_v17 = vmax.f32 %v1974_v44, %v2161_v12  ;;  %v2320_v11 = vld [vmem:[#allocation6 + $0x90] sm:$0xff]  ;;  %v2323_v12 = vld [vmem:[#allocation6 + $0xa8] sm:$0xff] }
 0x32c   : > { %v2164_v18 = vrot.slane %v1978_v10, 1  ;;  %v1916_v19 = vadd.f32 %v6989_v46, %v1770_v16  ;;  %v5419_v20 = vpack.c.bf16 %v2292_v13, %v2290_v63  ;;  %v2310_v63 = vld [vmem:[#allocation6 + $0x40] sm:$0xff]  ;;  %v2327_v16 = vld [vmem:[#allocation6 + $0xc8] sm:$0xff] }
 0x32d   : > { %v1979_v21 = vmax.f32 %v1915_v15, 0.0  ;;  %v5417_v22 = vpack.c.bf16 %v2293_v17, %v2291_v5  ;;  %v2163_v23 = vsel %vm2047_vm7, %v2158_v2, %v2162_v14  ;;  %v2313_v2 = vld [vmem:[#allocation6 + $0x58] sm:$0xff]  ;;  %v2314_v5 = vld [vmem:[#allocation6 + $0x60] sm:$0xff]  ;;  %v2324_v15 = vld [vmem:[#allocation6 + $0xb0] sm:$0xff] }
 0x32e   : > { %v1980_v24 = vmax.f32 %v1916_v19, 0.0  ;;  %v1774_v25 = vpop.f32.mrb[62].mxu0  ;;  %v2165_v26 = vsel %vm2047_vm7, %v2160_v6, %v2164_v18  ;;  %v2294_v27 = vmax.f32 %v1975_v57, %v2163_v23  ;;  %v2304_v57 = vld [vmem:[#allocation6 + $0x10] sm:$0xff]  ;;  %v2317_v6 = vld [vmem:[#allocation6 + $0x78] sm:$0xff]  ;;  %v2322_v13 = vld [vmem:[#allocation6 + $0xa0] sm:$0xff] }
 0x32f   : > { %v2166_v28 = vrot.slane %v1979_v21, 1  ;;  %v1917_v29 = vadd.f32 %v6985_v1, %v1774_v25  ;;  %v1776_v30 = vpop.f32.mrb[63].mxu0  ;;  %5418 = vmatprep.subr.bf16.mxu1 %v5417_v22  ;;  %v2295_v31 = vmax.f32 %v1976_v60, %v2165_v26  ;;  %v2309_v60 = vld [vmem:[#allocation6 + $0x38] sm:$0xff]  ;;  %v2326_v17 = vld [vmem:[#allocation6 + $0xc0] sm:$0xff]  ;;  %v2328_v19 = vld [vmem:[#allocation6 + $0xd0] sm:$0xff] }
 0x330   : > { %v2168_v32 = vrot.slane %v1980_v24, 1  ;;  %v1918_v33 = vadd.f32 %v6989_v46, %v1776_v30  ;;  %5420 = vmatpush1.bf16.msra.mxu1 %v5419_v20  ;;  %v2331_v20 = vld [vmem:[#allocation6 + $0xe8] sm:$0xff]  ;;  %v2333_v22 = vld [vmem:[#allocation6 + $0xf8] sm:$0xff]  ;;  %v2332_v23 = vld [vmem:[#allocation6 + $0xf0] sm:$0xff] }
 0x331   : > { %v1981_v34 = vmax.f32 %v1917_v29, 0.0  ;;  %v2167_v35 = vsel %vm2047_vm7, %v2162_v14, %v2166_v28  ;;  %v2325_v14 = vld [vmem:[#allocation6 + $0xb8] sm:$0xff]  ;;  %v2729_v25 = vld [vmem:[#allocation8 + $0x8] sm:$0xff]  ;;  %v2730_v26 = vld [vmem:[#allocation8 + $0x10] sm:$0xff] }
 0x332   : > { %v1982_v36 = vmax.f32 %v1918_v33, 0.0  ;;  %v2169_v37 = vsel %vm2047_vm7, %v2164_v18, %v2168_v32  ;;  %v2296_v38 = vmax.f32 %v1977_v8, %v2167_v35  ;;  %v2319_v8 = vld [vmem:[#allocation6 + $0x88] sm:$0xff]  ;;  %v2329_v18 = vld [vmem:[#allocation6 + $0xd8] sm:$0xff] }
 0x333   : > { %v2170_v39 = vrot.slane %v1981_v34, 1  ;;  %v2297_v40 = vmax.f32 %v1978_v10, %v2169_v37  ;;  %v2321_v10 = vld [vmem:[#allocation6 + $0x98] sm:$0xff]  ;;  %v2736_v37 = vld [vmem:[#allocation8 + $0x40] sm:$0xff] }
 0x334   : > { %v2172_v41 = vrot.slane %v1982_v36, 1  ;;  %v5423_v44 = vpack.c.bf16 %v2296_v38, %v2294_v27  ;;  %v6347_v27 = vmov 0.0|0.0   ;;  %v2731_v29 = vld [vmem:[#allocation8 + $0x18] sm:$0xff]  ;;  %v2737_v38 = vld [vmem:[#allocation8 + $0x48] sm:$0xff] }
 0x335   : > { %v2171_v1 = vsel %vm2047_vm7, %v2166_v28, %v2170_v39  ;;  %v2300_v47 = vmax.f32 %v1981_v34, %v2170_v39  ;;  %v5421_v48 = vpack.c.bf16 %v2297_v40, %v2295_v31  ;;  %5588 = vmatprep.subr.bf16.mxu0 %v6347_v27  ;;  %v5435_v30 = vpack.c.bf16 %v2731_v29, %v2730_v26  ;;  %v2732_v31 = vld [vmem:[#allocation8 + $0x20] sm:$0xff]  ;;  %v2734_v34 = vld [vmem:[#allocation8 + $0x30] sm:$0xff]  ;;  %v2735_v35 = vld [vmem:[#allocation8 + $0x38] sm:$0xff] }
 0x336   : > { %v2298_v49 = vmax.f32 %v1979_v21, %v2171_v1  ;;  %v2173_v46 = vsel %vm2047_vm7, %v2168_v32, %v2172_v41  ;;  %v2301_v50 = vmax.f32 %v1982_v36, %v2172_v41  ;;  %v2330_v21 = vld [vmem:[#allocation6 + $0xe0] sm:$0xff]  ;;  %v2733_v32 = vld [vmem:[#allocation8 + $0x28] sm:$0xff]  ;;  %v5441_v36 = vpack.c.bf16 %v2735_v35, %v2734_v34  ;;  %v2738_v40 = vld [vmem:[#allocation8 + $0x50] sm:$0xff] }
 0x337   : > { %v2299_v51 = vmax.f32 %v1980_v24, %v2173_v46  ;;  %5422 = vmatprep.subr.bf16.mxu1 %v5421_v48  ;;  %v2728_v24 = vld [vmem:[#allocation8] sm:$0xff]  ;;  %v5438_v33 = vpack.c.bf16 %v2733_v32, %v2732_v31  ;;  %v5444_v39 = vpack.c.bf16 %v2737_v38, %v2736_v37  ;;  %v2739_v41 = vld [vmem:[#allocation8 + $0x58] sm:$0xff] }
 0x338   : > { %v5428_v52 = vpack.c.bf16 %v2300_v47, %v2298_v49  ;;  %5424 = vmatpush1.bf16.msra.mxu1 %v5423_v44  ;;  %v5432_v28 = vpack.c.bf16 %v2729_v25, %v2728_v24  ;;  %v5447_v44 = vpack.c.bf16 %v2739_v41, %v2738_v40  ;;  %v2740_v1 = vld [vmem:[#allocation8 + $0x60] sm:$0xff]  ;;  %v2741_v47 = vld [vmem:[#allocation8 + $0x68] sm:$0xff]  ;;  %v2742_v49 = vld [vmem:[#allocation8 + $0x70] sm:$0xff] }
 0x339   : > { %v5425_v54 = vpack.c.bf16 %v2301_v50, %v2299_v51  ;;  %v5450_v48 = vpack.c.bf16 %v2741_v47, %v2740_v1  ;;  %v2743_v46 = vld [vmem:[#allocation8 + $0x78] sm:$0xff]  ;;  %v2744_v51 = vld [vmem:[#allocation8 + $0x80] sm:$0xff]  ;;  %v2980_v47 = vld [vmem:[#allocation9 + $0xf0] sm:$0xff] }
 0x33a   : > { %v5453_v50 = vpack.c.bf16 %v2743_v46, %v2742_v49  ;;  %v2979_v35 = vld [vmem:[#allocation9 + $0xe8] sm:$0xff]  ;;  %v2978_v1 = vld [vmem:[#allocation9 + $0xe0] sm:$0xff]  ;;  %v2985_v49 = vld [vmem:[#allocation9 + $0x118] sm:$0xff] }
 0x33b   : > { %5427 = vmatprep.subr.msk.bf16.mxu1 %vm7119_vm10, %v5425_v54 }
 0x33c   : > { %5430 = vmatpush1.bf16.msk.msra.mxu1 %vm7119_vm10, %v5428_v52  ;;  %v2745_v52 = vld [vmem:[#allocation8 + $0x88] sm:$0xff] }
 0x33d   : > { %5431 = vmatprep.subr.bf16.mxu1 %v6347_v27  ;;  %v5456_v54 = vpack.c.bf16 %v2745_v52, %v2744_v51 }
 0x33f   : > { %2455 = vmatmul.mubr.f32.vlgmr.msra.gmra.mrb[0].mxu1 %v2302_v55  ;;  %v2746_v55 = vld [vmem:[#allocation8 + $0x90] sm:$0xff] }
 0x340   : > { %5136 = vmatprep.mubr.msk.f32.mxu1 %vm2334_vm8, %v2305_v56  ;;  %5433 = vmatpush1.bf16.msra.mxu1 %v5432_v28  ;;  %v2747_v56 = vld [vmem:[#allocation8 + $0x98] sm:$0xff] }
 0x341   : > { %5434 = vmatprep.subr.bf16.mxu1 %v6347_v27 }
 0x343   : > { %2461 = vmatmul.mubr.f32.gmra.mrb[2].mxu1 %v2304_v57  ;;  %v5459_v57 = vpack.c.bf16 %v2747_v56, %v2746_v55 }
 0x344   : > { %5137 = vmatprep.mubr.msk.f32.mxu1 %vm2334_vm8, %v2307_v58  ;;  %5436 = vmatpush1.bf16.msra.mxu1 %v5435_v30  ;;  %v2748_v58 = vld [vmem:[#allocation8 + $0xa0] sm:$0xff] }
 0x345   : > { %5437 = vmatprep.subr.bf16.mxu1 %v6347_v27 }
 0x347   : > { %2467 = vmatmul.mubr.f32.gmra.mrb[4].mxu1 %v2306_v59  ;;  %v2749_v59 = vld [vmem:[#allocation8 + $0xa8] sm:$0xff] }
 0x348   : > { %5138 = vmatprep.mubr.msk.f32.mxu1 %vm2334_vm8, %v2309_v60  ;;  %5439 = vmatpush1.bf16.msra.mxu1 %v5438_v33  ;;  %v5462_v60 = vpack.c.bf16 %v2749_v59, %v2748_v58  ;;  %v2984_v58 = vld [vmem:[#allocation9 + $0x110] sm:$0xff]  ;;  %v2987_v59 = vld [vmem:[#allocation9 + $0x128] sm:$0xff] }
 0x349   : > { %5440 = vmatprep.subr.bf16.mxu1 %v6347_v27 }
 0x34b   : > { %2473 = vmatmul.mubr.f32.gmra.mrb[6].mxu1 %v2308_v61  ;;  %v2750_v61 = vld [vmem:[#allocation8 + $0xb0] sm:$0xff] }
 0x34c   : > { %5139 = vmatprep.mubr.msk.f32.mxu1 %vm2334_vm8, %v2311_v62  ;;  %5442 = vmatpush1.bf16.msra.mxu1 %v5441_v36  ;;  %v2751_v62 = vld [vmem:[#allocation8 + $0xb8] sm:$0xff]  ;;  %v2981_v36 = vld [vmem:[#allocation9 + $0xf8] sm:$0xff] }
 0x34d   : > { %5443 = vmatprep.subr.bf16.mxu1 %v6347_v27  ;;  %v5470_v38 = vpack.c.bf16 %v2981_v36, %v2979_v35  ;;  %v2991_v35 = vld [vmem:[#allocation9 + $0x148] sm:$0xff]  ;;  %v2993_v36 = vld [vmem:[#allocation9 + $0x158] sm:$0xff] }
 0x34f   : > { %2479 = vmatmul.mubr.f32.gmra.mrb[8].mxu1 %v2310_v63  ;;  %v5465_v63 = vpack.c.bf16 %v2751_v62, %v2750_v61 }
 0x350   : > { %5140 = vmatprep.mubr.msk.f32.mxu1 %vm2334_vm8, %v2313_v2  ;;  %5445 = vmatpush1.bf16.msra.mxu1 %v5444_v39  ;;  %v2752_v2 = vld [vmem:[#allocation8 + $0xc0] sm:$0xff] }
 0x351   : > { %5446 = vmatprep.subr.bf16.mxu1 %v6347_v27 }
 0x353   : > { %2485 = vmatmul.mubr.f32.gmra.mrb[10].mxu1 %v2312_v3  ;;  %v2753_v3 = vld [vmem:[#allocation8 + $0xc8] sm:$0xff] }
 0x354   : > { %5141 = vmatprep.mubr.msk.f32.mxu1 %vm2334_vm8, %v2315_v4  ;;  %5448 = vmatpush1.bf16.msra.mxu1 %v5447_v44  ;;  %v5468_v4 = vpack.c.bf16 %v2753_v3, %v2752_v2 }
 0x355   : > { %5449 = vmatprep.subr.bf16.mxu1 %v6347_v27 }
 0x357   : > { %2491 = vmatmul.mubr.f32.gmra.mrb[12].mxu1 %v2314_v5  ;;  %v2754_v5 = vld [vmem:[#allocation8 + $0xd0] sm:$0xff] }
 0x358   : > { %5142 = vmatprep.mubr.msk.f32.mxu1 %vm2334_vm8, %v2317_v6  ;;  %5451 = vmatpush1.bf16.msra.mxu1 %v5450_v48  ;;  %v2983_v48 = vld [vmem:[#allocation9 + $0x108] sm:$0xff] }
 0x359   : > { %5452 = vmatprep.subr.bf16.mxu1 %v6347_v27  ;;  %v5474_v56 = vpack.c.bf16 %v2985_v49, %v2983_v48  ;;  %v2990_v49 = vld [vmem:[#allocation9 + $0x140] sm:$0xff] }
 0x35b   : > { %2497 = vmatmul.mubr.f32.gmra.mrb[14].mxu1 %v2316_v7 }
 0x35c   : > { %5143 = vmatprep.mubr.msk.f32.mxu1 %vm2334_vm8, %v2319_v8  ;;  %5454 = vmatpush1.bf16.msra.mxu1 %v5453_v50 }
 0x35d   : > { %5455 = vmatprep.subr.bf16.mxu1 %v6347_v27 }
 0x35f   : > { %2503 = vmatmul.mubr.f32.gmra.mrb[16].mxu1 %v2318_v9 }
 0x360   : > { %5144 = vmatprep.mubr.msk.f32.mxu1 %vm2334_vm8, %v2321_v10  ;;  %5457 = vmatpush1.bf16.msra.mxu1 %v5456_v54  ;;  %v5472_v54 = vpack.c.bf16 %v2980_v47, %v2978_v1 }
 0x361   : > { %5458 = vmatprep.subr.bf16.mxu1 %v6347_v27 }
 0x363   : > { %2509 = vmatmul.mubr.f32.gmra.mrb[18].mxu1 %v2320_v11 }
 0x364   : > { %5145 = vmatprep.mubr.msk.f32.mxu1 %vm2334_vm8, %v2323_v12  ;;  %5460 = vmatpush1.bf16.msra.mxu1 %v5459_v57  ;;  %v2982_v57 = vld [vmem:[#allocation9 + $0x100] sm:$0xff] }
 0x365   : > { %5461 = vmatprep.subr.bf16.mxu1 %v6347_v27  ;;  %v5476_v3 = vpack.c.bf16 %v2984_v58, %v2982_v57  ;;  %v2994_v58 = vld [vmem:[#allocation9 + $0x160] sm:$0xff] }
 0x367   : > { %2515 = vmatmul.mubr.f32.gmra.mrb[20].mxu1 %v2322_v13 }
 0x368   : > { %5146 = vmatprep.mubr.msk.f32.mxu1 %vm2334_vm8, %v2325_v14  ;;  %5463 = vmatpush1.bf16.msra.mxu1 %v5462_v60  ;;  %v2989_v60 = vld [vmem:[#allocation9 + $0x138] sm:$0xff] }
 0x369   : > { %5464 = vmatprep.subr.bf16.mxu1 %v6347_v27 }
 0x36b   : > { %2521 = vmatmul.mubr.f32.gmra.mrb[22].mxu1 %v2324_v15 }
 0x36c   : > { %5147 = vmatprep.mubr.msk.f32.mxu1 %vm2334_vm8, %v2327_v16  ;;  %5466 = vmatpush1.bf16.msra.mxu1 %v5465_v63 }
 0x36d   : > { %5467 = vmatprep.subr.bf16.mxu1 %v6347_v27 }
 0x36f   : > { %2527 = vmatmul.mubr.f32.gmra.mrb[24].mxu1 %v2326_v17 }
 0x370   : > { %5148 = vmatprep.mubr.msk.f32.mxu1 %vm2334_vm8, %v2329_v18  ;;  %5469 = vmatpush1.bf16.msra.mxu1 %v5468_v4 }
 0x371   : > { %2856 = vmatprep.subr.mxu1 %v6345_v0 }
 0x373   : > { %2533 = vmatmul.mubr.f32.gmra.mrb[26].mxu1 %v2328_v19 }
 0x374   : > { %5149 = vmatprep.mubr.msk.f32.mxu1 %vm2334_vm8, %v2331_v20  ;;  %2857 = vmatpush1.msra.mxu1 %v2754_v5  ;;  %v5478_v5 = vpack.c.bf16 %v2989_v60, %v2987_v59  ;;  %v2996_v59 = vld [vmem:[#allocation9 + $0x170] sm:$0xff]  ;;  %v2999_v60 = vld [vmem:[#allocation9 + $0x188] sm:$0xff] }
 0x375   : > { %5471 = vmatprep.subr.bf16.mxu1 %v5470_v38 }
 0x377   : > { %2539 = vmatmul.mubr.f32.gmra.mrb[28].mxu1 %v2330_v21 }
 0x378   : > { %5150 = vmatprep.mubr.msk.f32.mxu1 %vm2334_vm8, %v2333_v22 }
 0x37b   : > { %2545 = vmatmul.mubr.f32.gmra.mrb[30].mxu1 %v2332_v23 }
 0x412   : > { %v7157_v6 = vpop.f32.mrb[0].mxu1 }
 0x413   : > { %2583 = vrot.lane.b32.xlu0 %v7157_v6, %s6348_s12  ;;  %v7161_v7 = vpop.f32.mrb[1].mxu1 }
 0x416   : > { %v7163_v8 = vpop.f32.mrb[2].mxu1 }
 0x417   : > { %2585 = vrot.lane.b32.xlu0 %v7161_v7, %s6348_s12  ;;  %2587 = vrot.lane.b32.xlu1 %v7163_v8, %s6348_s12  ;;  %v7169_v9 = vpop.f32.mrb[3].mxu1 }
 0x41a   : > { %v7171_v10 = vpop.f32.mrb[4].mxu1 }
 0x41b   : > { %2589 = vrot.lane.b32.xlu1 %v7169_v9, %s6348_s12  ;;  %v7175_v11 = vpop.f32.mrb[5].mxu1  ;;  %2591 = vrot.lane.b32.xlu0 %v7171_v10, %s6348_s12 }
 0x41e   : > { %v7179_v12 = vpop.f32.mrb[6].mxu1 }
 0x41f   : > { %2593 = vrot.lane.b32.xlu1 %v7175_v11, %s6348_s12  ;;  %v7183_v13 = vpop.f32.mrb[7].mxu1  ;;  %2595 = vrot.lane.b32.xlu0 %v7179_v12, %s6348_s12 }
 0x422   : > { %v7187_v14 = vpop.f32.mrb[8].mxu1 }
 0x423   : > { %2597 = vrot.lane.b32.xlu1 %v7183_v13, %s6348_s12  ;;  %v7191_v15 = vpop.f32.mrb[9].mxu1  ;;  %2599 = vrot.lane.b32.xlu0 %v7187_v14, %s6348_s12 }
 0x426   : > { %v7195_v16 = vpop.f32.mrb[10].mxu1 }
 0x427   : > { %2601 = vrot.lane.b32.xlu1 %v7191_v15, %s6348_s12  ;;  %v7199_v17 = vpop.f32.mrb[11].mxu1  ;;  %2603 = vrot.lane.b32.xlu0 %v7195_v16, %s6348_s12 }
 0x42a   : > { %v7203_v18 = vpop.f32.mrb[12].mxu1 }
 0x42b   : > { %2605 = vrot.lane.b32.xlu1 %v7199_v17, %s6348_s12  ;;  %v7207_v19 = vpop.f32.mrb[13].mxu1  ;;  %2607 = vrot.lane.b32.xlu0 %v7203_v18, %s6348_s12 }
 0x42e   : > { %v7211_v20 = vpop.f32.mrb[14].mxu1 }
 0x42f   : > { %2609 = vrot.lane.b32.xlu1 %v7207_v19, %s6348_s12  ;;  %v7215_v21 = vpop.f32.mrb[15].mxu1  ;;  %2611 = vrot.lane.b32.xlu0 %v7211_v20, %s6348_s12 }
 0x432   : > { %v7219_v22 = vpop.f32.mrb[16].mxu1 }
 0x433   : > { %2613 = vrot.lane.b32.xlu1 %v7215_v21, %s6348_s12  ;;  %v7223_v23 = vpop.f32.mrb[17].mxu1  ;;  %2615 = vrot.lane.b32.xlu0 %v7219_v22, %s6348_s12 }
 0x436   : > { %v7227_v24 = vpop.f32.mrb[18].mxu1 }
 0x437   : > { %2617 = vrot.lane.b32.xlu1 %v7223_v23, %s6348_s12  ;;  %v7231_v25 = vpop.f32.mrb[19].mxu1  ;;  %2619 = vrot.lane.b32.xlu0 %v7227_v24, %s6348_s12 }
 0x43a   : > { %v7235_v26 = vpop.f32.mrb[20].mxu1 }
 0x43b   : > { %2621 = vrot.lane.b32.xlu1 %v7231_v25, %s6348_s12  ;;  %v7239_v28 = vpop.f32.mrb[21].mxu1  ;;  %2623 = vrot.lane.b32.xlu0 %v7235_v26, %s6348_s12 }
 0x43e   : > { %v7243_v29 = vpop.f32.mrb[22].mxu1 }
 0x43f   : > { %2625 = vrot.lane.b32.xlu1 %v7239_v28, %s6348_s12  ;;  %v7247_v30 = vpop.f32.mrb[23].mxu1  ;;  %2627 = vrot.lane.b32.xlu0 %v7243_v29, %s6348_s12 }
 0x442   : > { %v7251_v31 = vpop.f32.mrb[24].mxu1 }
 0x443   : > { %2629 = vrot.lane.b32.xlu1 %v7247_v30, %s6348_s12  ;;  %v7255_v32 = vpop.f32.mrb[25].mxu1  ;;  %2631 = vrot.lane.b32.xlu0 %v7251_v31, %s6348_s12 }
 0x446   : > { %v7259_v33 = vpop.f32.mrb[26].mxu1 }
 0x447   : > { %2633 = vrot.lane.b32.xlu1 %v7255_v32, %s6348_s12  ;;  %v7263_v34 = vpop.f32.mrb[27].mxu1  ;;  %2635 = vrot.lane.b32.xlu0 %v7259_v33, %s6348_s12 }
 0x44a   : > { %v7267_v37 = vpop.f32.mrb[28].mxu1 }
 0x44b   : > { %2637 = vrot.lane.b32.xlu1 %v7263_v34, %s6348_s12  ;;  %v7271_v39 = vpop.f32.mrb[29].mxu1  ;;  %2639 = vrot.lane.b32.xlu0 %v7267_v37, %s6348_s12 }
 0x44e   : > { %v7275_v40 = vpop.f32.mrb[30].mxu1 }
 0x44f   : > { %2641 = vrot.lane.b32.xlu1 %v7271_v39, %s6348_s12  ;;  %v7279_v41 = vpop.f32.mrb[31].mxu1  ;;  %2643 = vrot.lane.b32.xlu0 %v7275_v40, %s6348_s12 }
 0x453   : > { %2645 = vrot.lane.b32.xlu1 %v7279_v41, %s6348_s12 }
 0x485   : > { %v2584_v44 = vpop.permute.xlu0 %2583 }
 0x489   : > { %v2586_v46 = vpop.permute.xlu0 %2585  ;;  %v2588_v50 = vpop.permute.xlu1 %2587 }
 0x48a   : > { %v2648_v51 = vsel %vm2647_vm11, %v2584_v44, %v2586_v46  ;;  %v2697_v52 = vmax.f32 %v7161_v7, %v2586_v46  ;;  %v2988_v7 = vld [vmem:[#allocation9 + $0x130] sm:$0xff] }
 0x48b   : > { %v2696_v55 = vmax.f32 %v7157_v6, %v2648_v51  ;;  %v2986_v6 = vld [vmem:[#allocation9 + $0x120] sm:$0xff]  ;;  %v2992_v46 = vld [vmem:[#allocation9 + $0x150] sm:$0xff]  ;;  %v2997_v51 = vld [vmem:[#allocation9 + $0x178] sm:$0xff] }
 0x48c   : > { %5151 = vmatprep.mubr.msk.f32.mxu1 %vm2755_vm12, %v2697_v52 }
 0x48d   : > { %2869 = vmatmul.mubr.f32.vlgmr.msra.gmra.mrb[32].mxu1 %v2696_v55  ;;  %v2590_v61 = vpop.permute.xlu1 %2589  ;;  %v2592_v62 = vpop.permute.xlu0 %2591 }
 0x48e   : > { %v2649_v63 = vsel %vm2647_vm11, %v2588_v50, %v2590_v61  ;;  %v2699_v2 = vmax.f32 %v7169_v9, %v2590_v61  ;;  %5473 = vmatpush1.bf16.msra.mxu1 %v5472_v54  ;;  %v5480_v9 = vpack.c.bf16 %v2988_v7, %v2986_v6  ;;  %v2995_v50 = vld [vmem:[#allocation9 + $0x168] sm:$0xff]  ;;  %v3001_v61 = vld [vmem:[#allocation9 + $0x198] sm:$0xff]  ;;  %v3000_v6 = vld [vmem:[#allocation9 + $0x190] sm:$0xff] }
 0x48f   : > { %v2698_v4 = vmax.f32 %v7163_v8, %v2649_v63  ;;  %5475 = vmatprep.subr.bf16.mxu1 %v5474_v56  ;;  %v5482_v8 = vpack.c.bf16 %v2993_v36, %v2991_v35 }
 0x490   : > { %5152 = vmatprep.mubr.msk.f32.mxu1 %vm2755_vm12, %v2699_v2 }
 0x491   : > { %2874 = vmatmul.mubr.f32.gmra.mrb[34].mxu1 %v2698_v4  ;;  %v2594_v38 = vpop.permute.xlu1 %2593  ;;  %v2596_v44 = vpop.permute.xlu0 %2595 }
 0x492   : > { %v2650_v1 = vsel %vm2647_vm11, %v2592_v62, %v2594_v38  ;;  %v2701_v47 = vmax.f32 %v7175_v11, %v2594_v38  ;;  %5477 = vmatpush1.bf16.msra.mxu1 %v5476_v3  ;;  %v5484_v11 = vpack.c.bf16 %v2992_v46, %v2990_v49 }
 0x493   : > { %v2700_v48 = vmax.f32 %v7171_v10, %v2650_v1  ;;  %5479 = vmatprep.subr.bf16.mxu1 %v5478_v5  ;;  %v5486_v10 = vpack.c.bf16 %v2997_v51, %v2995_v50  ;;  %v2998_v5 = vld [vmem:[#allocation9 + $0x180] sm:$0xff] }
 0x494   : > { %5153 = vmatprep.mubr.msk.f32.mxu1 %vm2755_vm12, %v2701_v47 }
 0x495   : > { %2879 = vmatmul.mubr.f32.gmra.mrb[36].mxu1 %v2700_v48  ;;  %v2598_v52 = vpop.permute.xlu1 %2597  ;;  %v2600_v54 = vpop.permute.xlu0 %2599 }
 0x496   : > { %v2651_v55 = vsel %vm2647_vm11, %v2596_v44, %v2598_v52  ;;  %v2703_v56 = vmax.f32 %v7183_v13, %v2598_v52  ;;  %5481 = vmatpush1.bf16.msra.mxu1 %v5480_v9  ;;  %v5488_v13 = vpack.c.bf16 %v2996_v59, %v2994_v58  ;;  %v5492_v44 = vpack.c.bf16 %v3000_v6, %v2998_v5 }
 0x497   : > { %v2702_v57 = vmax.f32 %v7179_v12, %v2651_v55  ;;  %5483 = vmatprep.subr.bf16.mxu1 %v5482_v8  ;;  %v5490_v12 = vpack.c.bf16 %v3001_v61, %v2999_v60 }
 0x498   : > { %5154 = vmatprep.mubr.msk.f32.mxu1 %vm2755_vm12, %v2703_v56 }
 0x499   : > { %2884 = vmatmul.mubr.f32.gmra.mrb[38].mxu1 %v2702_v57  ;;  %v2602_v62 = vpop.permute.xlu1 %2601  ;;  %v2604_v63 = vpop.permute.xlu0 %2603 }
 0x49a   : > { %v2652_v2 = vsel %vm2647_vm11, %v2600_v54, %v2602_v62  ;;  %v2705_v3 = vmax.f32 %v7191_v15, %v2602_v62  ;;  %5485 = vmatpush1.bf16.msra.mxu1 %v5484_v11 }
 0x49b   : > { %v2704_v4 = vmax.f32 %v7187_v14, %v2652_v2  ;;  %5487 = vmatprep.subr.bf16.mxu1 %v5486_v10 }
 0x49c   : > { %5155 = vmatprep.mubr.msk.f32.mxu1 %vm2755_vm12, %v2705_v3 }
 0x49d   : > { %2889 = vmatmul.mubr.f32.gmra.mrb[40].mxu1 %v2704_v4  ;;  %v2606_v7 = vpop.permute.xlu1 %2605  ;;  %v2608_v35 = vpop.permute.xlu0 %2607 }
 0x49e   : > { %v2653_v36 = vsel %vm2647_vm11, %v2604_v63, %v2606_v7  ;;  %v2707_v38 = vmax.f32 %v7199_v17, %v2606_v7  ;;  %5489 = vmatpush1.bf16.msra.mxu1 %v5488_v13 }
 0x49f   : > { %v2706_v15 = vmax.f32 %v7195_v16, %v2653_v36  ;;  %5491 = vmatprep.subr.bf16.mxu1 %v5490_v12 }
 0x4a0   : > { %5156 = vmatprep.mubr.msk.f32.mxu1 %vm2755_vm12, %v2707_v38  ;;  %v3004_v38 = vld [vmem:[#allocation9 + $0x1b0] sm:$0xff] }
 0x4a1   : > { %2894 = vmatmul.mubr.f32.gmra.mrb[42].mxu1 %v2706_v15  ;;  %v2610_v14 = vpop.permute.xlu1 %2609  ;;  %v2612_v1 = vpop.permute.xlu0 %2611  ;;  %v2950_v15 = vld [vmem:[#allocation9 + $0x8] sm:$0xff] }
 0x4a2   : > { %v2654_v47 = vsel %vm2647_vm11, %v2608_v35, %v2610_v14  ;;  %v2709_v9 = vmax.f32 %v7207_v19, %v2610_v14  ;;  %5493 = vmatpush1.bf16.msra.mxu1 %v5492_v44  ;;  %v3003_v35 = vld [vmem:[#allocation9 + $0x1a8] sm:$0xff]  ;;  %v2952_v14 = vld [vmem:[#allocation9 + $0x18] sm:$0xff] }
 0x4a3   : > { %v2708_v48 = vmax.f32 %v7203_v18, %v2654_v47  ;;  %v2949_v47 = vld [vmem:[#allocation9] sm:$0xff] }
 0x4a4   : > { %5157 = vmatprep.mubr.msk.f32.mxu1 %vm2755_vm12, %v2709_v9  ;;  %v2951_v9 = vld [vmem:[#allocation9 + $0x10] sm:$0xff] }
 0x4a5   : > { %2899 = vmatmul.mubr.f32.gmra.mrb[44].mxu1 %v2708_v48  ;;  %v2614_v17 = vpop.permute.xlu1 %2613  ;;  %v2616_v8 = vpop.permute.xlu0 %2615  ;;  %v2954_v48 = vld [vmem:[#allocation9 + $0x28] sm:$0xff] }
 0x4a6   : > { %v2655_v16 = vsel %vm2647_vm11, %v2612_v1, %v2614_v17  ;;  %v2711_v49 = vmax.f32 %v7215_v21, %v2614_v17  ;;  %v5498_v1 = vpack.c.bf16 %v2952_v14, %v2950_v15  ;;  %v2956_v17 = vld [vmem:[#allocation9 + $0x38] sm:$0xff] }
 0x4a7   : > { %v2710_v46 = vmax.f32 %v7211_v20, %v2655_v16  ;;  %v5500_v16 = vpack.c.bf16 %v2951_v9, %v2949_v47 }
 0x4a8   : > { %5158 = vmatprep.mubr.msk.f32.mxu1 %vm2755_vm12, %v2711_v49 }
 0x4a9   : > { %2904 = vmatmul.mubr.f32.gmra.mrb[46].mxu1 %v2710_v46  ;;  %v2618_v50 = vpop.permute.xlu1 %2617  ;;  %v2620_v51 = vpop.permute.xlu0 %2619 }
 0x4aa   : > { %v2656_v19 = vsel %vm2647_vm11, %v2616_v8, %v2618_v50  ;;  %v2713_v18 = vmax.f32 %v7223_v23, %v2618_v50 }
 0x4ab   : > { %v2712_v52 = vmax.f32 %v7219_v22, %v2656_v19 }
 0x4ac   : > { %5159 = vmatprep.mubr.msk.f32.mxu1 %vm2755_vm12, %v2713_v18  ;;  %v5502_v18 = vpack.c.bf16 %v2956_v17, %v2954_v48  ;;  %v2969_v17 = vld [vmem:[#allocation9 + $0xa0] sm:$0xff] }
 0x4ad   : > { %2909 = vmatmul.mubr.f32.gmra.mrb[48].mxu1 %v2712_v52  ;;  %v2622_v54 = vpop.permute.xlu1 %2621  ;;  %v2624_v55 = vpop.permute.xlu0 %2623  ;;  %v2953_v52 = vld [vmem:[#allocation9 + $0x20] sm:$0xff] }
 0x4ae   : > { %v2657_v21 = vsel %vm2647_vm11, %v2620_v51, %v2622_v54  ;;  %v2715_v20 = vmax.f32 %v7231_v25, %v2622_v54  ;;  %v2955_v54 = vld [vmem:[#allocation9 + $0x30] sm:$0xff] }
 0x4af   : > { %v2714_v56 = vmax.f32 %v7227_v24, %v2657_v21 }
 0x4b0   : > { %5160 = vmatprep.mubr.msk.f32.mxu1 %vm2755_vm12, %v2715_v20  ;;  %v2958_v20 = vld [vmem:[#allocation9 + $0x48] sm:$0xff] }
 0x4b1   : > { %2914 = vmatmul.mubr.f32.gmra.mrb[50].mxu1 %v2714_v56  ;;  %v2626_v11 = vpop.permute.xlu1 %2625  ;;  %v2628_v57 = vpop.permute.xlu0 %2627  ;;  %v2960_v56 = vld [vmem:[#allocation9 + $0x58] sm:$0xff] }
 0x4b2   : > { %v2658_v23 = vsel %vm2647_vm11, %v2624_v55, %v2626_v11  ;;  %v2717_v22 = vmax.f32 %v7239_v28, %v2626_v11 }
 0x4b3   : > { %v2716_v10 = vmax.f32 %v7235_v26, %v2658_v23 }
 0x4b4   : > { %5161 = vmatprep.mubr.msk.f32.mxu1 %vm2755_vm12, %v2717_v22 }
 0x4b5   : > { %2919 = vmatmul.mubr.f32.gmra.mrb[52].mxu1 %v2716_v10  ;;  %v2630_v58 = vpop.permute.xlu1 %2629  ;;  %v2632_v59 = vpop.permute.xlu0 %2631  ;;  %v5504_v10 = vpack.c.bf16 %v2955_v54, %v2953_v52 }
 0x4b6   : > { %v2659_v25 = vsel %vm2647_vm11, %v2628_v57, %v2630_v58  ;;  %v2719_v24 = vmax.f32 %v7247_v30, %v2630_v58  ;;  %v5506_v58 = vpack.c.bf16 %v2960_v56, %v2958_v20  ;;  %v2973_v56 = vld [vmem:[#allocation9 + $0xc0] sm:$0xff] }
 0x4b7   : > { %v2718_v60 = vmax.f32 %v7243_v29, %v2659_v25  ;;  %v2959_v25 = vld [vmem:[#allocation9 + $0x50] sm:$0xff] }
 0x4b8   : > { %5162 = vmatprep.mubr.msk.f32.mxu1 %vm2755_vm12, %v2719_v24 }
 0x4b9   : > { %2924 = vmatmul.mubr.f32.gmra.mrb[54].mxu1 %v2718_v60  ;;  %v2634_v61 = vpop.permute.xlu1 %2633  ;;  %v2636_v62 = vpop.permute.xlu0 %2635  ;;  %v2962_v60 = vld [vmem:[#allocation9 + $0x68] sm:$0xff] }
 0x4ba   : > { %v2660_v28 = vsel %vm2647_vm11, %v2632_v59, %v2634_v61  ;;  %v2721_v26 = vmax.f32 %v7255_v32, %v2634_v61  ;;  %v2957_v59 = vld [vmem:[#allocation9 + $0x40] sm:$0xff]  ;;  %v2964_v61 = vld [vmem:[#allocation9 + $0x78] sm:$0xff] }
 0x4bb   : > { %v2720_v63 = vmax.f32 %v7251_v31, %v2660_v28 }
 0x4bc   : > { %5163 = vmatprep.mubr.msk.f32.mxu1 %vm2755_vm12, %v2721_v26 }
 0x4bd   : > { %2929 = vmatmul.mubr.f32.gmra.mrb[56].mxu1 %v2720_v63  ;;  %v2638_v2 = vpop.permute.xlu1 %2637  ;;  %v2640_v3 = vpop.permute.xlu0 %2639 }
 0x4be   : > { %v2661_v30 = vsel %vm2647_vm11, %v2636_v62, %v2638_v2  ;;  %v2723_v29 = vmax.f32 %v7263_v34, %v2638_v2 }
 0x4bf   : > { %v2722_v13 = vmax.f32 %v7259_v33, %v2661_v30  ;;  %v5510_v30 = vpack.c.bf16 %v2964_v61, %v2962_v60 }
 0x4c0   : > { %5164 = vmatprep.mubr.msk.f32.mxu1 %vm2755_vm12, %v2723_v29  ;;  %v2961_v29 = vld [vmem:[#allocation9 + $0x60] sm:$0xff] }
 0x4c1   : > { %2934 = vmatmul.mubr.f32.gmra.mrb[58].mxu1 %v2722_v13  ;;  %v2642_v4 = vpop.permute.xlu1 %2641  ;;  %v2644_v5 = vpop.permute.xlu0 %2643  ;;  %v2963_v13 = vld [vmem:[#allocation9 + $0x70] sm:$0xff] }
 0x4c2   : > { %v2662_v12 = vsel %vm2647_vm11, %v2640_v3, %v2642_v4  ;;  %v2725_v32 = vmax.f32 %v7271_v39, %v2642_v4  ;;  %v3005_v39 = vld [vmem:[#allocation9 + $0x1b8] sm:$0xff]  ;;  %v5508_v3 = vpack.c.bf16 %v2959_v25, %v2957_v59 }
 0x4c3   : > { %v2724_v31 = vmax.f32 %v7267_v37, %v2662_v12  ;;  %v5494_v36 = vpack.c.bf16 %v3005_v39, %v3003_v35  ;;  %v3002_v37 = vld [vmem:[#allocation9 + $0x1a0] sm:$0xff]  ;;  %v2966_v12 = vld [vmem:[#allocation9 + $0x88] sm:$0xff] }
 0x4c4   : > { %5165 = vmatprep.mubr.msk.f32.mxu1 %vm2755_vm12, %v2725_v32  ;;  %v5496_v44 = vpack.c.bf16 %v3004_v38, %v3002_v37  ;;  %v2968_v32 = vld [vmem:[#allocation9 + $0x98] sm:$0xff]  ;;  %v2965_v39 = vld [vmem:[#allocation9 + $0x80] sm:$0xff]  ;;  %v2970_v38 = vld [vmem:[#allocation9 + $0xa8] sm:$0xff] }
 0x4c5   : > { %2939 = vmatmul.mubr.f32.gmra.mrb[60].mxu1 %v2724_v31  ;;  %v2646_v6 = vpop.permute.xlu1 %2645  ;;  %5495 = vmatprep.subr.bf16.mxu1 %v5494_v36  ;;  %v5514_v35 = vpack.c.bf16 %v2968_v32, %v2966_v12  ;;  %v2967_v36 = vld [vmem:[#allocation9 + $0x90] sm:$0xff] }
 0x4c6   : > { %v2663_v7 = vsel %vm2647_vm11, %v2644_v5, %v2646_v6  ;;  %v2727_v34 = vmax.f32 %v7279_v41, %v2646_v6  ;;  %5497 = vmatpush1.bf16.msra.mxu1 %v5496_v44  ;;  %v2972_v44 = vld [vmem:[#allocation9 + $0xb8] sm:$0xff]  ;;  %v5516_v9 = vpack.c.bf16 %v2967_v36, %v2965_v39 }
 0x4c7   : > { %v2726_v33 = vmax.f32 %v7275_v40, %v2663_v7  ;;  %5499 = vmatprep.subr.bf16.mxu1 %v5498_v1  ;;  %v5518_v48 = vpack.c.bf16 %v2972_v44, %v2970_v38 }
 0x4c8   : > { %5166 = vmatprep.mubr.msk.f32.mxu1 %vm2755_vm12, %v2727_v34 }
 0x4c9   : > { %2944 = vmatmul.mubr.f32.gmra.mrb[62].mxu1 %v2726_v33  ;;  %v5512_v33 = vpack.c.bf16 %v2963_v13, %v2961_v29 }
 0x4ca   : > { %3150 = vmatprep.mubr.f32.mxu1 %v6345_v0 }
 0x560   : > { %v7350_v41 = vpop.f32.mrb[32].mxu1 }
 0x561   : > { %v2872_v40 = vpop.f32.mrb[33].mxu1  ;;  %v3022_v49 = vrot.slane %v7350_v41, 1  ;;  %v3470_v46 = vrot.slane %v7350_v41, 2 }
 0x564   : > { %v7352_v8 = vpop.f32.mrb[34].mxu1 }
 0x565   : > { %v3023_v50 = vrot.slane %v7352_v8, 1  ;;  %v3471_v51 = vrot.slane %v7352_v8, 2  ;;  %v2877_v19 = vpop.f32.mrb[35].mxu1 }
 0x567   : > { %v3024_v55 = vsel %vm2047_vm7, %v3022_v49, %v3023_v50  ;;  %v7360_v21 = vsel %vm3469_vm13, %v3470_v46, %v3471_v51  ;;  %v2974_v46 = vld [vmem:[#allocation9 + $0xc8] sm:$0xff] }
 0x568   : > { %v7362_v11 = vpop.f32.mrb[36].mxu1  ;;  %5167 = vmatmul.mubr.msk.f32.vlgmr.msra.gmra.mrb[64].mxu1 %vm3053_vm14, %v3024_v55 }
 0x569   : > { %v3025_v57 = vrot.slane %v7362_v11, 1  ;;  %v3473_v23 = vrot.slane %v7362_v11, 2  ;;  %v2882_v22 = vpop.f32.mrb[37].mxu1  ;;  %3156 = vmatprep.mubr.f32.mxu1 %v6345_v0  ;;  %5501 = vmatpush1.bf16.msra.mxu1 %v5500_v16  ;;  %v2971_v16 = vld [vmem:[#allocation9 + $0xb0] sm:$0xff] }
 0x56a   : > { %5503 = vmatprep.subr.bf16.mxu1 %v5502_v18  ;;  %v5520_v55 = vpack.c.bf16 %v2971_v16, %v2969_v17  ;;  %v3442_v22 = vld [vmem:[#allocation9 + $0x1c8] sm:$0xff] }
 0x56b   : > { %v3026_v24 = vsel %vm2047_vm7, %v3023_v50, %v3025_v57  ;;  %v7370_v62 = vsel %vm3469_vm13, %v3471_v51, %v3473_v23  ;;  %v2976_v50 = vld [vmem:[#allocation9 + $0xd8] sm:$0xff] }
 0x56c   : > { %v7372_v28 = vpop.f32.mrb[38].mxu1  ;;  %5168 = vmatmul.mubr.msk.f32.gmra.mrb[66].mxu1 %vm3053_vm14, %v3026_v24  ;;  %v5522_v20 = vpack.c.bf16 %v2976_v50, %v2974_v46 }
 0x56d   : > { %v3027_v26 = vrot.slane %v7372_v28, 1  ;;  %v3475_v63 = vrot.slane %v7372_v28, 2  ;;  %v2887_v2 = vpop.f32.mrb[39].mxu1  ;;  %3162 = vmatprep.mubr.f32.mxu1 %v6345_v0  ;;  %5505 = vmatpush1.bf16.msra.mxu1 %v5504_v10  ;;  %v3444_v10 = vld [vmem:[#allocation9 + $0x1d8] sm:$0xff] }
 0x56e   : > { %5507 = vmatprep.subr.bf16.mxu1 %v5506_v58 }
 0x56f   : > { %v3028_v4 = vsel %vm2047_vm7, %v3025_v57, %v3027_v26  ;;  %v7380_v31 = vsel %vm3469_vm13, %v3473_v23, %v3475_v63  ;;  %v2975_v57 = vld [vmem:[#allocation9 + $0xd0] sm:$0xff] }
 0x570   : > { %v7382_v5 = vpop.f32.mrb[40].mxu1  ;;  %5169 = vmatmul.mubr.msk.f32.gmra.mrb[68].mxu1 %vm3053_vm14, %v3028_v4  ;;  %v5524_v61 = vpack.c.bf16 %v2975_v57, %v2973_v56 }
 0x571   : > { %v3029_v6 = vrot.slane %v7382_v5, 1  ;;  %v3477_v7 = vrot.slane %v7382_v5, 2  ;;  %v2892_v34 = vpop.f32.mrb[41].mxu1  ;;  %3168 = vmatprep.mubr.f32.mxu1 %v6345_v0  ;;  %5509 = vmatpush1.bf16.msra.mxu1 %v5508_v3 }
 0x572   : > { %5511 = vmatprep.subr.bf16.mxu1 %v5510_v30 }
 0x573   : > { %v3030_v37 = vsel %vm2047_vm7, %v3027_v26, %v3029_v6  ;;  %v7390_v15 = vsel %vm3469_vm13, %v3475_v63, %v3477_v7  ;;  %v5526_v26 = vpack.c.bf16 %v3444_v10, %v3442_v22 }
 0x574   : > { %v7392_v14 = vpop.f32.mrb[42].mxu1  ;;  %5170 = vmatmul.mubr.msk.f32.gmra.mrb[70].mxu1 %vm3053_vm14, %v3030_v37 }
 0x575   : > { %v3031_v1 = vrot.slane %v7392_v14, 1  ;;  %v3479_v40 = vrot.slane %v7392_v14, 2  ;;  %v2897_v47 = vpop.f32.mrb[43].mxu1  ;;  %3174 = vmatprep.mubr.f32.mxu1 %v6345_v0  ;;  %5513 = vmatpush1.bf16.msra.mxu1 %v5512_v33 }
 0x576   : > { %5515 = vmatprep.subr.bf16.mxu1 %v5514_v35 }
 0x577   : > { %v3032_v49 = vsel %vm2047_vm7, %v3029_v6, %v3031_v1  ;;  %v7400_v51 = vsel %vm3469_vm13, %v3477_v7, %v3479_v40 }
 0x578   : > { %v7402_v19 = vpop.f32.mrb[44].mxu1  ;;  %5171 = vmatmul.mubr.msk.f32.gmra.mrb[72].mxu1 %vm3053_vm14, %v3032_v49 }
 0x579   : > { %v3033_v18 = vrot.slane %v7402_v19, 1  ;;  %v3481_v52 = vrot.slane %v7402_v19, 2  ;;  %v2902_v54 = vpop.f32.mrb[45].mxu1  ;;  %3180 = vmatprep.mubr.f32.mxu1 %v6345_v0  ;;  %5517 = vmatpush1.bf16.msra.mxu1 %v5516_v9 }
 0x57a   : > { %5519 = vmatprep.subr.bf16.mxu1 %v5518_v48 }
 0x57b   : > { %v3034_v23 = vsel %vm2047_vm7, %v3031_v1, %v3033_v18  ;;  %v7410_v58 = vsel %vm3469_vm13, %v3479_v40, %v3481_v52 }
 0x57c   : > { %v7412_v59 = vpop.f32.mrb[46].mxu1  ;;  %5172 = vmatmul.mubr.msk.f32.gmra.mrb[74].mxu1 %vm3053_vm14, %v3034_v23 }
 0x57d   : > { %v3035_v25 = vrot.slane %v7412_v59, 1  ;;  %v3483_v24 = vrot.slane %v7412_v59, 2  ;;  %v2907_v60 = vpop.f32.mrb[47].mxu1  ;;  %3186 = vmatprep.mubr.f32.mxu1 %v6345_v0  ;;  %5521 = vmatpush1.bf16.msra.mxu1 %v5520_v55 }
 0x57e   : > { %5523 = vmatprep.subr.bf16.mxu1 %v5522_v20 }
 0x57f   : > { %v3036_v63 = vsel %vm2047_vm7, %v3033_v18, %v3035_v25  ;;  %v7420_v2 = vsel %vm3469_vm13, %v3481_v52, %v3483_v24 }
 0x580   : > { %v7422_v3 = vpop.f32.mrb[48].mxu1  ;;  %5173 = vmatmul.mubr.msk.f32.gmra.mrb[76].mxu1 %vm3053_vm14, %v3036_v63 }
 0x581   : > { %v3037_v30 = vrot.slane %v7422_v3, 1  ;;  %v3485_v29 = vrot.slane %v7422_v3, 2  ;;  %v2912_v13 = vpop.f32.mrb[49].mxu1  ;;  %3192 = vmatprep.mubr.f32.mxu1 %v6345_v0  ;;  %5525 = vmatpush1.bf16.msra.mxu1 %v5524_v61 }
 0x582   : > { %5527 = vmatprep.subr.bf16.mxu1 %v5526_v26 }
 0x583   : > { %v3038_v4 = vsel %vm2047_vm7, %v3035_v25, %v3037_v30  ;;  %v7430_v12 = vsel %vm3469_vm13, %v3483_v24, %v3485_v29 }
 0x584   : > { %v7432_v32 = vpop.f32.mrb[50].mxu1  ;;  %5174 = vmatmul.mubr.msk.f32.gmra.mrb[78].mxu1 %vm3053_vm14, %v3038_v4 }
 0x585   : > { %v3039_v6 = vrot.slane %v7432_v32, 1  ;;  %v3487_v7 = vrot.slane %v7432_v32, 2  ;;  %v2917_v34 = vpop.f32.mrb[51].mxu1  ;;  %3198 = vmatprep.mubr.f32.mxu1 %v6345_v0 }
 0x586   : > { %v3443_v34 = vld [vmem:[#allocation9 + $0x1d0] sm:$0xff] }
 0x587   : > { %v3040_v33 = vsel %vm2047_vm7, %v3037_v30, %v3039_v6  ;;  %v7440_v35 = vsel %vm3469_vm13, %v3485_v29, %v3487_v7 }
 0x588   : > { %v7442_v39 = vpop.f32.mrb[52].mxu1  ;;  %5175 = vmatmul.mubr.msk.f32.gmra.mrb[80].mxu1 %vm3053_vm14, %v3040_v33  ;;  %v3446_v33 = vld [vmem:[#allocation9 + $0x1e8] sm:$0xff] }
 0x589   : > { %v3041_v36 = vrot.slane %v7442_v39, 1  ;;  %v3489_v37 = vrot.slane %v7442_v39, 2  ;;  %v2922_v38 = vpop.f32.mrb[53].mxu1  ;;  %3204 = vmatprep.mubr.f32.mxu1 %v6345_v0 }
 0x58b   : > { %v3042_v44 = vsel %vm2047_vm7, %v3039_v6, %v3041_v36  ;;  %v7450_v1 = vsel %vm3469_vm13, %v3487_v7, %v3489_v37  ;;  %v3441_v7 = vld [vmem:[#allocation9 + $0x1c0] sm:$0xff] }
 0x58c   : > { %v7452_v40 = vpop.f32.mrb[54].mxu1  ;;  %5176 = vmatmul.mubr.msk.f32.gmra.mrb[82].mxu1 %vm3053_vm14, %v3042_v44  ;;  %v3445_v44 = vld [vmem:[#allocation9 + $0x1e0] sm:$0xff] }
 0x58d   : > { %v3043_v47 = vrot.slane %v7452_v40, 1  ;;  %v3491_v9 = vrot.slane %v7452_v40, 2  ;;  %v2927_v48 = vpop.f32.mrb[55].mxu1  ;;  %3210 = vmatprep.mubr.f32.mxu1 %v6345_v0 }
 0x58e   : > { %v3452_v48 = vld [vmem:[#allocation9 + $0x218] sm:$0xff] }
 0x58f   : > { %v3044_v17 = vsel %vm2047_vm7, %v3041_v36, %v3043_v47  ;;  %v7460_v16 = vsel %vm3469_vm13, %v3489_v37, %v3491_v9  ;;  %v3448_v36 = vld [vmem:[#allocation9 + $0x1f8] sm:$0xff]  ;;  %v5528_v37 = vpack.c.bf16 %v3443_v34, %v3441_v7 }
 0x590   : > { %v7462_v49 = vpop.f32.mrb[56].mxu1  ;;  %5177 = vmatmul.mubr.msk.f32.gmra.mrb[84].mxu1 %vm3053_vm14, %v3044_v17  ;;  %v5530_v38 = vpack.c.bf16 %v3448_v36, %v3446_v33  ;;  %v3463_v33 = vld [vmem:[#allocation9 + $0x270] sm:$0xff]  ;;  %v3466_v36 = vld [vmem:[#allocation9 + $0x288] sm:$0xff] }
 0x591   : > { %v3045_v46 = vrot.slane %v7462_v49, 1  ;;  %v3493_v50 = vrot.slane %v7462_v49, 2  ;;  %v2932_v18 = vpop.f32.mrb[57].mxu1  ;;  %3216 = vmatprep.mubr.f32.mxu1 %v6345_v0 }
 0x592   : > { %v3451_v18 = vld [vmem:[#allocation9 + $0x210] sm:$0xff] }
 0x593   : > { %v3046_v52 = vsel %vm2047_vm7, %v3043_v47, %v3045_v46  ;;  %v7470_v54 = vsel %vm3469_vm13, %v3491_v9, %v3493_v50  ;;  %v3447_v47 = vld [vmem:[#allocation9 + $0x1f0] sm:$0xff]  ;;  %v3450_v9 = vld [vmem:[#allocation9 + $0x208] sm:$0xff] }
 0x594   : > { %v7472_v55 = vpop.f32.mrb[58].mxu1  ;;  %5178 = vmatmul.mubr.msk.f32.gmra.mrb[86].mxu1 %vm3053_vm14, %v3046_v52  ;;  %v5532_v17 = vpack.c.bf16 %v3447_v47, %v3445_v44  ;;  %v3454_v52 = vld [vmem:[#allocation9 + $0x228] sm:$0xff]  ;;  %v3467_v47 = vld [vmem:[#allocation9 + $0x290] sm:$0xff] }
 0x595   : > { %v3047_v20 = vrot.slane %v7472_v55, 1  ;;  %v3495_v56 = vrot.slane %v7472_v55, 2  ;;  %v2937_v57 = vpop.f32.mrb[59].mxu1  ;;  %3222 = vmatprep.mubr.f32.mxu1 %v6345_v0 }
 0x597   : > { %v3048_v23 = vsel %vm2047_vm7, %v3045_v46, %v3047_v20  ;;  %v7480_v22 = vsel %vm3469_vm13, %v3493_v50, %v3495_v56  ;;  %v5534_v46 = vpack.c.bf16 %v3452_v48, %v3450_v9  ;;  %v3449_v50 = vld [vmem:[#allocation9 + $0x200] sm:$0xff] }
 0x598   : > { %v7482_v10 = vpop.f32.mrb[60].mxu1  ;;  %5179 = vmatmul.mubr.msk.f32.gmra.mrb[88].mxu1 %vm3053_vm14, %v3048_v23  ;;  %v3455_v23 = vld [vmem:[#allocation9 + $0x230] sm:$0xff] }
 0x599   : > { %v3049_v25 = vrot.slane %v7482_v10, 1  ;;  %v3497_v24 = vrot.slane %v7482_v10, 2  ;;  %v2942_v60 = vpop.f32.mrb[61].mxu1  ;;  %3228 = vmatprep.mubr.f32.mxu1 %v6345_v0 }
 0x59b   : > { %v3050_v61 = vsel %vm2047_vm7, %v3047_v20, %v3049_v25  ;;  %v7490_v26 = vsel %vm3469_vm13, %v3495_v56, %v3497_v24  ;;  %v3456_v20 = vld [vmem:[#allocation9 + $0x238] sm:$0xff]  ;;  %v5536_v56 = vpack.c.bf16 %v3451_v18, %v3449_v50 }
 0x59c   : > { %v7492_v63 = vpop.f32.mrb[62].mxu1  ;;  %5180 = vmatmul.mubr.msk.f32.gmra.mrb[90].mxu1 %vm3053_vm14, %v3050_v61  ;;  %v5538_v57 = vpack.c.bf16 %v3456_v20, %v3454_v52 }
 0x59d   : > { %v3051_v30 = vrot.slane %v7492_v63, 1  ;;  %v3499_v29 = vrot.slane %v7492_v63, 2  ;;  %v2947_v13 = vpop.f32.mrb[63].mxu1  ;;  %3234 = vmatprep.mubr.f32.mxu1 %v6345_v0 }
 0x59e   : > { %v3462_v13 = vld [vmem:[#allocation9 + $0x268] sm:$0xff] }
 0x59f   : > { %v3052_v4 = vsel %vm2047_vm7, %v3049_v25, %v3051_v30  ;;  %v7502_v6 = vsel %vm3469_vm13, %v3497_v24, %v3499_v29  ;;  %v3458_v25 = vld [vmem:[#allocation9 + $0x248] sm:$0xff]  ;;  %v3460_v24 = vld [vmem:[#allocation9 + $0x258] sm:$0xff] }
 0x5a0   : > { %5181 = vmatmul.mubr.msk.f32.gmra.mrb[92].mxu1 %vm3053_vm14, %v3052_v4  ;;  %v5542_v61 = vpack.c.bf16 %v3460_v24, %v3458_v25  ;;  %v3464_v4 = vld [vmem:[#allocation9 + $0x278] sm:$0xff] }
 0x5a1   : > { %3240 = vmatprep.mubr.f32.mxu1 %v6345_v0  ;;  %v5546_v34 = vpack.c.bf16 %v3464_v4, %v3462_v13 }
 0x5a4   : > { %5182 = vmatmul.mubr.msk.f32.gmra.mrb[94].mxu1 %vm3053_vm14, %v3051_v30  ;;  %v3459_v30 = vld [vmem:[#allocation9 + $0x250] sm:$0xff] }
 0x5a5   : > { %3343 = vmatprep.mubr.f32.mxu1 %v6345_v0 }
 0x5a8   : > { %5183 = vmatmul.mubr.msk.f32.vlgmr.msra.gmra.mrb[64].mxu1 %vm3053_vm14, %v7350_v41  ;;  %v3453_v41 = vld [vmem:[#allocation9 + $0x220] sm:$0xff] }
 0x5a9   : > { %3349 = vmatprep.mubr.f32.mxu1 %v6345_v0  ;;  %5529 = vmatpush1.bf16.msra.mxu1 %v5528_v37  ;;  %v5540_v60 = vpack.c.bf16 %v3455_v23, %v3453_v41  ;;  %v3468_v37 = vld [vmem:[#allocation9 + $0x298] sm:$0xff] }
 0x5aa   : > { %5531 = vmatprep.subr.bf16.mxu1 %v5530_v38  ;;  %v5550_v44 = vpack.c.bf16 %v3468_v37, %v3466_v36 }
 0x5ac   : > { %5184 = vmatmul.mubr.msk.f32.gmra.mrb[66].mxu1 %vm3053_vm14, %v7352_v8  ;;  %v3457_v8 = vld [vmem:[#allocation9 + $0x240] sm:$0xff] }
 0x5ad   : > { %3355 = vmatprep.mubr.f32.mxu1 %v6345_v0  ;;  %5533 = vmatpush1.bf16.msra.mxu1 %v5532_v17  ;;  %v5544_v7 = vpack.c.bf16 %v3459_v30, %v3457_v8 }
 0x5ae   : > { %5535 = vmatprep.subr.bf16.mxu1 %v5534_v46 }
 0x5b0   : > { %5185 = vmatmul.mubr.msk.f32.gmra.mrb[68].mxu1 %vm3053_vm14, %v7362_v11  ;;  %v3461_v11 = vld [vmem:[#allocation9 + $0x260] sm:$0xff] }
 0x5b1   : > { %3361 = vmatprep.mubr.f32.mxu1 %v6345_v0  ;;  %5537 = vmatpush1.bf16.msra.mxu1 %v5536_v56  ;;  %v5548_v38 = vpack.c.bf16 %v3463_v33, %v3461_v11 }
 0x5b2   : > { %5539 = vmatprep.subr.bf16.mxu1 %v5538_v57 }
 0x5b4   : > { %5186 = vmatmul.mubr.msk.f32.gmra.mrb[70].mxu1 %vm3053_vm14, %v7372_v28  ;;  %v3465_v28 = vld [vmem:[#allocation9 + $0x280] sm:$0xff] }
 0x5b5   : > { %3367 = vmatprep.mubr.f32.mxu1 %v6345_v0  ;;  %5541 = vmatpush1.bf16.msra.mxu1 %v5540_v60  ;;  %v5552_v9 = vpack.c.bf16 %v3467_v47, %v3465_v28 }
 0x5b6   : > { %5543 = vmatprep.subr.bf16.mxu1 %v5542_v61 }
 0x5b8   : > { %5187 = vmatmul.mubr.msk.f32.gmra.mrb[72].mxu1 %vm3053_vm14, %v7382_v5 }
 0x5b9   : > { %3373 = vmatprep.mubr.f32.mxu1 %v6345_v0  ;;  %5545 = vmatpush1.bf16.msra.mxu1 %v5544_v7 }
 0x5ba   : > { %5547 = vmatprep.subr.bf16.mxu1 %v5546_v34 }
 0x5bc   : > { %5188 = vmatmul.mubr.msk.f32.gmra.mrb[74].mxu1 %vm3053_vm14, %v7392_v14 }
 0x5bd   : > { %3379 = vmatprep.mubr.f32.mxu1 %v6345_v0  ;;  %5549 = vmatpush1.bf16.msra.mxu1 %v5548_v38 }
 0x5be   : > { %5551 = vmatprep.subr.bf16.mxu1 %v5550_v44 }
 0x5c0   : > { %5189 = vmatmul.mubr.msk.f32.gmra.mrb[76].mxu1 %vm3053_vm14, %v7402_v19 }
 0x5c1   : > { %3385 = vmatprep.mubr.f32.mxu1 %v6345_v0  ;;  %5553 = vmatpush1.bf16.msra.mxu1 %v5552_v9 }
 0x5c4   : > { %5190 = vmatmul.mubr.msk.f32.gmra.mrb[78].mxu1 %vm3053_vm14, %v7412_v59 }
 0x5c5   : > { %3391 = vmatprep.mubr.f32.mxu1 %v6345_v0 }
 0x5c8   : > { %5191 = vmatmul.mubr.msk.f32.gmra.mrb[80].mxu1 %vm3053_vm14, %v7422_v3 }
 0x5c9   : > { %3397 = vmatprep.mubr.f32.mxu1 %v6345_v0 }
 0x5cc   : > { %5192 = vmatmul.mubr.msk.f32.gmra.mrb[82].mxu1 %vm3053_vm14, %v7432_v32 }
 0x5cd   : > { %3403 = vmatprep.mubr.f32.mxu1 %v6345_v0 }
 0x5d0   : > { %5193 = vmatmul.mubr.msk.f32.gmra.mrb[84].mxu1 %vm3053_vm14, %v7442_v39 }
 0x5d1   : > { %3409 = vmatprep.mubr.f32.mxu1 %v6345_v0 }
 0x5d4   : > { %5194 = vmatmul.mubr.msk.f32.gmra.mrb[86].mxu1 %vm3053_vm14, %v7452_v40 }
 0x5d5   : > { %3415 = vmatprep.mubr.f32.mxu1 %v6345_v0 }
 0x5d8   : > { %5195 = vmatmul.mubr.msk.f32.gmra.mrb[88].mxu1 %vm3053_vm14, %v7462_v49 }
 0x5d9   : > { %3421 = vmatprep.mubr.f32.mxu1 %v6345_v0 }
 0x5dc   : > { %5196 = vmatmul.mubr.msk.f32.gmra.mrb[90].mxu1 %vm3053_vm14, %v7472_v55 }
 0x5dd   : > { %3427 = vmatprep.mubr.f32.mxu1 %v6345_v0 }
 0x5e0   : > { %5197 = vmatmul.mubr.msk.f32.gmra.mrb[92].mxu1 %vm3053_vm14, %v7482_v10 }
 0x5e1   : > { %3433 = vmatprep.mubr.f32.mxu1 %v6345_v0 }
 0x5e4   : > { %5198 = vmatmul.mubr.msk.f32.gmra.mrb[94].mxu1 %vm3053_vm14, %v7492_v63 }
 0x5e5   : > { %3597 = vmatprep.mubr.f32.mxu1 %v6345_v0 }
 0x5e8   : > { %5199 = vmatmul.mubr.msk.f32.vlgmr.msra.gmra.mrb[64].mxu1 %vm3053_vm14, %v7360_v21  ;;  %v3726_v21 = vld [vmem:[#allocation11] sm:$0x3] }
 0x5e9   : > { %3603 = vmatprep.mubr.f32.mxu1 %v6345_v0 }
 0x5ec   : > { %5200 = vmatmul.mubr.msk.f32.gmra.mrb[66].mxu1 %vm3053_vm14, %v7370_v62  ;;  %v7607_v62 = vrot.slane %v3726_v21, %v1847_v43 }
 0x5ed   : > { %3609 = vmatprep.mubr.f32.mxu1 %v6345_v0 }
 0x5f0   : > { %5201 = vmatmul.mubr.msk.f32.gmra.mrb[68].mxu1 %vm3053_vm14, %v7380_v31  ;;  %v7611_v31 = vrot.slane %v3726_v21, %v1851_v45 }
 0x5f1   : > { %3615 = vmatprep.mubr.f32.mxu1 %v6345_v0 }
 0x5f4   : > { %5202 = vmatmul.mubr.msk.f32.gmra.mrb[70].mxu1 %vm3053_vm14, %v7390_v15 }
 0x5f5   : > { %3621 = vmatprep.mubr.f32.mxu1 %v6345_v0 }
 0x5f8   : > { %5203 = vmatmul.mubr.msk.f32.gmra.mrb[72].mxu1 %vm3053_vm14, %v7400_v51 }
 0x5f9   : > { %3627 = vmatprep.mubr.f32.mxu1 %v6345_v0 }
 0x5fc   : > { %5204 = vmatmul.mubr.msk.f32.gmra.mrb[74].mxu1 %vm3053_vm14, %v7410_v58 }
 0x5fd   : > { %3633 = vmatprep.mubr.f32.mxu1 %v6345_v0 }
 0x600   : > { %5205 = vmatmul.mubr.msk.f32.gmra.mrb[76].mxu1 %vm3053_vm14, %v7420_v2 }
 0x601   : > { %3639 = vmatprep.mubr.f32.mxu1 %v6345_v0 }
 0x604   : > { %5206 = vmatmul.mubr.msk.f32.gmra.mrb[78].mxu1 %vm3053_vm14, %v7430_v12 }
 0x605   : > { %3645 = vmatprep.mubr.f32.mxu1 %v6345_v0 }
 0x608   : > { %5207 = vmatmul.mubr.msk.f32.gmra.mrb[80].mxu1 %vm3053_vm14, %v7440_v35 }
 0x609   : > { %3651 = vmatprep.mubr.f32.mxu1 %v6345_v0 }
 0x60c   : > { %5208 = vmatmul.mubr.msk.f32.gmra.mrb[82].mxu1 %vm3053_vm14, %v7450_v1 }
 0x60d   : > { %3657 = vmatprep.mubr.f32.mxu1 %v6345_v0 }
 0x610   : > { %5209 = vmatmul.mubr.msk.f32.gmra.mrb[84].mxu1 %vm3053_vm14, %v7460_v16 }
 0x611   : > { %3663 = vmatprep.mubr.f32.mxu1 %v6345_v0 }
 0x614   : > { %5210 = vmatmul.mubr.msk.f32.gmra.mrb[86].mxu1 %vm3053_vm14, %v7470_v54 }
 0x615   : > { %3669 = vmatprep.mubr.f32.mxu1 %v6345_v0 }
 0x618   : > { %5211 = vmatmul.mubr.msk.f32.gmra.mrb[88].mxu1 %vm3053_vm14, %v7480_v22 }
 0x619   : > { %3675 = vmatprep.mubr.f32.mxu1 %v6345_v0 }
 0x61c   : > { %5212 = vmatmul.mubr.msk.f32.gmra.mrb[90].mxu1 %vm3053_vm14, %v7490_v26 }
 0x61d   : > { %3681 = vmatprep.mubr.f32.mxu1 %v6345_v0 }
 0x620   : > { %5213 = vmatmul.mubr.msk.f32.gmra.mrb[92].mxu1 %vm3053_vm14, %v7502_v6 }
 0x621   : > { %3687 = vmatprep.mubr.f32.mxu1 %v6345_v0 }
 0x624   : > { %5214 = vmatmul.mubr.msk.f32.gmra.mrb[94].mxu1 %vm3053_vm14, %v3499_v29 }
 0x625   : > { %4058 = vmatprep.mubr.f32.mxu1 %v6345_v0 }
 0x6bb   : > { %v3599_v5 = vpop.f32.mrb[64].mxu1 }
 0x6bc   : > { %v3738_v15 = vadd.f32 %v7607_v62, %v3599_v5  ;;  %v3601_v14 = vpop.f32.mrb[65].mxu1 }
 0x6bd   : > { %v3739_v51 = vadd.f32 %v7611_v31, %v3601_v14 }
 0x6be   : > { %v3770_v58 = vmax.f32 %v3738_v15, 0.0 }
 0x6bf   : > { %v3605_v19 = vpop.f32.mrb[66].mxu1  ;;  %v3771_v3 = vmax.f32 %v3739_v51, 0.0 }
 0x6c0   : > { %v3740_v59 = vadd.f32 %v7607_v62, %v3605_v19  ;;  %v3607_v2 = vpop.f32.mrb[67].mxu1  ;;  %v3834_v42 = vrot.slane %v3770_v58, 1 }
 0x6c1   : > { %v3741_v12 = vadd.f32 %v7611_v31, %v3607_v2  ;;  %v3837_v40 = vrot.slane %v3771_v3, 1 }
 0x6c2   : > { %v3772_v43 = vmax.f32 %v3740_v59, 0.0 }
 0x6c3   : > { %v3773_v32 = vmax.f32 %v3741_v12, 0.0  ;;  %v3611_v35 = vpop.f32.mrb[68].mxu1 }
 0x6c4   : > { %v3835_v45 = vrot.slane %v3772_v43, 1  ;;  %v3742_v39 = vadd.f32 %v7607_v62, %v3611_v35  ;;  %v3613_v1 = vpop.f32.mrb[69].mxu1 }
 0x6c5   : > { %v3838_v16 = vrot.slane %v3773_v32, 1  ;;  %v3743_v49 = vadd.f32 %v7611_v31, %v3613_v1 }
 0x6c6   : > { %v3836_v54 = vsel %vm2047_vm7, %v3834_v42, %v3835_v45  ;;  %v3774_v55 = vmax.f32 %v3742_v39, 0.0 }
 0x6c7   : > { %v3928_v22 = vmax.f32 %v3770_v58, %v3836_v54  ;;  %v3775_v10 = vmax.f32 %v3743_v49, 0.0  ;;  %v3617_v26 = vpop.f32.mrb[70].mxu1  ;;  %v3839_v63 = vsel %vm2047_vm7, %v3837_v40, %v3838_v16 }
 0x6c8   : > { %v3840_v29 = vrot.slane %v3774_v55, 1  ;;  %v3744_v6 = vadd.f32 %v7607_v62, %v3617_v26  ;;  %v3619_v48 = vpop.f32.mrb[71].mxu1  ;;  %v3929_v17 = vmax.f32 %v3771_v3, %v3839_v63 }
 0x6c9   : > { %v3842_v46 = vrot.slane %v3775_v10, 1  ;;  %v3745_v50 = vadd.f32 %v7611_v31, %v3619_v48 }
 0x6ca   : > { %v3841_v18 = vsel %vm2047_vm7, %v3835_v45, %v3840_v29  ;;  %v3776_v52 = vmax.f32 %v3744_v6, 0.0 }
 0x6cb   : > { %v3930_v20 = vmax.f32 %v3772_v43, %v3841_v18  ;;  %v3777_v56 = vmax.f32 %v3745_v50, 0.0  ;;  %v3623_v57 = vpop.f32.mrb[72].mxu1  ;;  %v3843_v41 = vsel %vm2047_vm7, %v3838_v16, %v3842_v46 }
 0x6cc   : > { %v3844_v23 = vrot.slane %v3776_v52, 1  ;;  %v3746_v25 = vadd.f32 %v7607_v62, %v3623_v57  ;;  %v3625_v24 = vpop.f32.mrb[73].mxu1  ;;  %v3931_v60 = vmax.f32 %v3773_v32, %v3843_v41 }
 0x6cd   : > { %v3846_v61 = vrot.slane %v3777_v56, 1  ;;  %v3747_v8 = vadd.f32 %v7611_v31, %v3625_v24  ;;  %v5556_v30 = vpack.c.bf16 %v3930_v20, %v3928_v22 }
 0x6ce   : > { %v3845_v13 = vsel %vm2047_vm7, %v3840_v29, %v3844_v23  ;;  %v3778_v4 = vmax.f32 %v3746_v25, 0.0  ;;  %v5554_v7 = vpack.c.bf16 %v3931_v60, %v3929_v17 }
 0x6cf   : > { %v3932_v34 = vmax.f32 %v3774_v55, %v3845_v13  ;;  %v3779_v11 = vmax.f32 %v3747_v8, 0.0  ;;  %v3629_v33 = vpop.f32.mrb[74].mxu1  ;;  %v3847_v36 = vsel %vm2047_vm7, %v3842_v46, %v3846_v61 }
 0x6d0   : > { %v3848_v37 = vrot.slane %v3778_v4, 1  ;;  %v3748_v38 = vadd.f32 %v7607_v62, %v3629_v33  ;;  %v3631_v44 = vpop.f32.mrb[75].mxu1  ;;  %5555 = vmatprep.subr.bf16.mxu1 %v5554_v7  ;;  %v3933_v28 = vmax.f32 %v3775_v10, %v3847_v36 }
 0x6d1   : > { %v3850_v47 = vrot.slane %v3779_v11, 1  ;;  %v3749_v9 = vadd.f32 %v7611_v31, %v3631_v44  ;;  %5557 = vmatpush1.bf16.msra.mxu1 %v5556_v30 }
 0x6d2   : > { %v3849_v21 = vsel %vm2047_vm7, %v3844_v23, %v3848_v37  ;;  %v3780_v5 = vmax.f32 %v3748_v38, 0.0 }
 0x6d3   : > { %v3934_v15 = vmax.f32 %v3776_v52, %v3849_v21  ;;  %v3781_v14 = vmax.f32 %v3749_v9, 0.0  ;;  %v3635_v51 = vpop.f32.mrb[76].mxu1  ;;  %v3851_v19 = vsel %vm2047_vm7, %v3846_v61, %v3850_v47 }
 0x6d4   : > { %v3852_v58 = vrot.slane %v3780_v5, 1  ;;  %v3750_v59 = vadd.f32 %v7607_v62, %v3635_v51  ;;  %v3637_v2 = vpop.f32.mrb[77].mxu1  ;;  %v3935_v3 = vmax.f32 %v3777_v56, %v3851_v19 }
 0x6d5   : > { %v3854_v12 = vrot.slane %v3781_v14, 1  ;;  %v3751_v43 = vadd.f32 %v7611_v31, %v3637_v2  ;;  %v5560_v32 = vpack.c.bf16 %v3934_v15, %v3932_v34 }
 0x6d6   : > { %v3853_v35 = vsel %vm2047_vm7, %v3848_v37, %v3852_v58  ;;  %v3782_v42 = vmax.f32 %v3750_v59, 0.0  ;;  %v5558_v45 = vpack.c.bf16 %v3935_v3, %v3933_v28 }
 0x6d7   : > { %v3936_v39 = vmax.f32 %v3778_v4, %v3853_v35  ;;  %v3783_v1 = vmax.f32 %v3751_v43, 0.0  ;;  %v3641_v40 = vpop.f32.mrb[78].mxu1  ;;  %v3855_v16 = vsel %vm2047_vm7, %v3850_v47, %v3854_v12 }
 0x6d8   : > { %v3856_v49 = vrot.slane %v3782_v42, 1  ;;  %v3752_v54 = vadd.f32 %v7607_v62, %v3641_v40  ;;  %v3643_v55 = vpop.f32.mrb[79].mxu1  ;;  %5559 = vmatprep.subr.bf16.mxu1 %v5558_v45  ;;  %v3937_v22 = vmax.f32 %v3779_v11, %v3855_v16 }
 0x6d9   : > { %v3858_v10 = vrot.slane %v3783_v1, 1  ;;  %v3753_v26 = vadd.f32 %v7611_v31, %v3643_v55  ;;  %5561 = vmatpush1.bf16.msra.mxu1 %v5560_v32 }
 0x6da   : > { %v3857_v63 = vsel %vm2047_vm7, %v3852_v58, %v3856_v49  ;;  %v3784_v29 = vmax.f32 %v3752_v54, 0.0 }
 0x6db   : > { %v3938_v6 = vmax.f32 %v3780_v5, %v3857_v63  ;;  %v3785_v48 = vmax.f32 %v3753_v26, 0.0  ;;  %v3647_v17 = vpop.f32.mrb[80].mxu1  ;;  %v3859_v46 = vsel %vm2047_vm7, %v3854_v12, %v3858_v10 }
 0x6dc   : > { %v3860_v50 = vrot.slane %v3784_v29, 1  ;;  %v3754_v18 = vadd.f32 %v7607_v62, %v3647_v17  ;;  %v3649_v52 = vpop.f32.mrb[81].mxu1  ;;  %v3939_v20 = vmax.f32 %v3781_v14, %v3859_v46 }
 0x6dd   : > { %v3862_v56 = vrot.slane %v3785_v48, 1  ;;  %v3755_v57 = vadd.f32 %v7611_v31, %v3649_v52  ;;  %v5564_v41 = vpack.c.bf16 %v3938_v6, %v3936_v39 }
 0x6de   : > { %v3861_v23 = vsel %vm2047_vm7, %v3856_v49, %v3860_v50  ;;  %v3786_v25 = vmax.f32 %v3754_v18, 0.0  ;;  %v5562_v24 = vpack.c.bf16 %v3939_v20, %v3937_v22 }
 0x6df   : > { %v3940_v60 = vmax.f32 %v3782_v42, %v3861_v23  ;;  %v3787_v61 = vmax.f32 %v3755_v57, 0.0  ;;  %v3653_v8 = vpop.f32.mrb[82].mxu1  ;;  %v3863_v30 = vsel %vm2047_vm7, %v3858_v10, %v3862_v56 }
 0x6e0   : > { %v3864_v13 = vrot.slane %v3786_v25, 1  ;;  %v3756_v4 = vadd.f32 %v7607_v62, %v3653_v8  ;;  %v3655_v7 = vpop.f32.mrb[83].mxu1  ;;  %5563 = vmatprep.subr.bf16.mxu1 %v5562_v24  ;;  %v3941_v34 = vmax.f32 %v3783_v1, %v3863_v30 }
 0x6e1   : > { %v3866_v11 = vrot.slane %v3787_v61, 1  ;;  %v3757_v33 = vadd.f32 %v7611_v31, %v3655_v7  ;;  %5565 = vmatpush1.bf16.msra.mxu1 %v5564_v41 }
 0x6e2   : > { %v3865_v36 = vsel %vm2047_vm7, %v3860_v50, %v3864_v13  ;;  %v3788_v37 = vmax.f32 %v3756_v4, 0.0 }
 0x6e3   : > { %v3942_v38 = vmax.f32 %v3784_v29, %v3865_v36  ;;  %v3789_v44 = vmax.f32 %v3757_v33, 0.0  ;;  %v3659_v28 = vpop.f32.mrb[84].mxu1  ;;  %v3867_v47 = vsel %vm2047_vm7, %v3862_v56, %v3866_v11 }
 0x6e4   : > { %v3868_v9 = vrot.slane %v3788_v37, 1  ;;  %v3758_v21 = vadd.f32 %v7607_v62, %v3659_v28  ;;  %v3661_v5 = vpop.f32.mrb[85].mxu1  ;;  %v3943_v15 = vmax.f32 %v3785_v48, %v3867_v47 }
 0x6e5   : > { %v3870_v14 = vrot.slane %v3789_v44, 1  ;;  %v3759_v51 = vadd.f32 %v7611_v31, %v3661_v5  ;;  %v5568_v19 = vpack.c.bf16 %v3942_v38, %v3940_v60 }
 0x6e6   : > { %v3869_v58 = vsel %vm2047_vm7, %v3864_v13, %v3868_v9  ;;  %v3790_v59 = vmax.f32 %v3758_v21, 0.0  ;;  %v5566_v2 = vpack.c.bf16 %v3943_v15, %v3941_v34 }
 0x6e7   : > { %v3944_v3 = vmax.f32 %v3786_v25, %v3869_v58  ;;  %v3791_v12 = vmax.f32 %v3759_v51, 0.0  ;;  %v3665_v43 = vpop.f32.mrb[86].mxu1  ;;  %v3871_v32 = vsel %vm2047_vm7, %v3866_v11, %v3870_v14 }
 0x6e8   : > { %v3872_v35 = vrot.slane %v3790_v59, 1  ;;  %v3760_v42 = vadd.f32 %v7607_v62, %v3665_v43  ;;  %v3667_v45 = vpop.f32.mrb[87].mxu1  ;;  %5567 = vmatprep.subr.bf16.mxu1 %v5566_v2  ;;  %v3945_v39 = vmax.f32 %v3787_v61, %v3871_v32 }
 0x6e9   : > { %v3874_v1 = vrot.slane %v3791_v12, 1  ;;  %v3761_v40 = vadd.f32 %v7611_v31, %v3667_v45  ;;  %5569 = vmatpush1.bf16.msra.mxu1 %v5568_v19 }
 0x6ea   : > { %v3873_v16 = vsel %vm2047_vm7, %v3868_v9, %v3872_v35  ;;  %v3792_v49 = vmax.f32 %v3760_v42, 0.0 }
 0x6eb   : > { %v3946_v54 = vmax.f32 %v3788_v37, %v3873_v16  ;;  %v3793_v55 = vmax.f32 %v3761_v40, 0.0  ;;  %v3671_v22 = vpop.f32.mrb[88].mxu1  ;;  %v3875_v10 = vsel %vm2047_vm7, %v3870_v14, %v3874_v1 }
 0x6ec   : > { %v3876_v26 = vrot.slane %v3792_v49, 1  ;;  %v3762_v63 = vadd.f32 %v7607_v62, %v3671_v22  ;;  %v3673_v29 = vpop.f32.mrb[89].mxu1  ;;  %v3947_v6 = vmax.f32 %v3789_v44, %v3875_v10 }
 0x6ed   : > { %v3878_v48 = vrot.slane %v3793_v55, 1  ;;  %v3763_v17 = vadd.f32 %v7611_v31, %v3673_v29  ;;  %v5572_v46 = vpack.c.bf16 %v3946_v54, %v3944_v3 }
 0x6ee   : > { %v3877_v50 = vsel %vm2047_vm7, %v3872_v35, %v3876_v26  ;;  %v3794_v18 = vmax.f32 %v3762_v63, 0.0  ;;  %v5570_v52 = vpack.c.bf16 %v3947_v6, %v3945_v39  ;;  %v3960_v6 = vld [vmem:[#allocation12] sm:$0xff] }
 0x6ef   : > { %v3948_v20 = vmax.f32 %v3790_v59, %v3877_v50  ;;  %v3795_v56 = vmax.f32 %v3763_v17, 0.0  ;;  %v3677_v57 = vpop.f32.mrb[90].mxu1  ;;  %v3879_v41 = vsel %vm2047_vm7, %v3874_v1, %v3878_v48  ;;  %v3962_v17 = vld [vmem:[#allocation12 + $0x10] sm:$0xff]  ;;  %v3965_v50 = vld [vmem:[#allocation12 + $0x28] sm:$0xff] }
 0x6f0   : > { %v3880_v23 = vrot.slane %v3794_v18, 1  ;;  %v3764_v25 = vadd.f32 %v7607_v62, %v3677_v57  ;;  %v3679_v24 = vpop.f32.mrb[91].mxu1  ;;  %5571 = vmatprep.subr.bf16.mxu1 %v5570_v52  ;;  %v3949_v60 = vmax.f32 %v3791_v12, %v3879_v41  ;;  %v4178_v52 = vld [vmem:[%s8346_s8] sm:$0xff]  ;;  %v4180_v57 = vld [vmem:[%s8346_s8 + $0x10] sm:$0xff]  ;;  %v4181_v41 = vld [vmem:[%s8346_s8 + $0x18] sm:$0xff] }
 0x6f1   : > { %v3882_v61 = vrot.slane %v3795_v56, 1  ;;  %v3765_v8 = vadd.f32 %v7611_v31, %v3679_v24  ;;  %5573 = vmatpush1.bf16.msra.mxu1 %v5572_v46  ;;  %v3963_v46 = vld [vmem:[#allocation12 + $0x18] sm:$0xff] }
 0x6f2   : > { %v3881_v30 = vsel %vm2047_vm7, %v3876_v26, %v3880_v23  ;;  %v3796_v13 = vmax.f32 %v3764_v25, 0.0  ;;  %v4182_v25 = vld [vmem:[%s8346_s8 + $0x20] sm:$0xff]  ;;  %v4183_v24 = vld [vmem:[%s8346_s8 + $0x28] sm:$0xff] }
 0x6f3   : > { %v3950_v4 = vmax.f32 %v3792_v49, %v3881_v30  ;;  %v3797_v7 = vmax.f32 %v3765_v8, 0.0  ;;  %v3683_v34 = vpop.f32.mrb[92].mxu1  ;;  %v3883_v11 = vsel %vm2047_vm7, %v3878_v48, %v3882_v61  ;;  %v3961_v48 = vld [vmem:[#allocation12 + $0x8] sm:$0xff]  ;;  %v4186_v30 = vld [vmem:[%s8346_s8 + $0x40] sm:$0xff] }
 0x6f4   : > { %v3884_v33 = vrot.slane %v3796_v13, 1  ;;  %v3766_v36 = vadd.f32 %v7607_v62, %v3683_v34  ;;  %v3685_v37 = vpop.f32.mrb[93].mxu1  ;;  %v3951_v38 = vmax.f32 %v3793_v55, %v3883_v11  ;;  %v4185_v8 = vld [vmem:[%s8346_s8 + $0x38] sm:$0xff]  ;;  %v4188_v34 = vld [vmem:[%s8346_s8 + $0x50] sm:$0xff] }
 0x6f5   : > { %v3886_v44 = vrot.slane %v3797_v7, 1  ;;  %v3767_v28 = vadd.f32 %v7611_v31, %v3685_v37  ;;  %v5576_v47 = vpack.c.bf16 %v3950_v4, %v3948_v20  ;;  %v4179_v20 = vld [vmem:[%s8346_s8 + $0x8] sm:$0xff]  ;;  %v4189_v11 = vld [vmem:[%s8346_s8 + $0x58] sm:$0xff] }
 0x6f6   : > { %v3885_v9 = vsel %vm2047_vm7, %v3880_v23, %v3884_v33  ;;  %v3798_v21 = vmax.f32 %v3766_v36, 0.0  ;;  %v5574_v5 = vpack.c.bf16 %v3951_v38, %v3949_v60  ;;  %v5592_v23 = vpack.c.bf16 %v4181_v41, %v4180_v57  ;;  %v4187_v4 = vld [vmem:[%s8346_s8 + $0x48] sm:$0xff]  ;;  %v4190_v36 = vld [vmem:[%s8346_s8 + $0x60] sm:$0xff] }
 0x6f7   : > { %v3952_v15 = vmax.f32 %v3794_v18, %v3885_v9  ;;  %v3799_v14 = vmax.f32 %v3767_v28, 0.0  ;;  %v3689_v51 = vpop.f32.mrb[94].mxu1  ;;  %v3887_v19 = vsel %vm2047_vm7, %v3882_v61, %v3886_v44  ;;  %v3966_v18 = vld [vmem:[#allocation12 + $0x30] sm:$0xff]  ;;  %v5595_v60 = vpack.c.bf16 %v4183_v24, %v4182_v25  ;;  %v4184_v61 = vld [vmem:[%s8346_s8 + $0x30] sm:$0xff]  ;;  %v4191_v37 = vld [vmem:[%s8346_s8 + $0x68] sm:$0xff] }
 0x6f8   : > { %v3888_v58 = vrot.slane %v3798_v21, 1  ;;  %v3768_v59 = vadd.f32 %v7607_v62, %v3689_v51  ;;  %v3691_v2 = vpop.f32.mrb[95].mxu1  ;;  %5575 = vmatprep.subr.bf16.mxu1 %v5574_v5  ;;  %v3953_v3 = vmax.f32 %v3795_v56, %v3887_v19  ;;  %v5589_v56 = vpack.c.bf16 %v4179_v20, %v4178_v52  ;;  %v4193_v28 = vld [vmem:[%s8346_s8 + $0x78] sm:$0xff]  ;;  %v4194_v9 = vld [vmem:[%s8346_s8 + $0x80] sm:$0xff]  ;;  %v4340_v52 = vld [vmem:[%s8347_s9 + $0x70] sm:$0xff] }
 0x6f9   : > { %v3890_v12 = vrot.slane %v3799_v14, 1  ;;  %v3769_v43 = vadd.f32 %v7611_v31, %v3691_v2  ;;  %5577 = vmatpush1.bf16.msra.mxu1 %v5576_v47  ;;  %v5607_v38 = vpack.c.bf16 %v4191_v37, %v4190_v36  ;;  %v4198_v19 = vld [vmem:[%s8346_s8 + $0xa0] sm:$0xff]  ;;  %v4200_v2 = vld [vmem:[%s8346_s8 + $0xb0] sm:$0xff]  ;;  %v4347_v20 = vld [vmem:[%s8347_s9 + $0xa8] sm:$0xff] }
 0x6fa   : > { %v3889_v32 = vsel %vm2047_vm7, %v3884_v33, %v3888_v58  ;;  %v3800_v35 = vmax.f32 %v3768_v59, 0.0  ;;  %5590 = vmatpush1.bf16.msra.mxu0 %v5589_v56  ;;  %v5604_v33 = vpack.c.bf16 %v4189_v11, %v4188_v34  ;;  %v5633_v57 = vpack.c.bf16 %v4347_v20, %v4340_v52  ;;  %v4355_v41 = vld [vmem:[%s8347_s9 + $0xe8] sm:$0xff]  ;;  %v4354_v24 = vld [vmem:[%s8347_s9 + $0xe0] sm:$0xff]  ;;  %v4368_v34 = vld [vmem:[%s8347_s9 + $0x150] sm:$0xff] }
 0x6fb   : > { %v3954_v42 = vmax.f32 %v3796_v13, %v3889_v32  ;;  %v3801_v45 = vmax.f32 %v3769_v43, 0.0  ;;  %v3891_v39 = vsel %vm2047_vm7, %v3886_v44, %v3890_v12  ;;  %5591 = vmatprep.subr.bf16.mxu0 %v6347_v27  ;;  %v5598_v13 = vpack.c.bf16 %v4185_v8, %v4184_v61  ;;  %v4192_v44 = vld [vmem:[%s8346_s8 + $0x70] sm:$0xff]  ;;  %v4202_v43 = vld [vmem:[%s8346_s8 + $0xc0] sm:$0xff]  ;;  %v4203_v32 = vld [vmem:[%s8346_s8 + $0xc8] sm:$0xff] }
 0x6fc   : > { %v3892_v1 = vrot.slane %v3800_v35, 1  ;;  %v3955_v40 = vmax.f32 %v3797_v7, %v3891_v39  ;;  %v5601_v7 = vpack.c.bf16 %v4187_v4, %v4186_v30  ;;  %v5610_v47 = vpack.c.bf16 %v4193_v28, %v4192_v44  ;;  %v4369_v30 = vld [vmem:[%s8347_s9 + $0x158] sm:$0xff]  ;;  %v4375_v11 = vld [vmem:[%s8347_s9 + $0x188] sm:$0xff]  ;;  %v4390_v36 = vld [vmem:[%s8347_s9 + $0x200] sm:$0xff] }
 0x6fd   : > { %v3894_v16 = vrot.slane %v3801_v45, 1  ;;  %v5580_v49 = vpack.c.bf16 %v3954_v42, %v3952_v15  ;;  %v4196_v15 = vld [vmem:[%s8346_s8 + $0x90] sm:$0xff]  ;;  %v5641_v37 = vpack.c.bf16 %v4375_v11, %v4368_v34  ;;  %v4382_v44 = vld [vmem:[%s8347_s9 + $0x1c0] sm:$0xff]  ;;  %v4389_v28 = vld [vmem:[%s8347_s9 + $0x1f8] sm:$0xff] }
 0x6fe   : > { %v3893_v62 = vsel %vm2047_vm7, %v3888_v58, %v3892_v1  ;;  %v3958_v54 = vmax.f32 %v3800_v35, %v3892_v1  ;;  %v5578_v55 = vpack.c.bf16 %v3955_v40, %v3953_v3  ;;  %5593 = vmatpush1.bf16.msra.mxu0 %v5592_v23  ;;  %v4199_v58 = vld [vmem:[%s8346_s8 + $0xa8] sm:$0xff]  ;;  %v4201_v3 = vld [vmem:[%s8346_s8 + $0xb8] sm:$0xff]  ;;  %v5625_v35 = vpack.c.bf16 %v4203_v32, %v4202_v43  ;;  %v4362_v23 = vld [vmem:[%s8347_s9 + $0x120] sm:$0xff] }
 0x6ff   : > { %v3956_v22 = vmax.f32 %v3798_v21, %v3893_v62  ;;  %v3895_v10 = vsel %vm2047_vm7, %v3890_v12, %v3894_v16  ;;  %v3959_v31 = vmax.f32 %v3801_v45, %v3894_v16  ;;  %5594 = vmatprep.subr.bf16.mxu0 %v6347_v27  ;;  %v4195_v21 = vld [vmem:[%s8346_s8 + $0x88] sm:$0xff]  ;;  %v5619_v59 = vpack.c.bf16 %v4199_v58, %v4198_v19  ;;  %v4418_v19 = vld [vmem:[%s8347_s9 + $0x2e0] sm:$0xff]  ;;  %v4328_v43 = vld [vmem:[%s8347_s9 + $0x10] sm:$0xff] }
 0x700   : > { %v3957_v26 = vmax.f32 %v3799_v14, %v3895_v10  ;;  %5579 = vmatprep.subr.bf16.mxu1 %v5578_v55  ;;  %v5613_v5 = vpack.c.bf16 %v4195_v21, %v4194_v9  ;;  %v4197_v14 = vld [vmem:[%s8346_s8 + $0x98] sm:$0xff]  ;;  %v5622_v12 = vpack.c.bf16 %v4201_v3, %v4200_v2  ;;  %v4327_v55 = vld [vmem:[%s8347_s9 + $0x8] sm:$0xff]  ;;  %v5635_v25 = vpack.c.bf16 %v4362_v23, %v4355_v41  ;;  %v4404_v9 = vld [vmem:[%s8347_s9 + $0x270] sm:$0xff] }
 0x701   : > { %v5585_v63 = vpack.c.bf16 %v3958_v54, %v3956_v22  ;;  %5581 = vmatpush1.bf16.msra.mxu1 %v5580_v49  ;;  %v5616_v51 = vpack.c.bf16 %v4197_v14, %v4196_v15  ;;  %v4334_v22 = vld [vmem:[%s8347_s9 + $0x40] sm:$0xff]  ;;  %v4329_v10 = vld [vmem:[%s8347_s9 + $0x18] sm:$0xff]  ;;  %v5645_v21 = vpack.c.bf16 %v4389_v28, %v4382_v44  ;;  %v4396_v15 = vld [vmem:[%s8347_s9 + $0x230] sm:$0xff] }
 0x702   : > { %v5582_v29 = vpack.c.bf16 %v3959_v31, %v3957_v26  ;;  %5596 = vmatpush1.bf16.msra.mxu0 %v5595_v60  ;;  %v5627_v26 = vpack.c.bf16 %v4334_v22, %v4327_v55  ;;  %v4361_v60 = vld [vmem:[%s8347_s9 + $0x118] sm:$0xff]  ;;  %v4403_v14 = vld [vmem:[%s8347_s9 + $0x268] sm:$0xff]  ;;  %v4410_v2 = vld [vmem:[%s8347_s9 + $0x2a0] sm:$0xff] }
 0x703   : > { %5597 = vmatprep.subr.bf16.mxu0 %v6347_v27  ;;  %v5637_v8 = vpack.c.bf16 %v4361_v60, %v4354_v24  ;;  %v5649_v58 = vpack.c.bf16 %v4403_v14, %v4396_v15  ;;  %v4417_v3 = vld [vmem:[%s8347_s9 + $0x2d8] sm:$0xff]  ;;  %v4335_v32 = vld [vmem:[%s8347_s9 + $0x48] sm:$0xff]  ;;  %v4350_v22 = vld [vmem:[%s8347_s9 + $0xc0] sm:$0xff] }
 0x704   : > { %5584 = vmatprep.subr.msk.bf16.mxu1 %vm7119_vm10, %v5582_v29  ;;  %v4326_v29 = vld [vmem:[%s8347_s9] sm:$0xff]  ;;  %v4343_v55 = vld [vmem:[%s8347_s9 + $0x88] sm:$0xff] }
 0x705   : > { %5587 = vmatpush1.bf16.msk.msra.mxu1 %vm7119_vm10, %v5585_v63  ;;  %v4336_v63 = vld [vmem:[%s8347_s9 + $0x50] sm:$0xff]  ;;  %v4363_v24 = vld [vmem:[%s8347_s9 + $0x128] sm:$0xff] }
 0x706   : > { %5599 = vmatpush1.bf16.msra.mxu0 %v5598_v13  ;;  %5628 = vmatprep.subr.bf16.mxu1 %v5627_v26  ;;  %v4376_v13 = vld [vmem:[%s8347_s9 + $0x190] sm:$0xff]  ;;  %v4391_v15 = vld [vmem:[%s8347_s9 + $0x208] sm:$0xff] }
 0x707   : > { %5600 = vmatprep.subr.bf16.mxu0 %v6347_v27 }
 0x708   : > { %5217 = vmatmul.mubr.msk.f32.vlgmr.msra.gmra.mrb[96].mxu1 %vm2334_vm8, %v3960_v6  ;;  %v4333_v6 = vld [vmem:[%s8347_s9 + $0x38] sm:$0xff] }
 0x709   : > { %4064 = vmatprep.mubr.f32.mxu1 %v6345_v0 }
 0x70a   : > { %5602 = vmatpush1.bf16.msra.mxu0 %v5601_v7  ;;  %v5639_v7 = vpack.c.bf16 %v4376_v13, %v4369_v30 }
 0x70b   : > { %5603 = vmatprep.subr.bf16.mxu0 %v6347_v27 }
 0x70c   : > { %5218 = vmatmul.mubr.msk.f32.gmra.mrb[98].mxu1 %vm2334_vm8, %v3961_v48  ;;  %v5655_v48 = vpack.c.bf16 %v4336_v63, %v4329_v10 }
 0x70d   : > { %4070 = vmatprep.mubr.f32.mxu1 %v6345_v0 }
 0x70e   : > { %5605 = vmatpush1.bf16.msra.mxu0 %v5604_v33  ;;  %v4383_v33 = vld [vmem:[%s8347_s9 + $0x1c8] sm:$0xff] }
 0x70f   : > { %5606 = vmatprep.subr.bf16.mxu0 %v6347_v27 }
 0x710   : > { %5219 = vmatmul.mubr.msk.f32.gmra.mrb[100].mxu1 %vm2334_vm8, %v3962_v17  ;;  %v5629_v17 = vpack.c.bf16 %v4333_v6, %v4326_v29  ;;  %v5657_v29 = vpack.c.bf16 %v4335_v32, %v4328_v43  ;;  %v4405_v43 = vld [vmem:[%s8347_s9 + $0x278] sm:$0xff] }
 0x711   : > { %4076 = vmatprep.mubr.f32.mxu1 %v6345_v0 }
 0x712   : > { %5608 = vmatpush1.bf16.msra.mxu0 %v5607_v38  ;;  %5630 = vmatpush1.bf16.msra.mxu1 %v5629_v17  ;;  %v5643_v38 = vpack.c.bf16 %v4390_v36, %v4383_v33  ;;  %v4342_v17 = vld [vmem:[%s8347_s9 + $0x80] sm:$0xff]  ;;  %v4377_v36 = vld [vmem:[%s8347_s9 + $0x198] sm:$0xff] }
 0x713   : > { %5609 = vmatprep.subr.bf16.mxu0 %v6347_v27  ;;  %v4370_v33 = vld [vmem:[%s8347_s9 + $0x160] sm:$0xff] }
 0x714   : > { %5220 = vmatmul.mubr.msk.f32.gmra.mrb[102].mxu1 %vm2334_vm8, %v3963_v46  ;;  %v4341_v46 = vld [vmem:[%s8347_s9 + $0x78] sm:$0xff] }
 0x715   : > { %4082 = vmatprep.mubr.f32.mxu1 %v6345_v0 }
 0x716   : > { %5611 = vmatpush1.bf16.msra.mxu0 %v5610_v47  ;;  %v4397_v47 = vld [vmem:[%s8347_s9 + $0x238] sm:$0xff] }
 0x717   : > { %5612 = vmatprep.subr.bf16.mxu0 %v6347_v27 }
 0x718   : > { %5221 = vmatmul.mubr.msk.f32.gmra.mrb[104].mxu1 %vm2334_vm8, %v3964_v53  ;;  %v4348_v53 = vld [vmem:[%s8347_s9 + $0xb0] sm:$0xff] }
 0x719   : > { %4088 = vmatprep.mubr.f32.mxu1 %v6345_v0 }
 0x71a   : > { %5614 = vmatpush1.bf16.msra.mxu0 %v5613_v5  ;;  %v5647_v5 = vpack.c.bf16 %v4404_v9, %v4397_v47  ;;  %v5669_v47 = vpack.c.bf16 %v4377_v36, %v4370_v33  ;;  %v4358_v36 = vld [vmem:[%s8347_s9 + $0x100] sm:$0xff] }
 0x71b   : > { %5615 = vmatprep.subr.bf16.mxu0 %v6347_v27 }
 0x71c   : > { %5222 = vmatmul.mubr.msk.f32.gmra.mrb[106].mxu1 %vm2334_vm8, %v3965_v50 }
 0x71d   : > { %4094 = vmatprep.mubr.f32.mxu1 %v6345_v0 }
 0x71e   : > { %5617 = vmatpush1.bf16.msra.mxu0 %v5616_v51  ;;  %v4411_v51 = vld [vmem:[%s8347_s9 + $0x2a8] sm:$0xff] }
 0x71f   : > { %5618 = vmatprep.subr.bf16.mxu0 %v6347_v27 }
 0x720   : > { %5223 = vmatmul.mubr.msk.f32.gmra.mrb[108].mxu1 %vm2334_vm8, %v3966_v18  ;;  %v5631_v18 = vpack.c.bf16 %v4348_v53, %v4341_v46  ;;  %v4349_v46 = vld [vmem:[%s8347_s9 + $0xb8] sm:$0xff] }
 0x721   : > { %4509 = vmatprep.mubr.f32.mxu1 %v6345_v0 }
 0x722   : > { %5620 = vmatpush1.bf16.msra.mxu0 %v5619_v59  ;;  %5632 = vmatprep.subr.bf16.mxu1 %v5631_v18  ;;  %v5651_v59 = vpack.c.bf16 %v4418_v19, %v4411_v51  ;;  %v4357_v18 = vld [vmem:[%s8347_s9 + $0xf8] sm:$0xff] }
 0x723   : > { %5621 = vmatprep.subr.bf16.mxu0 %v6347_v27  ;;  %5634 = vmatpush1.bf16.msra.mxu1 %v5633_v57  ;;  %v5661_v57 = vpack.c.bf16 %v4349_v46, %v4342_v17 }
 0x724   : > { %5636 = vmatprep.subr.bf16.mxu1 %v5635_v25  ;;  %v4356_v25 = vld [vmem:[%s8347_s9 + $0xf0] sm:$0xff] }
 0x726   : > { %5623 = vmatpush1.bf16.msra.mxu0 %v5622_v12  ;;  %v5653_v12 = vpack.c.bf16 %v4417_v3, %v4410_v2 }
 0x727   : > { %5624 = vmatprep.subr.bf16.mxu0 %v6347_v27  ;;  %5638 = vmatpush1.bf16.msra.mxu1 %v5637_v8 }
 0x728   : > { %5640 = vmatprep.subr.bf16.mxu1 %v5639_v7  ;;  %v5665_v7 = vpack.c.bf16 %v4363_v24, %v4356_v25  ;;  %v4344_v24 = vld [vmem:[%s8347_s9 + $0x90] sm:$0xff] }
 0x72a   : > { %5626 = vmatpush1.bf16.msra.mxu0 %v5625_v35 }
 0x72b   : > { %5656 = vmatprep.subr.bf16.mxu0 %v5655_v48  ;;  %5642 = vmatpush1.bf16.msra.mxu1 %v5641_v37  ;;  %v5659_v48 = vpack.c.bf16 %v4350_v22, %v4343_v55 }
 0x72c   : > { %5644 = vmatprep.subr.bf16.mxu1 %v5643_v38 }
 0x72f   : > { %5646 = vmatpush1.bf16.msra.mxu1 %v5645_v21 }
 0x730   : > { %5648 = vmatprep.subr.bf16.mxu1 %v5647_v5  ;;  %v4384_v5 = vld [vmem:[%s8347_s9 + $0x1d0] sm:$0xff] }
 0x733   : > { %5650 = vmatpush1.bf16.msra.mxu1 %v5649_v58 }
 0x734   : > { %5652 = vmatprep.subr.bf16.mxu1 %v5651_v59  ;;  %v5673_v59 = vpack.c.bf16 %v4391_v15, %v4384_v5  ;;  %v4372_v15 = vld [vmem:[%s8347_s9 + $0x170] sm:$0xff] }
 0x737   : > { %5654 = vmatpush1.bf16.msra.mxu1 %v5653_v12  ;;  %v4398_v12 = vld [vmem:[%s8347_s9 + $0x240] sm:$0xff] }
 0x7db   : > { %v7783_v42 = vpop.f32.mrb[96].mxu1 }
 0x7dc   : > { %v7785_v45 = vpop.f32.mrb[97].mxu1  ;;  %4115 = vrot.lane.b32.xlu0 %v7783_v42, %s6349_s20 }
 0x7dd   : > { %4117 = vrot.lane.b32.xlu1 %v7785_v45, %s6349_s20 }
 0x7df   : > { %v7791_v39 = vpop.f32.mrb[98].mxu1 }
 0x7e0   : > { %v7793_v1 = vpop.f32.mrb[99].mxu1  ;;  %4119 = vrot.lane.b32.xlu0 %v7791_v39, %s6349_s20 }
 0x7e1   : > { %4121 = vrot.lane.b32.xlu1 %v7793_v1, %s6349_s20 }
 0x7e3   : > { %v7799_v40 = vpop.f32.mrb[100].mxu1 }
 0x7e4   : > { %v7801_v16 = vpop.f32.mrb[101].mxu1  ;;  %4123 = vrot.lane.b32.xlu0 %v7799_v40, %s6349_s20 }
 0x7e5   : > { %4125 = vrot.lane.b32.xlu1 %v7801_v16, %s6349_s20 }
 0x7e7   : > { %v7807_v49 = vpop.f32.mrb[102].mxu1 }
 0x7e8   : > { %v7809_v62 = vpop.f32.mrb[103].mxu1  ;;  %4127 = vrot.lane.b32.xlu0 %v7807_v49, %s6349_s20 }
 0x7e9   : > { %4129 = vrot.lane.b32.xlu1 %v7809_v62, %s6349_s20 }
 0x7eb   : > { %v7815_v54 = vpop.f32.mrb[104].mxu1 }
 0x7ec   : > { %v7826_v31 = vpop.f32.mrb[105].mxu1  ;;  %4131 = vrot.lane.b32.xlu0 %v7815_v54, %s6349_s20 }
 0x7ed   : > { %4133 = vrot.lane.b32.xlu1 %v7826_v31, %s6349_s20 }
 0x7ef   : > { %v7847_v50 = vpop.f32.mrb[106].mxu1 }
 0x7f0   : > { %v7855_v56 = vpop.f32.mrb[107].mxu1  ;;  %4135 = vrot.lane.b32.xlu0 %v7847_v50, %s6349_s20 }
 0x7f1   : > { %4137 = vrot.lane.b32.xlu1 %v7855_v56, %s6349_s20 }
 0x7f3   : > { %v7873_v61 = vpop.f32.mrb[108].mxu1 }
 0x7f4   : > { %v7881_v4 = vpop.f32.mrb[109].mxu1  ;;  %4139 = vrot.lane.b32.xlu0 %v7873_v61, %s6349_s20 }
 0x7f5   : > { %4141 = vrot.lane.b32.xlu1 %v7881_v4, %s6349_s20  ;;  %s4999_s20 = sshll.u32 %s478_s26, 3 }
 0x7f6   : > { %s480_s14 = scalar_lea.vmem [#allocation15], %s4999_s20 }
 0x7f7   : > { %s4853_s12 = sshll.u32 %s480_s14, 4  ;;  %s8298_s12 = int_to_ptr.vmem [resolvable:$true] %s4853_s12 }
 0x7f8   : > { %s6254_s22 = scalar_lea.vmem %s8298_s12, 128  ;;  %p6261_p5 = scmp.lt.s32.totalorder %s8298_s12, %s6259_s16 }
 0x7f9   : > { %p6255_p4 = scmp.ne.s32.totalorder %s8298_s12, %s6254_s22  ;;  %p6262_p6 = scmp.lt.s32.totalorder %s6260_s24, %s6254_s22 }
 0x7fb   : > { %p6256_p8 = pnand %p6255_p4, %p8392_p7  ;;  %p6263_p0 = por %p6262_p6, %p6261_p5 }
 0x7fd   : > { %p6257_p11 = pneg %p6256_p8 }
 0x7ff   : > { %p6264_p9 = pnand %p6263_p0, %p6257_p11 }
 0x84e   : > { %v4116_v35 = vpop.permute.xlu0 %4115 }
 0x84f   : > { %v4118_v10 = vpop.permute.xlu1 %4117 }
 0x850   : > { %v4143_v26 = vsel %vm3053_vm14, %v4116_v35, %v4118_v10  ;;  %v4165_v63 = vmax.f32 %v7785_v45, %v4118_v10  ;;  %v5677_v10 = vpack.c.bf16 %v4405_v43, %v4398_v12  ;;  %v4386_v43 = vld [vmem:[%s8347_s9 + $0x1e0] sm:$0xff] }
 0x851   : > { %v4164_v6 = vmax.f32 %v7783_v42, %v4143_v26  ;;  %v4364_v42 = vld [vmem:[%s8347_s9 + $0x130] sm:$0xff] }
 0x852   : > { %5224 = vmatprep.mubr.msk.f32.mxu0 %vm4204_vm15, %v4165_v63  ;;  %v4120_v53 = vpop.permute.xlu0 %4119  ;;  %v5663_v23 = vpack.c.bf16 %v4364_v42, %v4357_v18  ;;  %v4331_v18 = vld [vmem:[%s8347_s9 + $0x28] sm:$0xff] }
 0x853   : > { %4291 = vmatmul.mubr.f32.vlgmr.msra.gmra.mrb[64].mxu0 %v4164_v6  ;;  %v4122_v45 = vpop.permute.xlu1 %4121  ;;  %v4419_v6 = vld [vmem:[%s8347_s9 + $0x2e8] sm:$0xff] }
 0x854   : > { %v4144_v52 = vsel %vm3053_vm14, %v4120_v53, %v4122_v45  ;;  %v4167_v20 = vmax.f32 %v7793_v1, %v4122_v45  ;;  %5658 = vmatpush1.bf16.msra.mxu0 %v5657_v29  ;;  %v4371_v1 = vld [vmem:[%s8347_s9 + $0x168] sm:$0xff]  ;;  %v4412_v29 = vld [vmem:[%s8347_s9 + $0x2b0] sm:$0xff]  ;;  %v4337_v45 = vld [vmem:[%s8347_s9 + $0x58] sm:$0xff] }
 0x855   : > { %v4166_v41 = vmax.f32 %v7791_v39, %v4144_v52  ;;  %5660 = vmatprep.subr.bf16.mxu0 %v5659_v48  ;;  %v4378_v39 = vld [vmem:[%s8347_s9 + $0x1a0] sm:$0xff]  ;;  %v4332_v52 = vld [vmem:[%s8347_s9 + $0x30] sm:$0xff] }
 0x856   : > { %5225 = vmatprep.mubr.msk.f32.mxu0 %vm4204_vm15, %v4167_v20  ;;  %v4124_v60 = vpop.permute.xlu0 %4123  ;;  %v5667_v11 = vpack.c.bf16 %v4378_v39, %v4371_v1  ;;  %v4339_v20 = vld [vmem:[%s8347_s9 + $0x68] sm:$0xff]  ;;  %v4346_v1 = vld [vmem:[%s8347_s9 + $0xa0] sm:$0xff]  ;;  %v4353_v39 = vld [vmem:[%s8347_s9 + $0xd8] sm:$0xff] }
 0x857   : > { %4296 = vmatmul.mubr.f32.gmra.mrb[66].mxu0 %v4166_v41  ;;  %v4126_v8 = vpop.permute.xlu1 %4125  ;;  %v4352_v41 = vld [vmem:[%s8347_s9 + $0xd0] sm:$0xff]  ;;  %v8061_v25 = vpack.c.bf16 %v4339_v20, %v4332_v52  ;;  %v8088_v33 = vpack.c.bf16 %v4353_v39, %v4346_v1  ;;  %v4421_v52 = vld [vmem:[%s8347_s9 + $0x2f8] sm:$0xff] }
 0x858   : > { %v4145_v30 = vsel %vm3053_vm14, %v4124_v60, %v4126_v8  ;;  %v4169_v13 = vmax.f32 %v7801_v16, %v4126_v8  ;;  %5662 = vmatpush1.bf16.msra.mxu0 %v5661_v57  ;;  %v4385_v16 = vld [vmem:[%s8347_s9 + $0x1d8] sm:$0xff]  ;;  %v4351_v60 = vld [vmem:[%s8347_s9 + $0xc8] sm:$0xff]  ;;  %v4416_v20 = vld [vmem:[%s8347_s9 + $0x2d0] sm:$0xff] }
 0x859   : > { %v4168_v34 = vmax.f32 %v7799_v40, %v4145_v30  ;;  %5664 = vmatprep.subr.bf16.mxu0 %v5663_v23  ;;  %v4392_v40 = vld [vmem:[%s8347_s9 + $0x210] sm:$0xff]  ;;  %v4345_v57 = vld [vmem:[%s8347_s9 + $0x98] sm:$0xff] }
 0x85a   : > { %5226 = vmatprep.mubr.msk.f32.mxu0 %vm4204_vm15, %v4169_v13  ;;  %v4128_v37 = vpop.permute.xlu0 %4127  ;;  %v5671_v21 = vpack.c.bf16 %v4392_v40, %v4385_v16  ;;  %v5687_v30 = vpack.c.bf16 %v4352_v41, %v4345_v57  ;;  %v4360_v16 = vld [vmem:[%s8347_s9 + $0x110] sm:$0xff]  ;;  %v4367_v40 = vld [vmem:[%s8347_s9 + $0x148] sm:$0xff] }
 0x85b   : > { %4301 = vmatmul.mubr.f32.gmra.mrb[68].mxu0 %v4168_v34  ;;  %v4130_v38 = vpop.permute.xlu1 %4129  ;;  %v4366_v34 = vld [vmem:[%s8347_s9 + $0x140] sm:$0xff]  ;;  %v8118_v5 = vpack.c.bf16 %v4367_v40, %v4360_v16  ;;  %v4423_v57 = vld [vmem:[%s8347_s9 + $0x308] sm:$0xff] }
 0x85c   : > { %v4146_v44 = vsel %vm3053_vm14, %v4128_v37, %v4130_v38  ;;  %v4171_v28 = vmax.f32 %v7809_v62, %v4130_v38  ;;  %5666 = vmatpush1.bf16.msra.mxu0 %v5665_v7  ;;  %v4399_v62 = vld [vmem:[%s8347_s9 + $0x248] sm:$0xff]  ;;  %v4365_v37 = vld [vmem:[%s8347_s9 + $0x138] sm:$0xff]  ;;  %v5730_v1 = vpack.c.bf16 %v4423_v57, %v4416_v20 }
 0x85d   : > { %v4170_v9 = vmax.f32 %v7807_v49, %v4146_v44  ;;  %5668 = vmatprep.subr.bf16.mxu0 %v5667_v11  ;;  %v4406_v49 = vld [vmem:[%s8347_s9 + $0x280] sm:$0xff]  ;;  %v4359_v7 = vld [vmem:[%s8347_s9 + $0x108] sm:$0xff]  ;;  %v5689_v11 = vpack.c.bf16 %v4351_v60, %v4344_v24 }
 0x85e   : > { %5227 = vmatprep.mubr.msk.f32.mxu0 %vm4204_vm15, %v4171_v28  ;;  %v4132_v14 = vpop.permute.xlu0 %4131  ;;  %v5675_v3 = vpack.c.bf16 %v4406_v49, %v4399_v62  ;;  %v5691_v44 = vpack.c.bf16 %v4366_v34, %v4359_v7  ;;  %v4374_v62 = vld [vmem:[%s8347_s9 + $0x180] sm:$0xff]  ;;  %v4381_v49 = vld [vmem:[%s8347_s9 + $0x1b8] sm:$0xff] }
 0x85f   : > { %4306 = vmatmul.mubr.f32.gmra.mrb[70].mxu0 %v4170_v9  ;;  %v4134_v51 = vpop.permute.xlu1 %4133  ;;  %v4380_v9 = vld [vmem:[%s8347_s9 + $0x1b0] sm:$0xff]  ;;  %v8148_v12 = vpack.c.bf16 %v4381_v49, %v4374_v62 }
 0x860   : > { %v4147_v19 = vsel %vm3053_vm14, %v4132_v14, %v4134_v51  ;;  %v4173_v58 = vmax.f32 %v7826_v31, %v4134_v51  ;;  %5670 = vmatpush1.bf16.msra.mxu0 %v5669_v47  ;;  %v4413_v31 = vld [vmem:[%s8347_s9 + $0x2b8] sm:$0xff]  ;;  %v4379_v14 = vld [vmem:[%s8347_s9 + $0x1a8] sm:$0xff] }
 0x861   : > { %v4172_v2 = vmax.f32 %v7815_v54, %v4147_v19  ;;  %5672 = vmatprep.subr.bf16.mxu0 %v5671_v21  ;;  %v4420_v54 = vld [vmem:[%s8347_s9 + $0x2f0] sm:$0xff]  ;;  %v4373_v47 = vld [vmem:[%s8347_s9 + $0x178] sm:$0xff]  ;;  %v5693_v21 = vpack.c.bf16 %v4365_v37, %v4358_v36 }
 0x862   : > { %5228 = vmatprep.mubr.msk.f32.mxu0 %vm4204_vm15, %v4173_v58  ;;  %v4136_v32 = vpop.permute.xlu0 %4135  ;;  %v5679_v63 = vpack.c.bf16 %v4420_v54, %v4413_v31  ;;  %v5695_v19 = vpack.c.bf16 %v4380_v9, %v4373_v47  ;;  %v4388_v31 = vld [vmem:[%s8347_s9 + $0x1f0] sm:$0xff]  ;;  %v4395_v54 = vld [vmem:[%s8347_s9 + $0x228] sm:$0xff] }
 0x863   : > { %4311 = vmatmul.mubr.f32.gmra.mrb[72].mxu0 %v4172_v2  ;;  %v4138_v35 = vpop.permute.xlu1 %4137  ;;  %v4394_v2 = vld [vmem:[%s8347_s9 + $0x220] sm:$0xff] }
 0x864   : > { %v4148_v55 = vsel %vm3053_vm14, %v4136_v32, %v4138_v35  ;;  %v4175_v22 = vmax.f32 %v7855_v56, %v4138_v35  ;;  %5674 = vmatpush1.bf16.msra.mxu0 %v5673_v59  ;;  %v4387_v59 = vld [vmem:[%s8347_s9 + $0x1e8] sm:$0xff]  ;;  %v4393_v32 = vld [vmem:[%s8347_s9 + $0x218] sm:$0xff] }
 0x865   : > { %v4174_v26 = vmax.f32 %v7847_v50, %v4148_v55  ;;  %5676 = vmatprep.subr.bf16.mxu0 %v5675_v3  ;;  %v5681_v50 = vpack.c.bf16 %v4419_v6, %v4412_v29  ;;  %v5697_v3 = vpack.c.bf16 %v4379_v14, %v4372_v15  ;;  %v5699_v55 = vpack.c.bf16 %v4394_v2, %v4387_v59  ;;  %v4400_v6 = vld [vmem:[%s8347_s9 + $0x250] sm:$0xff] }
 0x866   : > { %5229 = vmatprep.mubr.msk.f32.mxu0 %vm4204_vm15, %v4175_v22  ;;  %v4140_v48 = vpop.permute.xlu0 %4139  ;;  %v8178_v29 = vpack.c.bf16 %v4395_v54, %v4388_v31 }
 0x867   : > { %4316 = vmatmul.mubr.f32.gmra.mrb[74].mxu0 %v4174_v26  ;;  %v4142_v17 = vpop.permute.xlu1 %4141  ;;  %v4408_v26 = vld [vmem:[%s8347_s9 + $0x290] sm:$0xff] }
 0x868   : > { %v4149_v56 = vsel %vm3053_vm14, %v4140_v48, %v4142_v17  ;;  %v4177_v46 = vmax.f32 %v7881_v4, %v4142_v17  ;;  %5678 = vmatpush1.bf16.msra.mxu0 %v5677_v10  ;;  %v4338_v4 = vld [vmem:[%s8347_s9 + $0x60] sm:$0xff]  ;;  %v4401_v10 = vld [vmem:[%s8347_s9 + $0x258] sm:$0xff]  ;;  %v4407_v48 = vld [vmem:[%s8347_s9 + $0x288] sm:$0xff] }
 0x869   : > { %v4176_v53 = vmax.f32 %v7873_v61, %v4149_v56  ;;  %5680 = vmatprep.subr.bf16.mxu0 %v5679_v63  ;;  %v5683_v42 = vpack.c.bf16 %v4338_v4, %v4331_v18  ;;  %v4330_v61 = vld [vmem:[%s8347_s9 + $0x20] sm:$0xff]  ;;  %v5701_v63 = vpack.c.bf16 %v4393_v32, %v4386_v43  ;;  %v4409_v56 = vld [vmem:[%s8347_s9 + $0x298] sm:$0xff]  ;;  %v4415_v18 = vld [vmem:[%s8347_s9 + $0x2c8] sm:$0xff] }
 0x86a   : > { %5230 = vmatprep.mubr.msk.f32.mxu0 %vm4204_vm15, %v4177_v46  ;;  %v5685_v23 = vpack.c.bf16 %v4337_v45, %v4330_v61  ;;  %v4402_v17 = vld [vmem:[%s8347_s9 + $0x260] sm:$0xff] }
 0x86b   : > { %4321 = vmatmul.mubr.f32.gmra.mrb[76].mxu0 %v4176_v53  ;;  %5684 = vmatprep.subr.bf16.mxu1 %v5683_v42  ;;  %v4422_v4 = vld [vmem:[%s8347_s9 + $0x300] sm:$0xff]  ;;  %v5705_v42 = vpack.c.bf16 %v4407_v48, %v4400_v6  ;;  %v8208_v61 = vpack.c.bf16 %v4409_v56, %v4402_v17 }
 0x86c   : > { %5682 = vmatpush1.bf16.msra.mxu0 %v5681_v50  ;;  %4604 = vmatprep.mubr.f32.mxu0 %v6345_v0  ;;  %v5703_v50 = vpack.c.bf16 %v4408_v26, %v4401_v10  ;;  %v4414_v45 = vld [vmem:[%s8347_s9 + $0x2c0] sm:$0xff] }
 0x86d   : > { %5711 = vmatprep.subr.bf16.mxu0 %v6347_v27  ;;  %v5709_v60 = vpack.c.bf16 %v4421_v52, %v4414_v45 }
 0x926   : > { %v8075_v8 = vpop.f32.mrb[64].mxu0 }
 0x927   : > { %v4294_v13 = vpop.f32.mrb[65].mxu0  ;;  %5231 = vmatmul.mubr.msk.f32.vlgmr.msra.gmra.mrb[110].mxu1 %vm3053_vm14, %v8075_v8  ;;  %5238 = vmatmul.mubr.msk.f32.vlgmr.msra.gmra.mrb[78].mxu0 %vm3053_vm14, %v8075_v8 }
 0x928   : > { %5686 = vmatpush1.bf16.msra.mxu1 %v5685_v23  ;;  %5713 = vmatpush3.bf16.msra.mxu0 %v8061_v25  ;;  %v5707_v23 = vpack.c.bf16 %v4422_v4, %v4415_v18 }
 0x929   : > { %4514 = vmatprep.mubr.f32.mxu1 %v6345_v0  ;;  %4608 = vmatprep.mubr.f32.mxu0 %v6345_v0 }
 0x92a   : > { %v8104_v38 = vpop.f32.mrb[66].mxu0  ;;  %5688 = vmatprep.subr.bf16.mxu1 %v5687_v30  ;;  %5714 = vmatprep.subr.bf16.mxu0 %v6347_v27 }
 0x92b   : > { %v4299_v28 = vpop.f32.mrb[67].mxu0  ;;  %5232 = vmatmul.mubr.msk.f32.gmra.mrb[112].mxu1 %vm3053_vm14, %v8104_v38  ;;  %5239 = vmatmul.mubr.msk.f32.gmra.mrb[80].mxu0 %vm3053_vm14, %v8104_v38 }
 0x92c   : > { %5690 = vmatpush1.bf16.msra.mxu1 %v5689_v11  ;;  %5716 = vmatpush3.bf16.msra.mxu0 %v8088_v33 }
 0x92d   : > { %4519 = vmatprep.mubr.f32.mxu1 %v6345_v0  ;;  %4612 = vmatprep.mubr.f32.mxu0 %v6345_v0 }
 0x92e   : > { %v8134_v51 = vpop.f32.mrb[68].mxu0  ;;  %5692 = vmatprep.subr.bf16.mxu1 %v5691_v44  ;;  %5717 = vmatprep.subr.bf16.mxu0 %v6347_v27 }
 0x92f   : > { %v4304_v58 = vpop.f32.mrb[69].mxu0  ;;  %5233 = vmatmul.mubr.msk.f32.gmra.mrb[114].mxu1 %vm3053_vm14, %v8134_v51  ;;  %5240 = vmatmul.mubr.msk.f32.gmra.mrb[82].mxu0 %vm3053_vm14, %v8134_v51 }
 0x930   : > { %5694 = vmatpush1.bf16.msra.mxu1 %v5693_v21  ;;  %5719 = vmatpush3.bf16.msra.mxu0 %v8118_v5 }
 0x931   : > { %4523 = vmatprep.mubr.f32.mxu1 %v6345_v0  ;;  %4617 = vmatprep.mubr.f32.mxu0 %v6345_v0 }
 0x932   : > { %v8164_v35 = vpop.f32.mrb[70].mxu0  ;;  %5696 = vmatprep.subr.bf16.mxu1 %v5695_v19  ;;  %5720 = vmatprep.subr.bf16.mxu0 %v6347_v27 }
 0x933   : > { %v4309_v22 = vpop.f32.mrb[71].mxu0  ;;  %5234 = vmatmul.mubr.msk.f32.gmra.mrb[116].mxu1 %vm3053_vm14, %v8164_v35  ;;  %5241 = vmatmul.mubr.msk.f32.gmra.mrb[84].mxu0 %vm3053_vm14, %v8164_v35 }
 0x934   : > { %5698 = vmatpush1.bf16.msra.mxu1 %v5697_v3  ;;  %5722 = vmatpush3.bf16.msra.mxu0 %v8148_v12 }
 0x935   : > { %4527 = vmatprep.mubr.f32.mxu1 %v6345_v0  ;;  %4622 = vmatprep.mubr.f32.mxu0 %v6345_v0 }
 0x936   : > { %v8194_v46 = vpop.f32.mrb[72].mxu0  ;;  %5700 = vmatprep.subr.bf16.mxu1 %v5699_v55  ;;  %5723 = vmatprep.subr.bf16.mxu0 %v6347_v27 }
 0x937   : > { %v4314_v53 = vpop.f32.mrb[73].mxu0  ;;  %5235 = vmatmul.mubr.msk.f32.gmra.mrb[118].mxu1 %vm3053_vm14, %v8194_v46  ;;  %5242 = vmatmul.mubr.msk.f32.gmra.mrb[86].mxu0 %vm3053_vm14, %v8194_v46 }
 0x938   : > { %5702 = vmatpush1.bf16.msra.mxu1 %v5701_v63  ;;  %5725 = vmatpush3.bf16.msra.mxu0 %v8178_v29 }
 0x939   : > { %4531 = vmatprep.mubr.f32.mxu1 %v6345_v0  ;;  %4626 = vmatprep.mubr.f32.mxu0 %v6345_v0 }
 0x93a   : > { %v4317_v41 = vpop.f32.mrb[74].mxu0  ;;  %5704 = vmatprep.subr.bf16.mxu1 %v5703_v50  ;;  %5726 = vmatprep.subr.bf16.mxu0 %v6347_v27 }
 0x93b   : > { %v4319_v24 = vpop.f32.mrb[75].mxu0  ;;  %5236 = vmatmul.mubr.msk.f32.gmra.mrb[120].mxu1 %vm3053_vm14, %v4317_v41  ;;  %5243 = vmatmul.mubr.msk.f32.gmra.mrb[88].mxu0 %vm3053_vm14, %v4317_v41 }
 0x93c   : > { %5706 = vmatpush1.bf16.msra.mxu1 %v5705_v42  ;;  %5728 = vmatpush3.bf16.msra.mxu0 %v8208_v61 }
 0x93d   : > { %4535 = vmatprep.mubr.f32.mxu1 %v6345_v0  ;;  %4630 = vmatprep.mubr.f32.mxu0 %v6345_v0 }
 0x93e   : > { %v4322_v39 = vpop.f32.mrb[76].mxu0  ;;  %5708 = vmatprep.subr.bf16.mxu1 %v5707_v23  ;;  %5729 = vmatprep.subr.bf16.mxu0 %v6347_v27 }
 0x93f   : > { %v4324_v30 = vpop.f32.mrb[77].mxu0  ;;  %5237 = vmatmul.mubr.msk.f32.gmra.mrb[122].mxu1 %vm3053_vm14, %v4322_v39  ;;  %5244 = vmatmul.mubr.msk.f32.gmra.mrb[90].mxu0 %vm3053_vm14, %v4322_v39 }
 0x940   : > { %5710 = vmatpush1.bf16.msra.mxu1 %v5709_v60  ;;  %5731 = vmatpush3.bf16.msra.mxu0 %v5730_v1  ;;  %v5259_v60 = vld [vmem:[#allocation14] ss:$0 sm:$0xff] }
 0x941   : > { %4699 = vmatprep.mubr.f32.mxu1 %v6345_v0  ;;  %5314 = vmatprep.mubr.msk.f32.mxu0 %vm6350_vm0, %v6345_v0 }
 0x942   : > { %5732 = vmatprep.subr.bf16.mxu1 %v6347_v27 }
 0x943   : > { %5245 = vmatmul.mubr.msk.f32.vlgmr.msra.gmra.mrb[124].mxu1 %vm3053_vm14, %v8075_v8  ;;  %5315 = vmatmul.mubr.msk.f32.vlgmr.msra.gmra.mrb[92].mxu0 %vm3053_vm14, %v8075_v8 }
 0x944   : > { %5739 = vmatpush3.bf16.msra.mxu1 %v8061_v25  ;;  %4703 = vmatprep.mubr.f32.mxu1 %v6345_v0 }
 0x945   : > { %5317 = vmatprep.mubr.msk.f32.mxu0 %vm6350_vm0, %v6345_v0  ;;  %5733 = vmatprep.subr.bf16.mxu1 %v6347_v27 }
 0x947   : > { %5246 = vmatmul.mubr.msk.f32.gmra.mrb[126].mxu1 %vm3053_vm14, %v8104_v38  ;;  %5318 = vmatmul.mubr.msk.f32.gmra.mrb[94].mxu0 %vm3053_vm14, %v8104_v38 }
 0x948   : > { %5740 = vmatpush3.bf16.msra.mxu1 %v8088_v33  ;;  %4707 = vmatprep.mubr.f32.mxu1 %v6345_v0 }
 0x949   : > { %5320 = vmatprep.mubr.msk.f32.mxu0 %vm6350_vm0, %v6345_v0  ;;  %5734 = vmatprep.subr.bf16.mxu1 %v6347_v27 }
 0x94b   : > { %5247 = vmatmul.mubr.msk.f32.gmra.mrb[128].mxu1 %vm3053_vm14, %v8134_v51  ;;  %5321 = vmatmul.mubr.msk.f32.gmra.mrb[96].mxu0 %vm3053_vm14, %v8134_v51 }
 0x94c   : > { %5741 = vmatpush3.bf16.msra.mxu1 %v8118_v5  ;;  %4711 = vmatprep.mubr.f32.mxu1 %v6345_v0 }
 0x94d   : > { %5323 = vmatprep.mubr.msk.f32.mxu0 %vm6350_vm0, %v6345_v0  ;;  %5735 = vmatprep.subr.bf16.mxu1 %v6347_v27 }
 0x94f   : > { %5248 = vmatmul.mubr.msk.f32.gmra.mrb[130].mxu1 %vm3053_vm14, %v8164_v35  ;;  %5324 = vmatmul.mubr.msk.f32.gmra.mrb[98].mxu0 %vm3053_vm14, %v8164_v35 }
 0x950   : > { %5742 = vmatpush3.bf16.msra.mxu1 %v8148_v12  ;;  %4715 = vmatprep.mubr.f32.mxu1 %v6345_v0 }
 0x951   : > { %5326 = vmatprep.mubr.msk.f32.mxu0 %vm6350_vm0, %v6345_v0  ;;  %5736 = vmatprep.subr.bf16.mxu1 %v6347_v27 }
 0x953   : > { %5249 = vmatmul.mubr.msk.f32.gmra.mrb[132].mxu1 %vm3053_vm14, %v8194_v46  ;;  %5327 = vmatmul.mubr.msk.f32.gmra.mrb[100].mxu0 %vm3053_vm14, %v8194_v46 }
 0x954   : > { %5743 = vmatpush3.bf16.msra.mxu1 %v8178_v29  ;;  %4720 = vmatprep.mubr.f32.mxu1 %v6345_v0 }
 0x955   : > { %5329 = vmatprep.mubr.msk.f32.mxu0 %vm6350_vm0, %v6345_v0  ;;  %5737 = vmatprep.subr.bf16.mxu1 %v6347_v27 }
 0x957   : > { %5250 = vmatmul.mubr.msk.f32.gmra.mrb[134].mxu1 %vm3053_vm14, %v4317_v41  ;;  %5330 = vmatmul.mubr.msk.f32.gmra.mrb[102].mxu0 %vm3053_vm14, %v4317_v41 }
 0x958   : > { %5744 = vmatpush3.bf16.msra.mxu1 %v8208_v61  ;;  %4725 = vmatprep.mubr.f32.mxu1 %v6345_v0 }
 0x959   : > { %5738 = vmatprep.subr.bf16.mxu1 %v6347_v27 }
 0x95b   : > { %5251 = vmatmul.mubr.msk.f32.gmra.mrb[136].mxu1 %vm3053_vm14, %v4322_v39 }
 0x95c   : > { %5745 = vmatpush3.bf16.msra.mxu1 %v5730_v1  ;;  %5332 = vmatprep.mubr.msk.f32.mxu1 %vm6350_vm0, %v6345_v0 }
 0x95f   : > { %5333 = vmatmul.mubr.msk.f32.vlgmr.msra.gmra.mrb[138].mxu1 %vm3053_vm14, %v4322_v39 }
 0x9fa   : > { %v4511_v25 = vpop.f32.mrb[110].mxu1  ;;  %v4606_v8 = vpop.f32.mrb[78].mxu0 }
 0x9fb   : > { %v4513_v13 = vpop.f32.mrb[111].mxu1  ;;  %v4607_v7 = vpop.f32.mrb[79].mxu0 }
 0x9fe   : > { %v4516_v34 = vpop.f32.mrb[112].mxu1  ;;  %v4610_v11 = vpop.f32.mrb[80].mxu0 }
 0x9ff   : > { %v4517_v33 = vpop.f32.mrb[113].mxu1  ;;  %v4611_v36 = vpop.f32.mrb[81].mxu0 }
 0xa00   : > { %v4824_v37 = vadd.f32 %v4517_v33, %v4511_v25 }
 0xa02   : > { %v4521_v16 = vpop.f32.mrb[114].mxu1  ;;  %v4614_v40 = vpop.f32.mrb[82].mxu0 }
 0xa03   : > { %v4825_v27 = vadd.f32 %v4824_v37, %v4614_v40  ;;  %v4522_v38 = vpop.f32.mrb[115].mxu1  ;;  %v4616_v44 = vpop.f32.mrb[83].mxu0 }
 0xa06   : > { %v4525_v28 = vpop.f32.mrb[116].mxu1  ;;  %v4619_v47 = vpop.f32.mrb[84].mxu0 }
 0xa07   : > { %v4526_v9 = vpop.f32.mrb[117].mxu1  ;;  %v4620_v0 = vpop.f32.mrb[85].mxu0 }
 0xa08   : > { %v4826_v21 = vadd.f32 %v4825_v27, %v4620_v0 }
 0xa0a   : > { %v4529_v5 = vpop.f32.mrb[118].mxu1  ;;  %v4624_v15 = vpop.f32.mrb[86].mxu0 }
 0xa0b   : > { %v4530_v14 = vpop.f32.mrb[119].mxu1  ;;  %v4625_v62 = vpop.f32.mrb[87].mxu0 }
 0xa0e   : > { %v4533_v49 = vpop.f32.mrb[120].mxu1  ;;  %v4628_v51 = vpop.f32.mrb[88].mxu0 }
 0xa0f   : > { %v4534_v19 = vpop.f32.mrb[121].mxu1  ;;  %v4629_v58 = vpop.f32.mrb[89].mxu0 }
 0xa12   : > { %v4537_v59 = vpop.f32.mrb[122].mxu1  ;;  %v4632_v2 = vpop.f32.mrb[90].mxu0 }
 0xa13   : > { %v4538_v3 = vpop.f32.mrb[123].mxu1  ;;  %v4633_v12 = vpop.f32.mrb[91].mxu0 }
 0xa16   : > { %v4701_v43 = vpop.f32.mrb[124].mxu1  ;;  %v4796_v32 = vpop.f32.mrb[92].mxu0 }
 0xa17   : > { %v4702_v31 = vpop.f32.mrb[125].mxu1  ;;  %v5316_v54 = vpop.f32.mrb[93].mxu0 }
 0xa1a   : > { %v4705_v35 = vpop.f32.mrb[126].mxu1  ;;  %v4800_v55 = vpop.f32.mrb[94].mxu0 }
 0xa1b   : > { %v4706_v22 = vpop.f32.mrb[127].mxu1  ;;  %v5319_v10 = vpop.f32.mrb[95].mxu0 }
 0xa1e   : > { %v4709_v26 = vpop.f32.mrb[128].mxu1  ;;  %v4804_v63 = vpop.f32.mrb[96].mxu0 }
 0xa1f   : > { %v4710_v29 = vpop.f32.mrb[129].mxu1  ;;  %v5322_v6 = vpop.f32.mrb[97].mxu0 }
 0xa22   : > { %v4713_v48 = vpop.f32.mrb[130].mxu1  ;;  %v4808_v17 = vpop.f32.mrb[98].mxu0 }
 0xa23   : > { %v4714_v56 = vpop.f32.mrb[131].mxu1  ;;  %v5325_v46 = vpop.f32.mrb[99].mxu0 }
 0xa26   : > { %v4717_v50 = vpop.f32.mrb[132].mxu1  ;;  %v4812_v53 = vpop.f32.mrb[100].mxu0 }
 0xa27   : > { %v4827_v18 = vadd.f32 %v4826_v21, %v4717_v50  ;;  %v4719_v4 = vpop.f32.mrb[133].mxu1  ;;  %v5328_v42 = vpop.f32.mrb[101].mxu0 }
 0xa2a   : > { %v4722_v61 = vpop.f32.mrb[134].mxu1  ;;  %v4816_v45 = vpop.f32.mrb[102].mxu0 }
 0xa2b   : > { %v4723_v52 = vpop.f32.mrb[135].mxu1  ;;  %v5331_v20 = vpop.f32.mrb[103].mxu0 }
 0xa2c   : > { %v4828_v57 = vadd.f32 %v4827_v18, %v4723_v52 }
 0xa2e   : > { %v4727_v41 = vpop.f32.mrb[136].mxu1 }
 0xa2f   : > { %v4728_v23 = vpop.f32.mrb[137].mxu1 }
 0xa32   : > { %v4820_v24 = vpop.f32.mrb[138].mxu1 }
 0xa33   : > { %v4829_v1 = vadd.f32 %v4828_v57, %v4820_v24  ;;  %v5334_v39 = vpop.f32.mrb[139].mxu1 }
 0xa35   : > { %v4837_v30 = vadd.f32 %v5259_v60, %v4829_v1 }
 0xa37   : > { %4838 = vst [vmem:[%s480_s14] sm:$0xff] %v4837_v30 }
 0xa38   : > { %6267 = shalt.err (!%p6264_p9)
}
 0xa39   : > { %s6268_s29 = scalar_lea.hbm %s8296_s19, 128  ;;  %s6272_s3 = scalar_lea.hbm %s8349_s11, 256 }
 0xa3a   : > { %p6269_p10 = scmp.ne.s32.totalorder %s8296_s19, %s6268_s29  ;;  %p6273_p1 = scmp.lt.u32.totalorder %s8296_s19, %s8349_s11 }
 0xa3b   : > { %p6274_p2 = scmp.lt.u32.totalorder %s6272_s3, %s6268_s29  ;;  %p6276_p4 = scmp.lt.u32.totalorder %s6268_s29, %s8296_s19 }
 0xa3c   : > { %p6270_p13 = pnand %p6269_p10, %p8392_p7 }
 0xa3d   : > { %p6275_p3 = por %p6274_p2, %p6273_p1 }
 0xa3e   : > { %p6271_p12 = pneg %p6270_p13 }
 0xa3f   : > { %p6277_p8 = por %p6276_p4, %p6275_p3 }
 0xa41   : > { %p6278_p11 = pnand %p6277_p8, %p6271_p12 }
 0xa43   : > { %6281 = shalt.err (!%p6278_p11)
}
 0xa44   : > { %5966 = dma.vmem_to_hbm [thread:$0]  (%p8392_p7), %s8298_s12, 128, %s8296_s19, %s4840_s17  }
 0xa45 PF: > { %s8393_s20 = sld [smem:[#allocation23_spill]]  ;;  %s8394_s25 = sld [smem:[#allocation21_spill]] }
 0xa46   : > { %s8395_s14 = sld [smem:[#allocation26_spill]] }
 0xa4b   : > { %p6008_p5 = scmp.ge.s32.totalorder %s8393_s20, 2  ;;  %s4865_s15 = sand.u32 1, %s8394_s25  }
 0xa4c   : > { %p8396_p6 = scmp.ne.s32.totalorder %s8395_s14, 0  ;;  %s4866_s28 = scalar_lea.sflag [#allocation5], %s4865_s15 }
 0xa4e   : > { %p5991_p0 = pnand %p6008_p5, %p8396_p6 }
 0xa50   : > { %6315 = dma.done.wait (!%p5991_p0), %s4866_s28, 128  }
 0xa51   : > { %6317 = vsyncadd (!%p5991_p0), %s4866_s28, 4294967168  ;;  %s8397_s20 = sld [smem:[#allocation24_spill]]  ;;  %s8398_s22 = sld [smem:[#allocation22_spill]] }
 0xa52   : > { %s8399_s19 = sld [smem:[#allocation25_spill]]  ;;  %s8400_s17 = smov %s6324_s18 }
 0xa57   : > { %p25_p9 = scmp.ge.s32.totalorder %s8397_s20, 4   ;;  %s8401_s18 = smov %s8398_s22 }
 0xa59   :  { %27 = sbr.rel (!%p25_p9) target bundleno = 9 (0x9), region = 139 }
 0xa60   :  { %4871 = vsyncpa [#allocation4], 1 }
 0xa61   :  { %4873 = vsyncpa [#allocation4 + $0x1], 1 }
 0xa62   :  { %4874 = vsyncpa [#allocation7], 1 }
 0xa63   :  { %4875 = vsyncpa [#allocation10], 1 }
 0xa64   :  { %4876 = vsyncpa [#allocation13], 1 }
 0xa65   :  { %4877 = vsyncpa [#allocation5], 1 }
 0xa66   :  { %4879 = vsyncpa [#allocation5 + $0x1], 1 }

</bundles_post_ra>
